<compile_context>
chip_gen: v7x
topology: tpu7x:2x2x1
jax: 0.10.0
libtpu: 0.0.40
codegen_flags: <defaults>
</compile_context>

<pallas_src>
import math
import functools

import jax
import jax.numpy as jnp
from jax import lax
from jax.experimental import pallas as pl
from jax.experimental.pallas import tpu as pltpu


def gpt_stack_kernel(x_ref, mask_ref,
                     w_attn_ref, b_attn_ref, w_aproj_ref,
                     w_fc_ref, b_fc_ref, w_mproj_ref,
                     small_ref,
                     o_ref,
                     *, n_head):
    layer = pl.program_id(0)

    # Layer 0: load embeddings into the resident residual stream (= out block).
    @pl.when(layer == 0)
    def _():
        o_ref[...] = x_ref[...]

    B, S, D = o_ref.shape
    T = B * S
    dh = D // n_head

    h = o_ref[...].reshape(T, D)          # (B*S, D) f32 residual, token-flat

    small = small_ref[...]                # (6, D): packed biases / LN params
    b_aproj = small[0:1, :]
    ln1_g = small[1:2, :]
    ln1_b = small[2:3, :]
    b_mproj = small[3:4, :]
    ln2_g = small[4:5, :]
    ln2_b = small[5:6, :]

    def linear(inp_f32, w_ref, b_row):
        # bf16 MXU inputs, f32 accumulation, f32 bias (Conv1D: y = x @ W + b).
        return jnp.dot(inp_f32.astype(jnp.bfloat16), w_ref[...],
                       preferred_element_type=jnp.float32) + b_row

    def layernorm(v, g, b, eps=1e-5):
        mu = jnp.mean(v, axis=-1, keepdims=True)
        var = jnp.mean((v - mu) ** 2, axis=-1, keepdims=True)
        return (v - mu) * lax.rsqrt(var + eps) * g + b

    # ---------------- Attention (scale=True, causal mask) ----------------
    qkv = linear(h, w_attn_ref, b_attn_ref[...])            # (T, 3D) f32
    q = qkv[:, :D] * (1.0 / math.sqrt(dh))                  # fold scale into q
    k = qkv[:, D:2 * D]
    v = qkv[:, 2 * D:]

    def split_heads(t):
        # (T, D) -> (B*H, S, dh)
        # TODO(synk): pltpu.einshape would avoid the XLU relayout of the lane
        #             split D -> (H, dh); kept as reshape/transpose for safety.
        t = jnp.transpose(t.reshape(B, S, n_head, dh), (0, 2, 1, 3))
        return t.reshape(B * n_head, S, dh)

    qh = split_heads(q).astype(jnp.bfloat16)
    kh = split_heads(k).astype(jnp.bfloat16)
    vh = split_heads(v).astype(jnp.bfloat16)

    # Head-batched score matmul: (B*H, S, S) f32 + hoisted additive causal mask.
    scores = jnp.einsum('nqd,nkd->nqk', qh, kh,
                        preferred_element_type=jnp.float32)
    scores = scores + mask_ref[...]                          # (S,S) broadcast

    m = jnp.max(scores, axis=-1, keepdims=True)
    e = jnp.exp(scores - m)                                  # un-normalized
    denom = jnp.sum(e, axis=-1, keepdims=True)

    # PV matmul on un-normalized weights; normalize the (N, S, dh) context
    # afterwards (much smaller than the (N, S, S) probability tensor).
    ctx = jnp.einsum('nqk,nkd->nqd', e.astype(jnp.bfloat16), vh,
                     preferred_element_type=jnp.float32)
    ctx = ctx * pl.reciprocal(denom, approx=True)            # softmax(dim=-1)

    a = jnp.transpose(ctx.reshape(B, n_head, S, dh),
                      (0, 2, 1, 3)).reshape(T, D)            # merge_heads
    a = linear(a, w_aproj_ref, b_aproj)                      # c_proj

    n = layernorm(h + a, ln1_g, ln1_b)                       # ln_1(x + attn(x))

    # ---------------- MLP (gelu) ----------------
    h1 = linear(n, w_fc_ref, b_fc_ref[...])                  # (T, 4D)
    g = 0.5 * h1 * (1.0 + jnp.tanh(math.sqrt(2.0 / math.pi)
                                   * (h1 + 0.044715 * h1 * h1 * h1)))
    h2 = linear(g, w_mproj_ref, b_mproj)                     # (T, D)

    # Residual stream stays resident in the output block across layers.
    o_ref[...] = layernorm(n + h2, ln2_g, ln2_b).reshape(B, S, D)


def _vmem_limit_bytes():
    # ~56 MiB on v7x (64 MiB physical), 96 MiB on v5e/v6e (128 MiB physical).
    try:
        cap = pltpu.get_tpu_info().vmem_capacity_bytes
        return int(min(cap * 7 // 8, 96 * 1024 * 1024))
    except Exception:
        return 48 * 1024 * 1024


def gpt_stack(x, mask, stacked_params, *, n_head):
    """x: (B, S, D) f32 embeddings; mask: (S, S) f32 additive causal bias;
    stacked_params: 7 arrays with leading layer dim L.  Returns (B, S, D)."""
    B, S, D = x.shape
    L = stacked_params[0].shape[0]
    assert D % n_head == 0
    # Lane/sublane-dense layout.
    assert D % 128 == 0, "n_embd should be a multiple of 128 (lane width)"
    assert S % 8 == 0, "sequence length should be a multiple of 8 (sublanes)"

    def param_spec(p):
        nd = p.ndim - 1
        # Leading layer dim squeezed; layer l+1 weights prefetched behind
        # layer l compute by the BlockSpec pipeline.
        return pl.BlockSpec((None,) + tuple(p.shape[1:]),
                            lambda l, _nd=nd: (l,) + (0,) * _nd)

    in_specs = [
        pl.BlockSpec((B, S, D), lambda l: (0, 0, 0)),   # embeddings (read @ l=0)
        pl.BlockSpec((S, S), lambda l: (0, 0)),         # causal mask (constant)
    ] + [param_spec(p) for p in stacked_params]

    return pl.pallas_call(
        functools.partial(gpt_stack_kernel, n_head=n_head),
        out_shape=jax.ShapeDtypeStruct((B, S, D), jnp.float32),
        grid=(L,),
        in_specs=in_specs,
        # Constant index map ⇒ output block resident in VMEM across the whole
        # layer loop; it doubles as the residual-stream accumulator.
        out_specs=pl.BlockSpec((B, S, D), lambda l: (0, 0, 0)),
        compiler_params=pltpu.CompilerParams(
            dimension_semantics=("arbitrary",),
            vmem_limit_bytes=_vmem_limit_bytes()),
    )(x, mask, *stacked_params)


def openai_gpt_forward(input_ids, embed_table, stacked_params, *,
                       vocab_size, n_special, n_head):
    """input_ids: (B, S) int32. Returns hidden states (B, S, D) float32.
    Single shared embedding table (words + specials + positions), default
    position_ids, no token_type_ids, dropout = identity (inference)."""
    B, S = input_ids.shape
    start = vocab_size + n_special
    position_ids = jnp.arange(start, start + S)
    # Embedding gathers + mask build are plain-JAX glue; everything else is
    # one Pallas call over the layer stack.
    h = embed_table[input_ids] + embed_table[position_ids][None, :, :]
    causal = jnp.tril(jnp.ones((S, S), jnp.bool_))
    mask = jnp.where(causal, 0.0, -1e9).astype(jnp.float32)
    return gpt_stack(h, mask, stacked_params, n_head=n_head)


def init_stacked_params(key, n_layer, D):
    """Per-layer params stacked with a leading layer dim.  Projection weights
    bf16 (MXU inputs); biases / LN params f32.  The six (1, D)-sized params
    are packed into one (L, 6, D) array:
        rows = [b_aproj, ln1_gain, ln1_bias, b_mproj, ln2_gain, ln2_bias]."""
    std = 0.02
    keys = jax.random.split(key, 4 * n_layer)

    def stack(shape, kofs):
        return jnp.stack([jax.random.normal(keys[4 * i + kofs], shape,
                                            jnp.float32) * std
                          for i in range(n_layer)]).astype(jnp.bfloat16)

    w_attn = stack((D, 3 * D), 0)        # c_attn (Conv1D: [nx, nf])
    w_aproj = stack((D, D), 1)           # attn c_proj
    w_fc = stack((D, 4 * D), 2)          # mlp c_fc
    w_mproj = stack((4 * D, D), 3)       # mlp c_proj

    b_attn = jnp.zeros((n_layer, 1, 3 * D), jnp.float32)
    b_fc = jnp.zeros((n_layer, 1, 4 * D), jnp.float32)

    row = jnp.stack([jnp.zeros(D), jnp.ones(D), jnp.zeros(D),
                     jnp.zeros(D), jnp.ones(D), jnp.zeros(D)]).astype(jnp.float32)
    small = jnp.tile(row[None], (n_layer, 1, 1))             # (L, 6, D)

    return (w_attn, b_attn, w_aproj, w_fc, b_fc, w_mproj, small)


if __name__ == "__main__":
    # Small, lane-dense config consistent with OpenAIGPTConfig semantics.
    B, S = 2, 16
    vocab_size, n_special, n_ctx = 64, 0, 16
    D, n_layer, n_head = 128, 2, 4
    total_embeddings = vocab_size + n_special + n_ctx   # 80

    key = jax.random.PRNGKey(0)
    k_ids, k_emb, k_blocks = jax.random.split(key, 3)

    input_ids = jax.random.randint(k_ids, (B, S), 0, vocab_size,
                                   dtype=jnp.int32)
    embed_table = (jax.random.normal(k_emb, (total_embeddings, D),
                                     jnp.float32) * 0.02)
    stacked_params = init_stacked_params(k_blocks, n_layer, D)

    hidden = openai_gpt_forward(input_ids, embed_table, stacked_params,
                                vocab_size=vocab_size, n_special=n_special,
                                n_head=n_head)
    hidden = jax.block_until_ready(hidden)
    assert hidden.shape == (B, S, D)
    assert bool(jnp.all(jnp.isfinite(hidden)))
    print("KERNEL_OK")
</pallas_src>

<mosaic_0001>
module attributes {stable_mosaic.version = 11 : i64} {
  func.func @gpt_stack_kernel(%arg0: i32, %arg1: memref<2x16x128xf32, #tpu.memory_space<vmem>>, %arg2: memref<16x16xf32, #tpu.memory_space<vmem>>, %arg3: memref<1x128x384xbf16, #tpu.memory_space<vmem>>, %arg4: memref<1x1x384xf32, #tpu.memory_space<vmem>>, %arg5: memref<1x128x128xbf16, #tpu.memory_space<vmem>>, %arg6: memref<1x128x512xbf16, #tpu.memory_space<vmem>>, %arg7: memref<1x1x512xf32, #tpu.memory_space<vmem>>, %arg8: memref<1x512x128xbf16, #tpu.memory_space<vmem>>, %arg9: memref<1x6x128xf32, #tpu.memory_space<vmem>>, %arg10: memref<2x16x128xf32, #tpu.memory_space<vmem>>) attributes {dimension_semantics = [#tpu.dimension_semantics<arbitrary>], iteration_bounds = array<i64: 2>, scalar_prefetch = 0 : i64, scratch_operands = 0 : i64, tpu.core_type = #tpu.core_type<tc>, window_params = [{pipeline_mode = #tpu.pipeline_mode<synchronous>, transform_indices = @transform_0, window_bounds = array<i64: 2, 16, 128>}, {pipeline_mode = #tpu.pipeline_mode<synchronous>, transform_indices = @transform_1, window_bounds = array<i64: 16, 16>}, {transform_indices = @transform_2, window_bounds = array<i64: 1, 128, 384>}, {transform_indices = @transform_3, window_bounds = array<i64: 1, 1, 384>}, {transform_indices = @transform_4, window_bounds = array<i64: 1, 128, 128>}, {transform_indices = @transform_5, window_bounds = array<i64: 1, 128, 512>}, {transform_indices = @transform_6, window_bounds = array<i64: 1, 1, 512>}, {transform_indices = @transform_7, window_bounds = array<i64: 1, 512, 128>}, {transform_indices = @transform_8, window_bounds = array<i64: 1, 6, 128>}, {pipeline_mode = #tpu.pipeline_mode<synchronous>, transform_indices = @transform_9, window_bounds = array<i64: 2, 16, 128>}]} {
    %c0_i32 = arith.constant 0 : i32
    %0 = arith.cmpi eq, %arg0, %c0_i32 : i32
    %1 = arith.extui %0 : i1 to i32
    %c0_i32_0 = arith.constant 0 : i32
    %2 = arith.cmpi ne, %1, %c0_i32_0 : i32
    scf.if %2 {
      %c0_51 = arith.constant 0 : index
      %c0_52 = arith.constant 0 : index
      %c0_53 = arith.constant 0 : index
      %139 = vector.load %arg1[%c0_51, %c0_52, %c0_53] : memref<2x16x128xf32, #tpu.memory_space<vmem>>, vector<2x16x128xf32>
      %c0_54 = arith.constant 0 : index
      %c0_55 = arith.constant 0 : index
      %c0_56 = arith.constant 0 : index
      %140 = vector.load %arg10[%c0_54, %c0_55, %c0_56] : memref<2x16x128xf32, #tpu.memory_space<vmem>>, vector<2x16x128xf32>
      tpu.vector_store %arg10[%c0_54, %c0_55, %c0_56], %139 {strides = array<i32>} : memref<2x16x128xf32, #tpu.memory_space<vmem>>, vector<2x16x128xf32>,
    } else {
    }
    %c0 = arith.constant 0 : index
    %c0_1 = arith.constant 0 : index
    %c0_2 = arith.constant 0 : index
    %3 = vector.load %arg10[%c0, %c0_1, %c0_2] : memref<2x16x128xf32, #tpu.memory_space<vmem>>, vector<2x16x128xf32>
    %4 = vector.shape_cast %3 : vector<2x16x128xf32> to vector<32x128xf32>
    %c0_3 = arith.constant 0 : index
    %c0_4 = arith.constant 0 : index
    %c0_5 = arith.constant 0 : index
    %5 = vector.load %arg9[%c0_3, %c0_4, %c0_5] : memref<1x6x128xf32, #tpu.memory_space<vmem>>, vector<1x6x128xf32>
    %6 = vector.shape_cast %5 : vector<1x6x128xf32> to vector<6x128xf32>
    %7 = vector.extract_strided_slice %6 {offsets = [0, 0], sizes = [1, 128], strides = [1, 1]} : vector<6x128xf32> to vector<1x128xf32>
    %8 = vector.extract_strided_slice %6 {offsets = [1, 0], sizes = [1, 128], strides = [1, 1]} : vector<6x128xf32> to vector<1x128xf32>
    %9 = vector.extract_strided_slice %6 {offsets = [2, 0], sizes = [1, 128], strides = [1, 1]} : vector<6x128xf32> to vector<1x128xf32>
    %10 = vector.extract_strided_slice %6 {offsets = [3, 0], sizes = [1, 128], strides = [1, 1]} : vector<6x128xf32> to vector<1x128xf32>
    %11 = vector.extract_strided_slice %6 {offsets = [4, 0], sizes = [1, 128], strides = [1, 1]} : vector<6x128xf32> to vector<1x128xf32>
    %12 = vector.extract_strided_slice %6 {offsets = [5, 0], sizes = [1, 128], strides = [1, 1]} : vector<6x128xf32> to vector<1x128xf32>
    %c0_6 = arith.constant 0 : index
    %c0_7 = arith.constant 0 : index
    %c0_8 = arith.constant 0 : index
    %13 = vector.load %arg4[%c0_6, %c0_7, %c0_8] : memref<1x1x384xf32, #tpu.memory_space<vmem>>, vector<1x1x384xf32>
    %14 = vector.shape_cast %13 : vector<1x1x384xf32> to vector<1x384xf32>
    %15 = arith.truncf %4 : vector<32x128xf32> to vector<32x128xbf16>
    %c0_9 = arith.constant 0 : index
    %c0_10 = arith.constant 0 : index
    %c0_11 = arith.constant 0 : index
    %16 = vector.load %arg3[%c0_9, %c0_10, %c0_11] : memref<1x128x384xbf16, #tpu.memory_space<vmem>>, vector<1x128x384xbf16>
    %17 = vector.shape_cast %16 : vector<1x128x384xbf16> to vector<128x384xbf16>
    %cst = arith.constant dense<0.000000e+00> : vector<32x384xf32>
    %18 = tpu.matmul %15, %17, %cst {dimension_numbers = #tpu.dot_dimension_numbers<[1], [0], [0], [1], [0, 0, 1, 1], [], []>} : vector<32x128xbf16>, vector<128x384xbf16>, vector<32x384xf32> -> vector<32x384xf32>
    %19 = vector.broadcast %14 : vector<1x384xf32> to vector<32x384xf32>
    %20 = arith.addf %18, %19 : vector<32x384xf32>
    %21 = vector.extract_strided_slice %20 {offsets = [0, 0], sizes = [32, 128], strides = [1, 1]} : vector<32x384xf32> to vector<32x128xf32>
    %cst_12 = arith.constant 0.176776692 : f32
    %22 = vector.broadcast %cst_12 : f32 to vector<32x128xf32>
    %23 = arith.mulf %21, %22 : vector<32x128xf32>
    %24 = vector.extract_strided_slice %20 {offsets = [0, 128], sizes = [32, 128], strides = [1, 1]} : vector<32x384xf32> to vector<32x128xf32>
    %25 = vector.extract_strided_slice %20 {offsets = [0, 256], sizes = [32, 128], strides = [1, 1]} : vector<32x384xf32> to vector<32x128xf32>
    %26 = vector.shape_cast %23 : vector<32x128xf32> to vector<2x16x4x32xf32>
    %27 = tpu.transpose %26, [0, 2, 1, 3] : vector<2x16x4x32xf32> -> vector<2x4x16x32xf32>
    %28 = vector.shape_cast %27 : vector<2x4x16x32xf32> to vector<8x16x32xf32>
    %29 = arith.truncf %28 : vector<8x16x32xf32> to vector<8x16x32xbf16>
    %30 = vector.shape_cast %24 : vector<32x128xf32> to vector<2x16x4x32xf32>
    %31 = tpu.transpose %30, [0, 2, 1, 3] : vector<2x16x4x32xf32> -> vector<2x4x16x32xf32>
    %32 = vector.shape_cast %31 : vector<2x4x16x32xf32> to vector<8x16x32xf32>
    %33 = arith.truncf %32 : vector<8x16x32xf32> to vector<8x16x32xbf16>
    %34 = vector.shape_cast %25 : vector<32x128xf32> to vector<2x16x4x32xf32>
    %35 = tpu.transpose %34, [0, 2, 1, 3] : vector<2x16x4x32xf32> -> vector<2x4x16x32xf32>
    %36 = vector.shape_cast %35 : vector<2x4x16x32xf32> to vector<8x16x32xf32>
    %37 = arith.truncf %36 : vector<8x16x32xf32> to vector<8x16x32xbf16>
    "tpu.trace_start"() <{level = 10 : i32, message = "nqd,nkd->nqk"}> : () -> ()
    %cst_13 = arith.constant dense<0.000000e+00> : vector<8x16x16xf32>
    %38 = tpu.matmul %29, %33, %cst_13 {dimension_numbers = #tpu.dot_dimension_numbers<[2], [2], [1], [1], [0, 0, 0, 1, 1, 1], [0], [0]>} : vector<8x16x32xbf16>, vector<8x16x32xbf16>, vector<8x16x16xf32> -> vector<8x16x16xf32>
    "tpu.trace_stop"() : () -> ()
    %c0_14 = arith.constant 0 : index
    %c0_15 = arith.constant 0 : index
    %39 = vector.load %arg2[%c0_14, %c0_15] : memref<16x16xf32, #tpu.memory_space<vmem>>, vector<16x16xf32>
    %40 = vector.shape_cast %39 : vector<16x16xf32> to vector<1x16x16xf32>
    %41 = vector.broadcast %40 : vector<1x16x16xf32> to vector<8x16x16xf32>
    %42 = arith.addf %38, %41 : vector<8x16x16xf32>
    %cst_16 = arith.constant dense<0xFF800000> : vector<8x16xf32>
    %43 = vector.multi_reduction <maximumf>, %42, %cst_16 [2] : vector<8x16x16xf32> to vector<8x16xf32>
    %44 = vector.shape_cast %43 : vector<8x16xf32> to vector<8x16x1xf32>
    %45 = vector.broadcast %44 : vector<8x16x1xf32> to vector<8x16x16xf32>
    %46 = arith.subf %42, %45 : vector<8x16x16xf32>
    %47 = math.exp %46 : vector<8x16x16xf32>
    %cst_17 = arith.constant dense<0.000000e+00> : vector<8x16xf32>
    %48 = vector.multi_reduction <add>, %47, %cst_17 [2] : vector<8x16x16xf32> to vector<8x16xf32>
    %49 = vector.shape_cast %48 : vector<8x16xf32> to vector<8x16x1xf32>
    %50 = arith.truncf %47 : vector<8x16x16xf32> to vector<8x16x16xbf16>
    "tpu.trace_start"() <{level = 10 : i32, message = "nqk,nkd->nqd"}> : () -> ()
    %cst_18 = arith.constant dense<0.000000e+00> : vector<8x16x32xf32>
    %51 = tpu.matmul %50, %37, %cst_18 {dimension_numbers = #tpu.dot_dimension_numbers<[2], [1], [1], [2], [0, 0, 0, 1, 1, 2], [0], [0]>} : vector<8x16x16xbf16>, vector<8x16x32xbf16>, vector<8x16x32xf32> -> vector<8x16x32xf32>
    "tpu.trace_stop"() : () -> ()
    %52 = tpu.reciprocal %49 {approx = true} : vector<8x16x1xf32> -> vector<8x16x1xf32>
    %53 = vector.broadcast %52 : vector<8x16x1xf32> to vector<8x16x32xf32>
    %54 = arith.mulf %51, %53 : vector<8x16x32xf32>
    %55 = vector.shape_cast %54 : vector<8x16x32xf32> to vector<2x4x16x32xf32>
    %56 = tpu.transpose %55, [0, 2, 1, 3] : vector<2x4x16x32xf32> -> vector<2x16x4x32xf32>
    %57 = vector.shape_cast %56 : vector<2x16x4x32xf32> to vector<32x128xf32>
    %58 = arith.truncf %57 : vector<32x128xf32> to vector<32x128xbf16>
    %c0_19 = arith.constant 0 : index
    %c0_20 = arith.constant 0 : index
    %c0_21 = arith.constant 0 : index
    %59 = vector.load %arg5[%c0_19, %c0_20, %c0_21] : memref<1x128x128xbf16, #tpu.memory_space<vmem>>, vector<1x128x128xbf16>
    %60 = vector.shape_cast %59 : vector<1x128x128xbf16> to vector<128x128xbf16>
    %cst_22 = arith.constant dense<0.000000e+00> : vector<32x128xf32>
    %61 = tpu.matmul %58, %60, %cst_22 {dimension_numbers = #tpu.dot_dimension_numbers<[1], [0], [0], [1], [0, 0, 1, 1], [], []>} : vector<32x128xbf16>, vector<128x128xbf16>, vector<32x128xf32> -> vector<32x128xf32>
    %62 = vector.broadcast %7 : vector<1x128xf32> to vector<32x128xf32>
    %63 = arith.addf %61, %62 : vector<32x128xf32>
    %64 = arith.addf %4, %63 : vector<32x128xf32>
    %cst_23 = arith.constant dense<0.000000e+00> : vector<32xf32>
    %65 = vector.multi_reduction <add>, %64, %cst_23 [1] : vector<32x128xf32> to vector<32xf32>
    %66 = vector.shape_cast %65 : vector<32xf32> to vector<32x1xf32>
    %cst_24 = arith.constant 1.280000e+02 : f32
    %67 = vector.broadcast %cst_24 : f32 to vector<32x1xf32>
    %68 = arith.divf %66, %67 : vector<32x1xf32>
    %69 = vector.broadcast %68 : vector<32x1xf32> to vector<32x128xf32>
    %70 = arith.subf %64, %69 : vector<32x128xf32>
    %71 = arith.mulf %70, %70 : vector<32x128xf32>
    %cst_25 = arith.constant dense<0.000000e+00> : vector<32xf32>
    %72 = vector.multi_reduction <add>, %71, %cst_25 [1] : vector<32x128xf32> to vector<32xf32>
    %73 = vector.shape_cast %72 : vector<32xf32> to vector<32x1xf32>
    %cst_26 = arith.constant 1.280000e+02 : f32
    %74 = vector.broadcast %cst_26 : f32 to vector<32x1xf32>
    %75 = arith.divf %73, %74 : vector<32x1xf32>
    %76 = vector.broadcast %68 : vector<32x1xf32> to vector<32x128xf32>
    %77 = arith.subf %64, %76 : vector<32x128xf32>
    %cst_27 = arith.constant 9.99999974E-6 : f32
    %78 = vector.broadcast %cst_27 : f32 to vector<32x1xf32>
    %79 = arith.addf %75, %78 : vector<32x1xf32>
    %80 = math.rsqrt %79 : vector<32x1xf32>
    %81 = vector.broadcast %80 : vector<32x1xf32> to vector<32x128xf32>
    %82 = arith.mulf %77, %81 : vector<32x128xf32>
    %83 = vector.broadcast %8 : vector<1x128xf32> to vector<32x128xf32>
    %84 = arith.mulf %82, %83 : vector<32x128xf32>
    %85 = vector.broadcast %9 : vector<1x128xf32> to vector<32x128xf32>
    %86 = arith.addf %84, %85 : vector<32x128xf32>
    %c0_28 = arith.constant 0 : index
    %c0_29 = arith.constant 0 : index
    %c0_30 = arith.constant 0 : index
    %87 = vector.load %arg7[%c0_28, %c0_29, %c0_30] : memref<1x1x512xf32, #tpu.memory_space<vmem>>, vector<1x1x512xf32>
    %88 = vector.shape_cast %87 : vector<1x1x512xf32> to vector<1x512xf32>
    %89 = arith.truncf %86 : vector<32x128xf32> to vector<32x128xbf16>
    %c0_31 = arith.constant 0 : index
    %c0_32 = arith.constant 0 : index
    %c0_33 = arith.constant 0 : index
    %90 = vector.load %arg6[%c0_31, %c0_32, %c0_33] : memref<1x128x512xbf16, #tpu.memory_space<vmem>>, vector<1x128x512xbf16>
    %91 = vector.shape_cast %90 : vector<1x128x512xbf16> to vector<128x512xbf16>
    %cst_34 = arith.constant dense<0.000000e+00> : vector<32x512xf32>
    %92 = tpu.matmul %89, %91, %cst_34 {dimension_numbers = #tpu.dot_dimension_numbers<[1], [0], [0], [1], [0, 0, 1, 1], [], []>} : vector<32x128xbf16>, vector<128x512xbf16>, vector<32x512xf32> -> vector<32x512xf32>
    %93 = vector.broadcast %88 : vector<1x512xf32> to vector<32x512xf32>
    %94 = arith.addf %92, %93 : vector<32x512xf32>
    %cst_35 = arith.constant 5.000000e-01 : f32
    %95 = vector.broadcast %cst_35 : f32 to vector<32x512xf32>
    %96 = arith.mulf %95, %94 : vector<32x512xf32>
    %cst_36 = arith.constant 4.471500e-02 : f32
    %97 = vector.broadcast %cst_36 : f32 to vector<32x512xf32>
    %98 = arith.mulf %97, %94 : vector<32x512xf32>
    %99 = arith.mulf %98, %94 : vector<32x512xf32>
    %100 = arith.mulf %99, %94 : vector<32x512xf32>
    %101 = arith.addf %94, %100 : vector<32x512xf32>
    %cst_37 = arith.constant 0.797884583 : f32
    %102 = vector.broadcast %cst_37 : f32 to vector<32x512xf32>
    %103 = arith.mulf %102, %101 : vector<32x512xf32>
    %104 = math.tanh %103 : vector<32x512xf32>
    %cst_38 = arith.constant 1.000000e+00 : f32
    %105 = vector.broadcast %cst_38 : f32 to vector<32x512xf32>
    %106 = arith.addf %105, %104 : vector<32x512xf32>
    %107 = arith.mulf %96, %106 : vector<32x512xf32>
    %108 = arith.truncf %107 : vector<32x512xf32> to vector<32x512xbf16>
    %c0_39 = arith.constant 0 : index
    %c0_40 = arith.constant 0 : index
    %c0_41 = arith.constant 0 : index
    %109 = vector.load %arg8[%c0_39, %c0_40, %c0_41] : memref<1x512x128xbf16, #tpu.memory_space<vmem>>, vector<1x512x128xbf16>
    %110 = vector.shape_cast %109 : vector<1x512x128xbf16> to vector<512x128xbf16>
    %cst_42 = arith.constant dense<0.000000e+00> : vector<32x128xf32>
    %111 = tpu.matmul %108, %110, %cst_42 {dimension_numbers = #tpu.dot_dimension_numbers<[1], [0], [0], [1], [0, 0, 1, 1], [], []>} : vector<32x512xbf16>, vector<512x128xbf16>, vector<32x128xf32> -> vector<32x128xf32>
    %112 = vector.broadcast %10 : vector<1x128xf32> to vector<32x128xf32>
    %113 = arith.addf %111, %112 : vector<32x128xf32>
    %114 = arith.addf %86, %113 : vector<32x128xf32>
    %cst_43 = arith.constant dense<0.000000e+00> : vector<32xf32>
    %115 = vector.multi_reduction <add>, %114, %cst_43 [1] : vector<32x128xf32> to vector<32xf32>
    %116 = vector.shape_cast %115 : vector<32xf32> to vector<32x1xf32>
    %cst_44 = arith.constant 1.280000e+02 : f32
    %117 = vector.broadcast %cst_44 : f32 to vector<32x1xf32>
    %118 = arith.divf %116, %117 : vector<32x1xf32>
    %119 = vector.broadcast %118 : vector<32x1xf32> to vector<32x128xf32>
    %120 = arith.subf %114, %119 : vector<32x128xf32>
    %121 = arith.mulf %120, %120 : vector<32x128xf32>
    %cst_45 = arith.constant dense<0.000000e+00> : vector<32xf32>
    %122 = vector.multi_reduction <add>, %121, %cst_45 [1] : vector<32x128xf32> to vector<32xf32>
    %123 = vector.shape_cast %122 : vector<32xf32> to vector<32x1xf32>
    %cst_46 = arith.constant 1.280000e+02 : f32
    %124 = vector.broadcast %cst_46 : f32 to vector<32x1xf32>
    %125 = arith.divf %123, %124 : vector<32x1xf32>
    %126 = vector.broadcast %118 : vector<32x1xf32> to vector<32x128xf32>
    %127 = arith.subf %114, %126 : vector<32x128xf32>
    %cst_47 = arith.constant 9.99999974E-6 : f32
    %128 = vector.broadcast %cst_47 : f32 to vector<32x1xf32>
    %129 = arith.addf %125, %128 : vector<32x1xf32>
    %130 = math.rsqrt %129 : vector<32x1xf32>
    %131 = vector.broadcast %130 : vector<32x1xf32> to vector<32x128xf32>
    %132 = arith.mulf %127, %131 : vector<32x128xf32>
    %133 = vector.broadcast %11 : vector<1x128xf32> to vector<32x128xf32>
    %134 = arith.mulf %132, %133 : vector<32x128xf32>
    %135 = vector.broadcast %12 : vector<1x128xf32> to vector<32x128xf32>
    %136 = arith.addf %134, %135 : vector<32x128xf32>
    %137 = vector.shape_cast %136 : vector<32x128xf32> to vector<2x16x128xf32>
    %c0_48 = arith.constant 0 : index
    %c0_49 = arith.constant 0 : index
    %c0_50 = arith.constant 0 : index
    %138 = vector.load %arg10[%c0_48, %c0_49, %c0_50] : memref<2x16x128xf32, #tpu.memory_space<vmem>>, vector<2x16x128xf32>
    tpu.vector_store %arg10[%c0_48, %c0_49, %c0_50], %137 {strides = array<i32>} : memref<2x16x128xf32, #tpu.memory_space<vmem>>, vector<2x16x128xf32>,
    return
  }
  func.func @transform_0(%arg0: i32) -> (i32, i32, i32) {
    %c0_i32 = arith.constant 0 : i32
    %c0_i32_0 = arith.constant 0 : i32
    %c0_i32_1 = arith.constant 0 : i32
    %c0_i32_2 = arith.constant 0 : i32
    return %c0_i32, %c0_i32_0, %c0_i32_1 : i32, i32, i32
  }
  func.func @transform_1(%arg0: i32) -> (i32, i32) {
    %c0_i32 = arith.constant 0 : i32
    %c0_i32_0 = arith.constant 0 : i32
    %c0_i32_1 = arith.constant 0 : i32
    return %c0_i32, %c0_i32_0 : i32, i32
  }
  func.func @transform_2(%arg0: i32) -> (i32, i32, i32) {
    %c0_i32 = arith.constant 0 : i32
    %c0_i32_0 = arith.constant 0 : i32
    %c0_i32_1 = arith.constant 0 : i32
    return %arg0, %c0_i32, %c0_i32_0 : i32, i32, i32
  }
  func.func @transform_3(%arg0: i32) -> (i32, i32, i32) {
    %c0_i32 = arith.constant 0 : i32
    %c0_i32_0 = arith.constant 0 : i32
    %c0_i32_1 = arith.constant 0 : i32
    return %arg0, %c0_i32, %c0_i32_0 : i32, i32, i32
  }
  func.func @transform_4(%arg0: i32) -> (i32, i32, i32) {
    %c0_i32 = arith.constant 0 : i32
    %c0_i32_0 = arith.constant 0 : i32
    %c0_i32_1 = arith.constant 0 : i32
    return %arg0, %c0_i32, %c0_i32_0 : i32, i32, i32
  }
  func.func @transform_5(%arg0: i32) -> (i32, i32, i32) {
    %c0_i32 = arith.constant 0 : i32
    %c0_i32_0 = arith.constant 0 : i32
    %c0_i32_1 = arith.constant 0 : i32
    return %arg0, %c0_i32, %c0_i32_0 : i32, i32, i32
  }
  func.func @transform_6(%arg0: i32) -> (i32, i32, i32) {
    %c0_i32 = arith.constant 0 : i32
    %c0_i32_0 = arith.constant 0 : i32
    %c0_i32_1 = arith.constant 0 : i32
    return %arg0, %c0_i32, %c0_i32_0 : i32, i32, i32
  }
  func.func @transform_7(%arg0: i32) -> (i32, i32, i32) {
    %c0_i32 = arith.constant 0 : i32
    %c0_i32_0 = arith.constant 0 : i32
    %c0_i32_1 = arith.constant 0 : i32
    return %arg0, %c0_i32, %c0_i32_0 : i32, i32, i32
  }
  func.func @transform_8(%arg0: i32) -> (i32, i32, i32) {
    %c0_i32 = arith.constant 0 : i32
    %c0_i32_0 = arith.constant 0 : i32
    %c0_i32_1 = arith.constant 0 : i32
    return %arg0, %c0_i32, %c0_i32_0 : i32, i32, i32
  }
  func.func @transform_9(%arg0: i32) -> (i32, i32, i32) {
    %c0_i32 = arith.constant 0 : i32
    %c0_i32_0 = arith.constant 0 : i32
    %c0_i32_1 = arith.constant 0 : i32
    %c0_i32_2 = arith.constant 0 : i32
    return %c0_i32, %c0_i32_0, %c0_i32_1 : i32, i32, i32
  }
}

</mosaic_0001>

<bundles_post_ra>
// kernel: tpu_custom_call.1
= control target key start
LH: loop header
LB: loop body
LE: loop exit
PB: predicated region body
PF: predicated region fallthrough
CT: control target
= control target key end

     0   :  { %s7972_s0 = inlined_call_operand.hbm [shape: f32[2,16,128], index: 0, kind: input, shape index: {}]   ;;  %s7973_s1 = inlined_call_operand.vmem [shape: f32[16,16], index: 1, kind: input, shape index: {}]   ;;  %s7974_s2 = inlined_call_operand.hbm [shape: bf16[2,128,384], index: 2, kind: input, shape index: {}]   ;;  %s7975_s3 = inlined_call_operand.vmem [shape: f32[2,1,384], index: 3, kind: input, shape index: {}]   ;;  %s7976_s4 = inlined_call_operand.hbm [shape: bf16[2,128,128], index: 4, kind: input, shape index: {}]   ;;  %s7977_s5 = inlined_call_operand.hbm [shape: bf16[2,128,512], index: 5, kind: input, shape index: {}]   ;;  %s7978_s6 = inlined_call_operand.vmem [shape: f32[2,1,512], index: 6, kind: input, shape index: {}]   ;;  %s7979_s7 = inlined_call_operand.hbm [shape: bf16[2,512,128], index: 7, kind: input, shape index: {}]   ;;  %s7980_s8 = inlined_call_operand.vmem [shape: f32[2,6,128], index: 8, kind: input, shape index: {}]   ;;  %s7981_s9 = inlined_call_operand.hbm [shape: f32[2,16,128], index: 9, kind: output, shape index: {}]  }
   0x1   :  { %7997 = sst [smem:[#allocation19_spill]] %s7973_s1 }
   0x2   :  { %7998 = sst [smem:[#allocation20_spill]] %s7974_s2 }
   0x3   :  { %7999 = sst [smem:[#allocation21_spill]] %s7977_s5 }
   0x4   :  { %8000 = sst [smem:[#allocation22_spill]] %s7981_s9 }
   0x5   :  { %14 = vsyncpa [#allocation3], 0 }
   0x6   :  { %15 = vsyncpa [#allocation6], 0 }
   0x7   :  { %17 = vsyncpa [#allocation6 + $0x1], 0 }
   0x8   :  { %18 = vsyncpa [#allocation9], 0 }
   0x9   :  { %20 = vsyncpa [#allocation9 + $0x1], 0 }
   0xa   :  { %21 = vsyncpa [#allocation4], 0  ;;  %s6447_s30 = smov 0   ;;  %s6449_s10 = smov 0  }
   0xb   :  { %s6451_s11 = smov 0   ;;  %s6453_s12 = smov 0  }
   0xc LB: > { %8001 = sst [smem:[#allocation16_spill]] %s6367_s11  ;;  %s6468_s13 = sadd.s32 1, %s6371_s12   ;;  %s6371_s12 = sphi %s6453_s12, %s8024_s12   ;;  %s6367_s11 = sphi %s6451_s11, %s8026_s11   ;;  %s6363_s10 = sphi %s6449_s10, %s8028_s10   ;;  %s6359_s30 = sphi %s6447_s30, %s8027_s30  }
   0xd   : > { %8002 = sst [smem:[#allocation17_spill]] %s6468_s13  ;;  %s76_s14 = sadd.s32 1, %s6367_s11 }
   0xe   : > { %s73_s15 = ssub.s32 %s6371_s12, %s6468_s13  ;;  %p83_p0 = scmp.ne.s32.totalorder %s6367_s11, %s6363_s10 }
   0xf   : > { %p74_p1 = scmp.eq.s32.totalorder %s73_s15, 0  ;;  %p84_p2 = scmp.eq.s32.totalorder %s6371_s12, 0 }
  0x10   : > { %p5829_p3 = scmp.lt.s32.totalorder %s6371_s12, 2  ;;  %s7982_s17 = sand.u32 1, %s6371_s12  }
  0x11   : > { %s6478_s16 = scalar_select %p74_p1, %s6367_s11, %s76_s14  }
  0x12   : > { %p85_p4 = por %p84_p2, %p83_p0  ;;  %s6482_s18 = sand.u32 1, %s6367_s11  }
  0x13   : > { %8003 = sst [smem:[#allocation18_spill]] %s6478_s16  ;;  %s5791_s19 = smul.u32 192, %s6482_s18 }
  0x14   : > { %p6485_p5 = pnand %p5829_p3, %p85_p4  ;;  %s5792_s21 = smul.u32 3072, %s6371_s12 }
  0x15   : > { %s8005_s2 = sld [smem:[#allocation20_spill]]  ;;  %s310_s25 = scalar_lea.vmem [#allocation5], %s5791_s19 }
  0x16   : > { %s8004_s20 = scalar_select %p6485_p5, 1, 0 }
  0x17   : > { %s317_s26 = sshll.u32 %s310_s25, 4  ;;  %s6499_s27 = scalar_lea.sflag [#allocation6], %s7982_s17  ;;  %s6495_s26 = int_to_ptr.vmem [resolvable:$true] %s317_s26 }
  0x18   : > { %p6505_p7 = pneg %p6485_p5 }
  0x1a   : > { %s8006_s29 = scalar_select %p6505_p7, 1, 0 }
  0x1b   : > { %s6493_s24 = scalar_lea.hbm %s8005_s2, %s5792_s21  ;;  %s6156_s19 = scalar_lea.hbm %s8005_s2, 6144 }
  0x1c   : > { %s6151_s28 = scalar_lea.hbm %s6493_s24, 3072  ;;  %p6157_p10 = scmp.lt.u32.totalorder %s6493_s24, %s8005_s2 }
  0x1d   : > { %p6152_p6 = scmp.ne.s32.totalorder %s6493_s24, %s6151_s28  ;;  %p6158_p11 = scmp.lt.u32.totalorder %s6156_s19, %s6151_s28 }
  0x1e   : > { %p6160_p13 = scmp.lt.u32.totalorder %s6151_s28, %s6493_s24 }
  0x1f   : > { %p6154_p8 = pnand %p6505_p7, %p6152_p6  ;;  %p6159_p12 = por %p6158_p11, %p6157_p10 }
  0x21   : > { %p6155_p9 = pneg %p6154_p8  ;;  %p6161_p0 = por %p6160_p13, %p6159_p12 }
  0x23   : > { %p6162_p1 = pnand %p6161_p0, %p6155_p9 }
  0x25   : > { %6165 = shalt.err (!%p6162_p1)
}
  0x26   : > { %s6166_s23 = scalar_lea.vmem %s6495_s26, 3072  ;;  %s6373_s25 = smov [#allocation5]  }
  0x27   : > { %p6167_p2 = scmp.ne.s32.totalorder %s6495_s26, %s6166_s23  ;;  %s6171_s14 = sshll.u32 %s6373_s25, 4  ;;  %s6172_s14 = int_to_ptr.vmem [resolvable:$false] %s6171_s14 }
  0x28   : > { %s6173_s15 = scalar_lea.vmem %s6172_s14, 6144  ;;  %p6174_p6 = scmp.lt.s32.totalorder %s6495_s26, %s6172_s14 }
  0x29   : > { %p6169_p3 = pnand %p6167_p2, %p6505_p7  ;;  %p6175_p8 = scmp.lt.s32.totalorder %s6173_s15, %s6166_s23 }
  0x2b   : > { %p6170_p4 = pneg %p6169_p3  ;;  %p6176_p10 = por %p6175_p8, %p6174_p6 }
  0x2d   : > { %p6177_p11 = pnand %p6176_p10, %p6170_p4 }
  0x2f   : > { %6180 = shalt.err (!%p6177_p11)
}
  0x30   : > { %s6374_s28 = smov 192   ;;  %s6375_s19 = smov 12  }
  0x31   : > { %5818 = dma.hbm_to_vmem [thread:$0]  (!%p6485_p5), %s6493_s24, 3072, %s6495_s26, %s6499_s27, %s6374_s28, %s6374_s28, %s6375_s19  }
  0x32   : > { %s5382_s21 = sshll.u32 %s6482_s18, 8  ;;  %s5545_s22 = sshll.u32 %s6371_s12, 12 }
  0x33   : > { %s8007_s5 = sld [smem:[#allocation21_spill]]  ;;  %s359_s15 = scalar_lea.vmem [#allocation8], %s5382_s21 }
  0x34   : > { %s366_s17 = sshll.u32 %s359_s15, 4  ;;  %s8008_s2 = sand.u32 1, %s6371_s12   ;;  %s6540_s17 = int_to_ptr.vmem [resolvable:$true] %s366_s17 }
  0x35   : > { %s6544_s16 = scalar_lea.sflag [#allocation9], %s8008_s2 }
  0x39   : > { %s6536_s14 = scalar_lea.hbm %s8007_s5, %s5545_s22  ;;  %s6186_s19 = scalar_lea.hbm %s8007_s5, 8192 }
  0x3a   : > { %s6181_s24 = scalar_lea.hbm %s6536_s14, 4096  ;;  %p6187_p0 = scmp.lt.u32.totalorder %s6536_s14, %s8007_s5 }
  0x3b   : > { %p6182_p9 = scmp.ne.s32.totalorder %s6536_s14, %s6181_s24  ;;  %p6188_p1 = scmp.lt.u32.totalorder %s6186_s19, %s6181_s24 }
  0x3c   : > { %p6190_p3 = scmp.lt.u32.totalorder %s6181_s24, %s6536_s14 }
  0x3d   : > { %p6184_p12 = pnand %p6182_p9, %p6505_p7  ;;  %p6189_p2 = por %p6188_p1, %p6187_p0 }
  0x3f   : > { %p6185_p13 = pneg %p6184_p12  ;;  %p6191_p4 = por %p6190_p3, %p6189_p2 }
  0x41   : > { %p6192_p6 = pnand %p6191_p4, %p6185_p13 }
  0x43   : > { %6195 = shalt.err (!%p6192_p6)
}
  0x44   : > { %s6196_s2 = scalar_lea.vmem %s6540_s17, 4096  ;;  %s6376_s15 = smov [#allocation8]  }
  0x45   : > { %p6197_p8 = scmp.ne.s32.totalorder %s6540_s17, %s6196_s2  ;;  %s6201_s26 = sshll.u32 %s6376_s15, 4  ;;  %s6202_s26 = int_to_ptr.vmem [resolvable:$false] %s6201_s26 }
  0x46   : > { %s6203_s28 = scalar_lea.vmem %s6202_s26, 8192  ;;  %p6204_p9 = scmp.lt.s32.totalorder %s6540_s17, %s6202_s26 }
  0x47   : > { %p6199_p10 = pnand %p6197_p8, %p6505_p7  ;;  %p6205_p12 = scmp.lt.s32.totalorder %s6203_s28, %s6196_s2 }
  0x49   : > { %p6200_p11 = pneg %p6199_p10  ;;  %p6206_p0 = por %p6205_p12, %p6204_p9 }
  0x4b   : > { %p6207_p1 = pnand %p6206_p0, %p6200_p11 }
  0x4d   : > { %6210 = shalt.err (!%p6207_p1)
}
  0x4e   : > { %s6377_s24 = smov 256   ;;  %s6378_s19 = smov 16  }
  0x4f   : > { %5824 = dma.hbm_to_vmem [thread:$0]  (!%p6485_p5), %s6536_s14, 4096, %s6540_s17, %s6544_s16, %s6377_s24, %s6377_s24, %s6378_s19  }
  0x50   : > { %s6573_s2 = scalar_lea.hbm %s7979_s7, %s5545_s22  ;;  %s387_s15 = scalar_lea.vmem [#allocation10], %s5382_s21 }
  0x51   : > { %s394_s26 = sshll.u32 %s387_s15, 4  ;;  %s6580_s28 = sadd.s32 4294967295, %s6371_s12   ;;  %s6577_s26 = int_to_ptr.vmem [resolvable:$true] %s394_s26 }
  0x52   : > { %p89_p13 = scmp.ne.s32.totalorder %s6363_s10, %s6359_s30  ;;  %p7988_p2 = scmp.eq.s32.totalorder %s6580_s28, 0 }
  0x53   : > { %p5375_p3 = scmp.ge.s32.totalorder %s6371_s12, 1  ;;  %p277_p4 = scmp.lt.s32.totalorder %s6371_s12, 3 }
  0x54   : > { %p6589_p6 = por %p7988_p2, %p89_p13  ;;  %s6379_s22 = smov [#allocation2]  }
  0x55   : > { %p6594_p10 = pnand %p5375_p3, %p277_p4  ;;  %s289_s14 = sshll.u32 %s6379_s22, 4  ;;  %s6600_s14 = int_to_ptr.vmem [resolvable:$true] %s289_s14 }
  0x56   : > { %s8009_s17 = scalar_select %p6589_p6, 1, 0 }
  0x57   : > { %s8010_s21 = scalar_select %p6594_p10, 1, 0 }
  0x58   : > { %p5811_p11 = pneg %p6594_p10  ;;  %s5379_s30 = sshll.u32 %s6482_s18, 6 }
  0x59   : > { %s5544_s19 = sshll.u32 %s6371_s12, 10  ;;  %s338_s23 = scalar_lea.vmem [#allocation7], %s5379_s30 }
  0x5a   : > { %p6605_p9 = pnand %p5811_p11, %p7988_p2  ;;  %s345_s25 = sshll.u32 %s338_s23, 4  ;;  %s6636_s25 = int_to_ptr.vmem [resolvable:$true] %s345_s25 }
  0x5b   : > { %s6613_s11 = scalar_lea.hbm %s7976_s4, %s5544_s19  ;;  %s6211_s9 = scalar_lea.hbm %s7972_s0, 512 }
  0x5c   : > { %p6212_p12 = scmp.ne.s32.totalorder %s7972_s0, %s6211_s9  ;;  %p6213_p0 = pneg %p6605_p9 }
  0x5d   : > { %p6218_p3 = scmp.lt.u32.totalorder %s6211_s9, %s7972_s0 }
  0x5e   : > { %p6214_p1 = pnand %p6213_p0, %p6212_p12 }
  0x60   : > { %p6215_p13 = pneg %p6214_p1 }
  0x62   : > { %p6220_p4 = pnand %p6218_p3, %p6215_p13 }
  0x64   : > { %6223 = shalt.err (!%p6220_p4)
}
  0x65   : > { %s6224_s5 = scalar_lea.vmem %s6600_s14, 512  ;;  %p6232_p6 = scmp.lt.s32.totalorder %s6600_s14, %s6600_s14 }
  0x66   : > { %p6225_p11 = scmp.ne.s32.totalorder %s6600_s14, %s6224_s5  ;;  %p6233_p10 = scmp.lt.s32.totalorder %s6224_s5, %s6224_s5 }
  0x68   : > { %p6227_p8 = pnand %p6225_p11, %p6213_p0  ;;  %p6234_p5 = por %p6233_p10, %p6232_p6 }
  0x6a   : > { %p6228_p2 = pneg %p6227_p8 }
  0x6c   : > { %p6235_p7 = pnand %p6234_p5, %p6228_p2 }
  0x6e   : > { %6238 = shalt.err (!%p6235_p7)
}
  0x6f   : > { %s6380_s1 = smov 128   ;;  %s6381_s9 = smov 8  }
  0x70   : > { %5814 = dma.hbm_to_vmem [thread:$0]  (!%p6605_p9), %s7972_s0, 512, %s6600_s14, [#allocation3], %s6380_s1, %s6380_s1, %s6381_s9  }
  0x71   : > { %s6239_s23 = scalar_lea.hbm %s6613_s11, 1024  ;;  %p8012_p5 = scmp.ne.s32.totalorder %s8006_s29, 0 }
  0x72   : > { %p6240_p6 = scmp.ne.s32.totalorder %s6613_s11, %s6239_s23  ;;  %s6244_s18 = scalar_lea.hbm %s7976_s4, 2048 }
  0x73   : > { %p6245_p8 = scmp.lt.u32.totalorder %s6613_s11, %s7976_s4  ;;  %p6246_p10 = scmp.lt.u32.totalorder %s6244_s18, %s6239_s23 }
  0x74   : > { %p6242_p7 = pnand %p6240_p6, %p8012_p5  ;;  %p6248_p0 = scmp.lt.u32.totalorder %s6239_s23, %s6613_s11 }
  0x75   : > { %p6247_p12 = por %p6246_p10, %p6245_p8 }
  0x76   : > { %p6243_p2 = pneg %p6242_p7 }
  0x77   : > { %p6249_p1 = por %p6248_p0, %p6247_p12 }
  0x79   : > { %p6250_p9 = pnand %p6249_p1, %p6243_p2 }
  0x7b   : > { %6253 = shalt.err (!%p6250_p9)
}
  0x7c   : > { %s6254_s14 = scalar_lea.vmem %s6636_s25, 1024  ;;  %s6382_s24 = smov [#allocation7]  }
  0x7d   : > { %p6255_p13 = scmp.ne.s32.totalorder %s6636_s25, %s6254_s14  ;;  %s6259_s5 = sshll.u32 %s6382_s24, 4  ;;  %s6260_s5 = int_to_ptr.vmem [resolvable:$false] %s6259_s5 }
  0x7e   : > { %s6261_s1 = scalar_lea.vmem %s6260_s5, 2048  ;;  %p6262_p11 = scmp.lt.s32.totalorder %s6636_s25, %s6260_s5 }
  0x7f   : > { %p6257_p3 = pnand %p6255_p13, %p8012_p5  ;;  %p6263_p6 = scmp.lt.s32.totalorder %s6261_s1, %s6254_s14 }
  0x81   : > { %p6258_p4 = pneg %p6257_p3  ;;  %p6264_p7 = por %p6263_p6, %p6262_p11 }
  0x83   : > { %p6265_p8 = pnand %p6264_p7, %p6258_p4 }
  0x85   : > { %6268 = shalt.err (!%p6265_p8)
}
  0x86   : > { %s6383_s9 = smov 64   ;;  %s6384_s13 = smov 4  }
  0x87   : > { %p8013_p2 = scmp.ne.s32.totalorder %s8004_s20, 0  ;;  %s6269_s19 = scalar_lea.hbm %s6573_s2, 4096 }
  0x88   : > { %p6270_p10 = scmp.ne.s32.totalorder %s6573_s2, %s6269_s19  ;;  %s6274_s22 = scalar_lea.hbm %s7979_s7, 8192 }
  0x89   : > { %5821 = dma.hbm_to_vmem [thread:$0]  (!%p8013_p2), %s6613_s11, 1024, %s6636_s25, %s6499_s27, %s6383_s9, %s6383_s9, %s6384_s13  }
  0x8a   : > { %p6272_p12 = pnand %p6270_p10, %p8012_p5  ;;  %p6275_p1 = scmp.lt.u32.totalorder %s6573_s2, %s7979_s7 }
  0x8b   : > { %p6276_p9 = scmp.lt.u32.totalorder %s6274_s22, %s6269_s19  ;;  %p6278_p3 = scmp.lt.u32.totalorder %s6269_s19, %s6573_s2 }
  0x8c   : > { %p6273_p0 = pneg %p6272_p12 }
  0x8d   : > { %p6277_p13 = por %p6276_p9, %p6275_p1 }
  0x8f   : > { %p6279_p4 = por %p6278_p3, %p6277_p13 }
  0x91   : > { %p6280_p11 = pnand %p6279_p4, %p6273_p0 }
  0x93   : > { %6283 = shalt.err (!%p6280_p11)
}
  0x94   : > { %s6284_s11 = scalar_lea.vmem %s6577_s26, 4096  ;;  %s6385_s27 = smov [#allocation10]  }
  0x95   : > { %p6285_p6 = scmp.ne.s32.totalorder %s6577_s26, %s6284_s11  ;;  %s6289_s25 = sshll.u32 %s6385_s27, 4  ;;  %s6290_s25 = int_to_ptr.vmem [resolvable:$false] %s6289_s25 }
  0x96   : > { %s6291_s30 = scalar_lea.vmem %s6290_s25, 8192  ;;  %p6292_p10 = scmp.lt.s32.totalorder %s6577_s26, %s6290_s25 }
  0x97   : > { %p6287_p7 = pnand %p6285_p6, %p8012_p5  ;;  %p6293_p12 = scmp.lt.s32.totalorder %s6291_s30, %s6284_s11 }
  0x99   : > { %p6288_p8 = pneg %p6287_p7  ;;  %p6294_p1 = por %p6293_p12, %p6292_p10 }
  0x9b   : > { %p6295_p9 = pnand %p6294_p1, %p6288_p8 }
  0x9d   : > { %6298 = shalt.err (!%p6295_p9)
}
  0x9e   : > { %5827 = dma.hbm_to_vmem [thread:$0]  (!%p8013_p2), %s6573_s2, 4096, %s6577_s26, %s6544_s16, %s6383_s9, %s6383_s9, %s6384_s13  }
  0x9f   : > { %p8014_p5 = scmp.ne.s32.totalorder %s8010_s21, 0 }
  0xa0   : > { %p8015_p0 = scmp.eq.s32.totalorder (!%p8014_p5), %s6580_s28, 0 }
  0xa1   : > { %413 = sbr.rel (%p8014_p5) target bundleno = 2783 (0xadf), region = 56 }
  0xa8   : > { %6342 = dma.done.wait (%p8015_p0), [#allocation3], 512   ;;  %p8016_p13 = pmov %p8015_p0 }
  0xa9   : > { %s419_s20 = sand.u32 1, %s6580_s28   ;;  %s421_s29 = sand.u32 1, %s6363_s10  }
  0xaa   : > { %6344 = vsyncadd (%p8016_p13), [#allocation3], 4294966784  ;;  %s5793_s14 = smul.u32 192, %s421_s29  ;;  %s420_s24 = scalar_lea.sflag [#allocation6], %s419_s20 }
  0xab   : > { %p8017_p3 = scmp.ne.s32.totalorder %s8009_s17, 0 }
  0xac   : > { %s6696_s5 = scalar_lea.vmem [#allocation5], %s5793_s14 }
  0xad   : > { %6346 = dma.done.wait (%p8017_p3), %s420_s24, 4096  }
  0xae   : > { %6348 = vsyncadd (%p8017_p3), %s420_s24, 4294963200  ;;  %s5390_s16 = sshll.u32 %s421_s29, 6  ;;  %s5391_s2 = sshll.u32 %s421_s29, 8 }
  0xaf   : > { %s6702_s26 = scalar_lea.vmem [#allocation7], %s5390_s16  ;;  %s438_s21 = scalar_lea.sflag [#allocation9], %s419_s20 }
  0xb0   : > { %s6704_s1 = scalar_lea.vmem [#allocation8], %s5391_s2 }
  0xb1   : > { %6350 = dma.done.wait (%p8017_p3), %s438_s21, 8192  }
  0xb2   : > { %6352 = vsyncadd (%p8017_p3), %s438_s21, 4294959104  ;;  %p507_p2 = scmp.lt.s32.totalorder %s6580_s28, 1  ;;  %s6727_s20 = scalar_lea.vmem [#allocation10], %s5391_s2 }
  0xb3   : > { %p8018_p4 = scmp.ne.s32.totalorder %s6580_s28, 0 }
  0xb4   : > { %s508_s9 = scalar_select %p507_p2, %s6580_s28, 1 }
  0xb5   : > { %523 = sbr.rel (%p8018_p4) target bundleno = 188 (0xbc), region = 80  ;;  %v524_v0 = vld [vmem:[#allocation2] sm:$0xff] (!%p8018_p4)  ;;  %v525_v1 = vld [vmem:[#allocation2 + $0x8] sm:$0xff] (!%p8018_p4)  ;;  %v526_v2 = vld [vmem:[#allocation2 + $0x10] sm:$0xff] (!%p8018_p4) }
  0xb6   : > { %s5794_s13 = smul.u32 3, %s508_s9  ;;  %s5393_s19 = sshll.u32 %s508_s9, 2  ;;  %528 = vst [vmem:[#allocation11] sm:$0xff] (!%p8018_p4), %v524_v0  ;;  %529 = vst [vmem:[#allocation11 + $0x8] sm:$0xff] (!%p8018_p4), %v525_v1  ;;  %v527_v3 = vld [vmem:[#allocation2 + $0x18] sm:$0xff] (!%p8018_p4) }
  0xb7   : > { %s6715_s22 = scalar_lea.vmem %s7978_s6, %s5393_s19  ;;  %s5394_s18 = sshll.u32 %s508_s9, 3  ;;  %530 = vst [vmem:[#allocation11 + $0x10] sm:$0xff] (!%p8018_p4), %v526_v2  ;;  %531 = vst [vmem:[#allocation11 + $0x18] sm:$0xff] (!%p8018_p4), %v527_v3 }
  0xb8   : > { %s6720_s27 = scalar_lea.vmem %s7975_s3, %s5794_s13  ;;  %s6725_s30 = scalar_lea.vmem %s7980_s8, %s5394_s18 }
  0xbc PF: > { %v5915_v4 = vld [vmem:[%s6696_s5 + $0x4] ss:$12 sps:$4 sm:$0xff]   ;;  %v5917_v5 = vld [vmem:[%s6696_s5] ss:$12 sps:$4 sm:$0xff]   ;;  %v7995_v6 = vmov 0   ;;  %v573_v35 = vlaneseq  ;;  %s6387_s29 = smov 64  }
  0xbd   : > { %748 = vmatprep.mubr.bf16.mxu0 %v7995_v6  ;;  %716 = vmatprep.subr.bf16.mxu0 %v5915_v4  ;;  %v5918_v7 = vld [vmem:[%s6696_s5 + $0x1c] ss:$12 sps:$4 sm:$0xff]   ;;  %v5920_v8 = vld [vmem:[%s6696_s5 + $0x18] ss:$12 sps:$4 sm:$0xff]   ;;  %v5921_v9 = vld [vmem:[%s6696_s5 + $0x34] ss:$12 sps:$4 sm:$0xff]  }
  0xbe   : > { %717 = vmatpush1.bf16.msra.mxu0 %v5917_v5  ;;  %v5923_v10 = vld [vmem:[%s6696_s5 + $0x30] ss:$12 sps:$4 sm:$0xff]   ;;  %v5924_v11 = vld [vmem:[%s6696_s5 + $0x4c] ss:$12 sps:$4 sm:$0xff]   ;;  %v532_v12 = vld [vmem:[#allocation11] sm:$0xff]  ;;  %v6757_v36 = vshrl.u32 %v573_v35, 7 }
  0xbf   : > { %718 = vmatprep.subr.bf16.mxu0 %v5918_v7  ;;  %v5926_v13 = vld [vmem:[%s6696_s5 + $0x48] ss:$12 sps:$4 sm:$0xff]   ;;  %v5927_v14 = vld [vmem:[%s6696_s5 + $0x64] ss:$12 sps:$4 sm:$0xff]   ;;  %v5940_v18 = vld [vmem:[%s6696_s5 + $0x20] ss:$12 sps:$4 sm:$0xff]  }
  0xc0   : > { %v533_v15 = vld [vmem:[#allocation11 + $0x8] sm:$0xff]  ;;  %v5941_v21 = vld [vmem:[%s6696_s5 + $0x38] ss:$12 sps:$4 sm:$0xff]   ;;  %v5933_v23 = vld [vmem:[%s6696_s5 + $0x94] ss:$12 sps:$4 sm:$0xff]   ;;  %v6760_v37 = vsub.s32 1, %v6757_v36 }
  0xc1   : > { %v538_v16 = vpack.c.bf16 %v533_v15, %v532_v12  ;;  %v5939_v17 = vld [vmem:[%s6696_s5 + $0x8] ss:$12 sps:$4 sm:$0xff]   ;;  %v5929_v19 = vld [vmem:[%s6696_s5 + $0x60] ss:$12 sps:$4 sm:$0xff]   ;;  %v5932_v22 = vld [vmem:[%s6696_s5 + $0x78] ss:$12 sps:$4 sm:$0xff]  }
  0xc2   : > { %719 = vmatpush1.bf16.msra.mxu0 %v5920_v8  ;;  %5655 = vmatprep.subr.bf16.mxu1 %v5939_v17  ;;  %v5930_v20 = vld [vmem:[%s6696_s5 + $0x7c] ss:$12 sps:$4 sm:$0xff]   ;;  %v5936_v26 = vld [vmem:[%s6696_s5 + $0xac] ss:$12 sps:$4 sm:$0xff]   ;;  %v534_v31 = vld [vmem:[#allocation11 + $0x10] sm:$0xff]  ;;  %v6764_v39 = vsub.s32 0, %v6757_v36 }
  0xc3   : > { %720 = vmatprep.subr.bf16.mxu0 %v5921_v9  ;;  %5671 = vmatprep.mubr.bf16.mxu1 %v538_v16  ;;  %v5942_v24 = vld [vmem:[%s6696_s5 + $0x50] ss:$12 sps:$4 sm:$0xff]   ;;  %v5943_v27 = vld [vmem:[%s6696_s5 + $0x68] ss:$12 sps:$4 sm:$0xff]   ;;  %v5944_v29 = vld [vmem:[%s6696_s5 + $0x80] ss:$12 sps:$4 sm:$0xff]  }
  0xc4   : > { %5656 = vmatpush3.bf16.msra.mxu1 %v5939_v17  ;;  %v5935_v25 = vld [vmem:[%s6696_s5 + $0x90] ss:$12 sps:$4 sm:$0xff]   ;;  %v5938_v28 = vld [vmem:[%s6696_s5 + $0xa8] ss:$12 sps:$4 sm:$0xff]   ;;  %v5945_v30 = vld [vmem:[%s6696_s5 + $0x98] ss:$12 sps:$4 sm:$0xff]  }
  0xc5   : > { %5657 = vmatprep.subr.bf16.mxu1 %v5940_v18  ;;  %v535_v32 = vld [vmem:[#allocation11 + $0x18] sm:$0xff]  ;;  %v537_v38 = vld [vmem:[%s6720_s27] sm:$0x7]  ;;  %s6388_s14 = smov 96   ;;  %s6389_s24 = smov 32   ;;  %v6390_v58 = vmov 0.0  }
  0xc6   : > { %721 = vmatpush1.bf16.msra.mxu0 %v5923_v10  ;;  %v5946_v33 = vld [vmem:[%s6696_s5 + $0xb0] ss:$12 sps:$4 sm:$0xff]   ;;  %v539_v34 = vpack.c.bf16 %v535_v32, %v534_v31  ;;  %v580_v40 = vrot.slane %v537_v38, %v6760_v37  ;;  %v576_v43 = vrot.slane %v537_v38, %v6764_v39  ;;  %vm6391_vm0 = vmmov 0   ;;  %s8021_s2 = sld [smem:[#allocation19_spill]]  ;;  %p5831_p11 = scmp.eq.s32.totalorder %s6580_s28, 1 }
  0xc7   : > { %722 = vmatprep.subr.bf16.mxu0 %v5924_v11  ;;  %v6839_v63 = vsub.s32 2, %v6757_v36  ;;  %v6392_v10 = vmov 1983009808   ;;  %v6393_v15 = vmov 1934713408   ;;  %vm2600_vm1 = vcmask 261120  }
  0xc8   : > { %5658 = vmatpush3.bf16.msra.mxu1 %v5940_v18  ;;  %v865_v11 = vunpack.c.l.s4 %v6392_v10  ;;  %vm2977_vm2 = vcmask 130048   ;;  %vm4110_vm3 = vcmask 523264   ;;  %vm4115_vm4 = vcmask 785408  }
  0xc9   : > { %5659 = vmatprep.subr.bf16.mxu1 %v5941_v21  ;;  %v584_v1 = vrot.slane %v537_v38, %v6839_v63 }
  0xca   : > { %723 = vmatpush1.bf16.msra.mxu0 %v5926_v13  ;;  %v866_v12 = vunpack.c.0.s8 %v865_v11 }
  0xcb   : > { %724 = vmatprep.subr.bf16.mxu0 %v5927_v14 }
  0xcc   : > { %5660 = vmatpush3.bf16.msra.mxu1 %v5941_v21  ;;  %v6873_v17 = vsub.s32 %v866_v12, %v6757_v36 }
  0xcd   : > { %5661 = vmatprep.subr.bf16.mxu1 %v5942_v24 }
  0xce   : > { %725 = vmatpush1.bf16.msra.mxu0 %v5929_v19 }
  0xcf   : > { %726 = vmatprep.subr.bf16.mxu0 %v5930_v20 }
  0xd0   : > { %5662 = vmatpush3.bf16.msra.mxu1 %v5942_v24 }
  0xd1   : > { %5663 = vmatprep.subr.bf16.mxu1 %v5943_v27 }
  0xd2   : > { %727 = vmatpush1.bf16.msra.mxu0 %v5932_v22 }
  0xd3   : > { %728 = vmatprep.subr.bf16.mxu0 %v5933_v23 }
  0xd4   : > { %5664 = vmatpush3.bf16.msra.mxu1 %v5943_v27 }
  0xd5   : > { %5665 = vmatprep.subr.bf16.mxu1 %v5944_v29 }
  0xd6   : > { %729 = vmatpush1.bf16.msra.mxu0 %v5935_v25 }
  0xd7   : > { %730 = vmatprep.subr.bf16.mxu0 %v5936_v26 }
  0xd8   : > { %5666 = vmatpush3.bf16.msra.mxu1 %v5944_v29 }
  0xd9   : > { %5667 = vmatprep.subr.bf16.mxu1 %v5945_v30 }
  0xda   : > { %731 = vmatpush1.bf16.msra.mxu0 %v5938_v28 }
  0xdb   : > { %5675 = vmatprep.subr.bf16.mxu0 %v6390_v58 }
  0xdc   : > { %5668 = vmatpush3.bf16.msra.mxu1 %v5945_v30 }
  0xdd   : > { %749 = vmatmul.mubr.bf16.vlgmr.msra.gmra.mrb[0].mxu0 %v538_v16  ;;  %5669 = vmatprep.subr.bf16.mxu1 %v5946_v33  ;;  %v897_v16 = vunpack.c.l.s4 %v6393_v15 }
  0xde   : > { %758 = vmatprep.mubr.bf16.mxu0 %v7995_v6 }
  0xdf   : > { %v898_v24 = vunpack.c.0.s8 %v897_v16 }
  0xe0   : > { %5670 = vmatpush3.bf16.msra.mxu1 %v5946_v33 }
  0xe1   : > { %5687 = vmatprep.subr.bf16.mxu1 %v6390_v58  ;;  %v6882_v31 = vsub.s32 %v898_v24, %v6757_v36 }
  0xe3   : > { %5672 = vmatmul.mubr.bf16.vlgmr.msra.gmra.mrb[0].mxu1 %v539_v34 }
  0xe4   : > { %5689 = vmatprep.mubr.msk.bf16.mxu1 %vm6391_vm0, %v6390_v58 }
  0xe5   : > { %759 = vmatmul.mubr.bf16.gmra.mrb[4].mxu0 %v539_v34 }
  0xe6   : > { %5677 = vmatprep.mubr.msk.bf16.mxu0 %vm6391_vm0, %v6390_v58 }
 0x1b0   : > { %v750_v41 = vpop.f32.mrb[0].mxu0 }
 0x1b1   : > { %v752_v42 = vpop.f32.mrb[1].mxu0  ;;  %v751_v47 = vadd.f32 %v750_v41, %v576_v43 }
 0x1b2   : > { %v6768_v44 = vadd.f32 %v752_v42, %v580_v40  ;;  %v754_v45 = vpop.f32.mrb[2].mxu0 }
 0x1b3   : > { %v756_v46 = vpop.f32.mrb[3].mxu0  ;;  %v6780_v51 = vmul.f32 0.17677669, %v751_v47  ;;  %v755_v52 = vadd.f32 %v754_v45, %v576_v43 }
 0x1b4   : > { %1430 = vrot.lane.b32.xlu1 %v6768_v44, %s6387_s29  ;;  %1418 = vrot.lane.b32.xlu0 %v6768_v44, %s6388_s14  ;;  %v6774_v48 = vadd.f32 %v756_v46, %v580_v40 }
 0x1b5   : > { %v6786_v55 = vmul.f32 0.17677669, %v755_v52 }
 0x1b6   : > { %v5673_v0 = vpop.f32.mrb[0].mxu1 }
 0x1b7   : > { %v803_v2 = vpop.f32.mrb[1].mxu1  ;;  %v6860_v9 = vadd.f32 %v5673_v0, %v584_v1 }
 0x1b8   : > { %1432 = vrot.lane.b32.xlu1 %v6774_v48, %s6387_s29  ;;  %1442 = vrot.lane.b32.xlu0 %v6768_v44, %s6389_s24  ;;  %v760_v49 = vpop.f32.mrb[4].mxu0  ;;  %v6842_v3 = vadd.f32 %v803_v2, %v584_v1  ;;  %v5674_v4 = vpop.f32.mrb[2].mxu1 }
 0x1b9   : > { %v762_v50 = vpop.f32.mrb[5].mxu0  ;;  %v761_v59 = vadd.f32 %v760_v49, %v576_v43  ;;  %v806_v5 = vpop.f32.mrb[3].mxu1  ;;  %v6852_v8 = vadd.f32 %v5674_v4, %v584_v1 }
 0x1ba   : > { %v764_v53 = vpop.f32.mrb[6].mxu0  ;;  %v6800_v56 = vadd.f32 %v762_v50, %v580_v40  ;;  %v6846_v7 = vadd.f32 %v806_v5, %v584_v1 }
 0x1bb   : > { %v766_v54 = vpop.f32.mrb[7].mxu0  ;;  %v765_v60 = vadd.f32 %v764_v53, %v576_v43  ;;  %v6818_v61 = vmul.f32 0.17677669, %v761_v59 }
 0x1bc   : > { %1444 = vrot.lane.b32.xlu1 %v6774_v48, %s6389_s24  ;;  %826 = vrot.lane.b32.xlu0 %v6780_v51, %s6388_s14  ;;  %v6802_v57 = vadd.f32 %v766_v54, %v580_v40 }
 0x1bd   : > { %v6820_v62 = vmul.f32 0.17677669, %v765_v60 }
 0x1c0   : > { %828 = vrot.lane.b32.xlu1 %v6786_v55, %s6388_s14  ;;  %1420 = vrot.lane.b32.xlu0 %v6774_v48, %s6388_s14 }
 0x1c4   : > { %840 = vrot.lane.b32.xlu1 %v6786_v55, %s6387_s29  ;;  %838 = vrot.lane.b32.xlu0 %v6780_v51, %s6387_s29 }
 0x1c8   : > { %852 = vrot.lane.b32.xlu1 %v6786_v55, %s6389_s24  ;;  %850 = vrot.lane.b32.xlu0 %v6780_v51, %s6389_s24 }
 0x1cc   : > { %1424 = vrot.lane.b32.xlu1 %v6802_v57, %s6388_s14  ;;  %1422 = vrot.lane.b32.xlu0 %v6800_v56, %s6388_s14 }
 0x1d0   : > { %1436 = vrot.lane.b32.xlu1 %v6802_v57, %s6387_s29  ;;  %1434 = vrot.lane.b32.xlu0 %v6800_v56, %s6387_s29 }
 0x1d4   : > { %1448 = vrot.lane.b32.xlu1 %v6802_v57, %s6389_s24  ;;  %1446 = vrot.lane.b32.xlu0 %v6800_v56, %s6389_s24 }
 0x1d8   : > { %832 = vrot.lane.b32.xlu1 %v6820_v62, %s6388_s14  ;;  %830 = vrot.lane.b32.xlu0 %v6818_v61, %s6388_s14 }
 0x1dc   : > { %844 = vrot.lane.b32.xlu1 %v6820_v62, %s6387_s29  ;;  %842 = vrot.lane.b32.xlu0 %v6818_v61, %s6387_s29 }
 0x1e0   : > { %856 = vrot.lane.b32.xlu1 %v6820_v62, %s6389_s24  ;;  %854 = vrot.lane.b32.xlu0 %v6818_v61, %s6389_s24 }
 0x1e4   : > { %2010 = vrot.lane.b32.xlu1 %v6842_v3, %s6388_s14  ;;  %2012 = vrot.lane.b32.xlu0 %v6846_v7, %s6388_s14 }
 0x1e8   : > { %2022 = vrot.lane.b32.xlu1 %v6842_v3, %s6387_s29  ;;  %2034 = vrot.lane.b32.xlu0 %v6842_v3, %s6389_s24 }
 0x1ec   : > { %2024 = vrot.lane.b32.xlu1 %v6846_v7, %s6387_s29  ;;  %2016 = vrot.lane.b32.xlu0 %v6852_v8, %s6388_s14 }
 0x1f0   : > { %2036 = vrot.lane.b32.xlu1 %v6846_v7, %s6389_s24  ;;  %2038 = vrot.lane.b32.xlu0 %v6860_v9, %s6389_s24 }
 0x1f4   : > { %2014 = vrot.lane.b32.xlu1 %v6860_v9, %s6388_s14 }
 0x1f8   : > { %2026 = vrot.lane.b32.xlu1 %v6860_v9, %s6387_s29 }
 0x1fc   : > { %2028 = vrot.lane.b32.xlu1 %v6852_v8, %s6387_s29 }
 0x226   : > { %v1431_v13 = vpop.permute.xlu1 %1430  ;;  %v1419_v14 = vpop.permute.xlu0 %1418 }
 0x227   : > { %v1454_v20 = vcombine.low %v6768_v44, %v1431_v13  ;;  %v1455_v21 = vcombine.high %v6768_v44, %v1431_v13 }
 0x229   : > { %v1462_v29 = vrot.slane %v1454_v20, %v6873_v17  ;;  %v1469_v30 = vrot.slane %v1455_v21, %v6873_v17 }
 0x22a   : > { %v1433_v18 = vpop.permute.xlu1 %1432  ;;  %v1443_v19 = vpop.permute.xlu0 %1442 }
 0x22b   : > { %v1470_v22 = vcombine.low %v1419_v14, %v1443_v19  ;;  %v1471_v23 = vcombine.high %v1419_v14, %v1443_v19  ;;  %v1522_v38 = vcombine.low %v6774_v48, %v1433_v18  ;;  %v1523_v40 = vcombine.high %v6774_v48, %v1433_v18 }
 0x22d   : > { %v1478_v25 = vrot.slane %v1470_v22, %v6873_v17  ;;  %v1485_v26 = vrot.slane %v1471_v23, %v6873_v17  ;;  %v1530_v50 = vrot.slane %v1522_v38, %v6873_v17  ;;  %v1537_v48 = vrot.slane %v1523_v40, %v6873_v17 }
 0x22e   : > { %v1445_v27 = vpop.permute.xlu1 %1444  ;;  %v827_v28 = vpop.permute.xlu0 %826 }
 0x22f   : > { %v1486_v32 = vcombine.low %v1462_v29, %v1478_v25  ;;  %v1487_v33 = vcombine.high %v1462_v29, %v1478_v25  ;;  %v1502_v34 = vcombine.low %v1469_v30, %v1485_v26  ;;  %v1503_v35 = vcombine.high %v1469_v30, %v1485_v26 }
 0x231   : > { %v6887_v45 = vrot.slane %v1486_v32, %v6882_v31  ;;  %v6890_v46 = vrot.slane %v1487_v33, %v6882_v31  ;;  %v6893_v47 = vrot.slane %v1502_v34, %v6882_v31  ;;  %v6896_v49 = vrot.slane %v1503_v35, %v6882_v31 }
 0x232   : > { %v829_v41 = vpop.permute.xlu1 %828  ;;  %v1421_v42 = vpop.permute.xlu0 %1420 }
 0x233   : > { %v1538_v43 = vcombine.low %v1421_v42, %v1445_v27  ;;  %v1539_v44 = vcombine.high %v1421_v42, %v1445_v27  ;;  %v1726_v12 = vcombine.low %v6887_v45, %v6890_v46  ;;  %v5428_v13 = vcombine.high %v6887_v45, %v6890_v46 }
 0x234   : > { %v1742_v14 = vcombine.low %v6893_v47, %v6896_v49 }
 0x235   : > { %v1546_v52 = vrot.slane %v1538_v43, %v6873_v17  ;;  %v1553_v53 = vrot.slane %v1539_v44, %v6873_v17 }
 0x236   : > { %v841_v54 = vpop.permute.xlu1 %840  ;;  %v839_v59 = vpop.permute.xlu0 %838 }
 0x237   : > { %v930_v60 = vcombine.low %v6786_v55, %v841_v54  ;;  %v931_v0 = vcombine.high %v6786_v55, %v841_v54  ;;  %v862_v1 = vcombine.low %v6780_v51, %v839_v59  ;;  %v863_v2 = vcombine.high %v6780_v51, %v839_v59 }
 0x238   : > { %v1554_v4 = vcombine.low %v1530_v50, %v1546_v52  ;;  %v1555_v5 = vcombine.high %v1530_v50, %v1546_v52  ;;  %v1570_v10 = vcombine.low %v1537_v48, %v1553_v53  ;;  %v1571_v11 = vcombine.high %v1537_v48, %v1553_v53 }
 0x239   : > { %v5429_v55 = vcombine.high %v6893_v47, %v6896_v49  ;;  %v938_v25 = vrot.slane %v930_v60, %v6873_v17  ;;  %v945_v26 = vrot.slane %v931_v0, %v6873_v17  ;;  %v870_v27 = vrot.slane %v862_v1, %v6873_v17 }
 0x23a   : > { %v6915_v15 = vrot.slane %v1554_v4, %v6882_v31  ;;  %v6918_v51 = vrot.slane %v1555_v5, %v6882_v31  ;;  %v6921_v16 = vrot.slane %v1570_v10, %v6882_v31  ;;  %v6924_v18 = vrot.slane %v1571_v11, %v6882_v31  ;;  %v853_v19 = vpop.permute.xlu1 %852  ;;  %v851_v20 = vpop.permute.xlu0 %850 }
 0x23b   : > { %v946_v21 = vcombine.low %v829_v41, %v853_v19  ;;  %v947_v22 = vcombine.high %v829_v41, %v853_v19  ;;  %v878_v23 = vcombine.low %v827_v28, %v851_v20  ;;  %v879_v24 = vcombine.high %v827_v28, %v851_v20 }
 0x23c   : > { %v877_v29 = vrot.slane %v863_v2, %v6873_v17  ;;  %v1794_v35 = vcombine.low %v6915_v15, %v6918_v51  ;;  %v5430_v28 = vcombine.high %v6915_v15, %v6918_v51  ;;  %v1810_v38 = vcombine.low %v6921_v16, %v6924_v18 }
 0x23d   : > { %v954_v30 = vrot.slane %v946_v21, %v6873_v17  ;;  %v961_v32 = vrot.slane %v947_v22, %v6873_v17  ;;  %v886_v33 = vrot.slane %v878_v23, %v6873_v17  ;;  %v893_v34 = vrot.slane %v879_v24, %v6873_v17 }
 0x23e   : > { %v5431_v40 = vcombine.high %v6921_v16, %v6924_v18  ;;  %v6942_v41 = vpop.permute.xlu1 %1424  ;;  %v6944_v42 = vpop.permute.xlu0 %1422 }
 0x23f   : > { %v962_v43 = vcombine.low %v938_v25, %v954_v30  ;;  %v963_v44 = vcombine.high %v938_v25, %v954_v30  ;;  %v978_v45 = vcombine.low %v945_v26, %v961_v32  ;;  %v979_v46 = vcombine.high %v945_v26, %v961_v32 }
 0x240   : > { %v894_v50 = vcombine.low %v870_v27, %v886_v33  ;;  %v895_v48 = vcombine.high %v870_v27, %v886_v33  ;;  %v910_v52 = vcombine.low %v877_v29, %v893_v34  ;;  %v911_v53 = vcombine.high %v877_v29, %v893_v34 }
 0x241   : > { %v970_v54 = vrot.slane %v962_v43, %v6882_v31  ;;  %v977_v59 = vrot.slane %v963_v44, %v6882_v31  ;;  %v986_v60 = vrot.slane %v978_v45, %v6882_v31  ;;  %v993_v0 = vrot.slane %v979_v46, %v6882_v31 }
 0x242   : > { %v902_v1 = vrot.slane %v894_v50, %v6882_v31  ;;  %v909_v2 = vrot.slane %v895_v48, %v6882_v31  ;;  %v918_v4 = vrot.slane %v910_v52, %v6882_v31  ;;  %v925_v5 = vrot.slane %v911_v53, %v6882_v31  ;;  %v1437_v16 = vpop.permute.xlu1 %1436  ;;  %v1435_v22 = vpop.permute.xlu0 %1434 }
 0x243   : > { %v1202_v10 = vcombine.low %v970_v54, %v977_v59  ;;  %v5422_v11 = vcombine.high %v970_v54, %v977_v59  ;;  %v1218_v15 = vcombine.low %v986_v60, %v993_v0  ;;  %v5423_v51 = vcombine.high %v986_v60, %v993_v0 }
 0x244   : > { %v1134_v18 = vcombine.low %v902_v1, %v909_v2  ;;  %v5420_v19 = vcombine.high %v902_v1, %v909_v2  ;;  %v1150_v20 = vcombine.low %v918_v4, %v925_v5  ;;  %v5421_v21 = vcombine.high %v918_v4, %v925_v5 }
 0x245   : > { %v1209_v23 = vrot.slane %v1202_v10, %v6873_v17  ;;  %v1217_v24 = vrot.slane %v5422_v11, %v6873_v17  ;;  %v6957_v25 = vrot.slane %v1218_v15, %v6873_v17  ;;  %v1233_v26 = vrot.slane %v5423_v51, %v6873_v17 }
 0x246   : > { %v1141_v27 = vrot.slane %v1134_v18, %v6873_v17  ;;  %v1149_v29 = vrot.slane %v5420_v19, %v6873_v17  ;;  %v6963_v30 = vrot.slane %v1150_v20, %v6873_v17  ;;  %v6966_v32 = vrot.slane %v5421_v21, %v6873_v17  ;;  %v1449_v53 = vpop.permute.xlu1 %1448 }
 0x247   : > { %v6969_v33 = vrot.slane %v1726_v12, %v6873_v17  ;;  %v6972_v34 = vrot.slane %v5428_v13, %v6873_v17  ;;  %v6975_v43 = vrot.slane %v1742_v14, %v6873_v17  ;;  %v1234_v44 = vcombine.low %v1209_v23, %v1217_v24 }
 0x248   : > { %v6981_v45 = vrot.slane %v5429_v55, %v6873_v17  ;;  %v6984_v46 = vrot.slane %v1794_v35, %v6873_v17  ;;  %v6987_v50 = vrot.slane %v5430_v28, %v6873_v17  ;;  %v1235_v12 = vcombine.high %v1209_v23, %v1217_v24  ;;  %v1447_v28 = vpop.permute.xlu0 %1446 }
 0x249   : > { %v6990_v13 = vrot.slane %v1810_v38, %v6873_v17  ;;  %v6993_v14 = vrot.slane %v5431_v40, %v6873_v17  ;;  %v1250_v48 = vcombine.low %v6957_v25, %v1233_v26  ;;  %v1166_v52 = vcombine.low %v1141_v27, %v1149_v29 }
 0x24a   : > { %v1251_v47 = vcombine.high %v6957_v25, %v1233_v26  ;;  %v1167_v49 = vcombine.high %v1141_v27, %v1149_v29  ;;  %v1182_v55 = vcombine.low %v6963_v30, %v6966_v32  ;;  %v1183_v35 = vcombine.high %v6963_v30, %v6966_v32  ;;  %v7034_v27 = vpop.permute.xlu1 %832 }
 0x24b   : > { %v7002_v38 = vrot.slane %v1234_v44, %v6882_v31  ;;  %v1658_v40 = vcombine.low %v6802_v57, %v1437_v16  ;;  %v1659_v54 = vcombine.high %v6802_v57, %v1437_v16  ;;  %v1590_v59 = vcombine.low %v6800_v56, %v1435_v22 }
 0x24c   : > { %v7008_v60 = vrot.slane %v1235_v12, %v6882_v31  ;;  %v1591_v0 = vcombine.high %v6800_v56, %v1435_v22  ;;  %v1674_v1 = vcombine.low %v6942_v41, %v1449_v53  ;;  %v1675_v2 = vcombine.high %v6942_v41, %v1449_v53  ;;  %v7044_v12 = vpop.permute.xlu0 %830 }
 0x24d   : > { %v7014_v4 = vrot.slane %v1250_v48, %v6882_v31  ;;  %v7017_v5 = vrot.slane %v1166_v52, %v6882_v31  ;;  %v1666_v10 = vrot.slane %v1658_v40, %v6873_v17  ;;  %v1606_v57 = vcombine.low %v6944_v42, %v1447_v28 }
 0x24e   : > { %v1673_v11 = vrot.slane %v1659_v54, %v6873_v17  ;;  %v1682_v15 = vrot.slane %v1674_v1, %v6873_v17  ;;  %v1689_v56 = vrot.slane %v1675_v2, %v6873_v17  ;;  %v1607_v51 = vcombine.high %v6944_v42, %v1447_v28 }
 0x24f   : > { %v7026_v41 = vrot.slane %v1182_v55, %v6882_v31  ;;  %v1598_v16 = vrot.slane %v1590_v59, %v6873_v17  ;;  %v1605_v18 = vrot.slane %v1591_v0, %v6873_v17  ;;  %v1614_v19 = vrot.slane %v1606_v57, %v6873_v17 }
 0x250   : > { %v1690_v20 = vcombine.low %v1666_v10, %v1682_v15  ;;  %v1691_v21 = vcombine.high %v1666_v10, %v1682_v15  ;;  %v1706_v22 = vcombine.low %v1673_v11, %v1689_v56  ;;  %v1707_v23 = vcombine.high %v1673_v11, %v1689_v56 }
 0x251   : > { %v1621_v24 = vrot.slane %v1607_v51, %v6873_v17  ;;  %v1622_v25 = vcombine.low %v1598_v16, %v1614_v19  ;;  %v1623_v26 = vcombine.high %v1598_v16, %v1614_v19  ;;  %v1758_v42 = vcombine.low %v6969_v33, %v6972_v34  ;;  %v845_v16 = vpop.permute.xlu1 %844 }
 0x252   : > { %v1698_v29 = vrot.slane %v1690_v20, %v6882_v31  ;;  %v1705_v30 = vrot.slane %v1691_v21, %v6882_v31  ;;  %v7039_v32 = vrot.slane %v1706_v22, %v6882_v31  ;;  %v7042_v44 = vrot.slane %v1707_v23, %v6882_v31  ;;  %v843_v22 = vpop.permute.xlu0 %842 }
 0x253   : > { %v7047_v48 = vrot.slane %v1622_v25, %v6882_v31  ;;  %v7050_v52 = vrot.slane %v1623_v26, %v6882_v31  ;;  %v1638_v53 = vcombine.low %v1605_v18, %v1621_v24  ;;  %v1639_v55 = vcombine.high %v1605_v18, %v1621_v24 }
 0x254   : > { %v7053_v28 = vrot.slane %v1251_v47, %v6882_v31  ;;  %v7056_v40 = vrot.slane %v1167_v49, %v6882_v31  ;;  %v1774_v54 = vcombine.low %v6975_v43, %v6981_v45  ;;  %v1826_v59 = vcombine.low %v6984_v46, %v6987_v50 }
 0x255   : > { %v1266_v0 = vcombine.low %v7002_v38, %v7014_v4  ;;  %v7065_v1 = vrot.slane %v1183_v35, %v6882_v31  ;;  %v1930_v2 = vcombine.low %v1698_v29, %v1705_v30  ;;  %v5434_v10 = vcombine.high %v1698_v29, %v1705_v30 }
 0x256   : > { %v1198_v47 = vcombine.low %v7017_v5, %v7026_v41  ;;  %v7070_v49 = vrot.slane %v1638_v53, %v6882_v31  ;;  %v7073_v57 = vrot.slane %v1639_v55, %v6882_v31  ;;  %v1766_v11 = vrot.slane %v1758_v42, %v6882_v31 }
 0x257   : > { %v1946_v15 = vcombine.low %v7039_v32, %v7042_v44  ;;  %v5435_v35 = vcombine.high %v7039_v32, %v7042_v44  ;;  %v1862_v56 = vcombine.low %v7047_v48, %v7050_v52  ;;  %v5432_v51 = vcombine.high %v7047_v48, %v7050_v52 }
 0x258   : > { %v1782_v18 = vrot.slane %v1774_v54, %v6882_v31  ;;  %v1834_v19 = vrot.slane %v1826_v59, %v6882_v31  ;;  %v1842_v20 = vcombine.low %v6990_v13, %v6993_v14  ;;  %v1759_v21 = vcombine.high %v6969_v33, %v6972_v34 }
 0x259   : > { %v7091_v23 = vrot.slane %v1930_v2, %v6873_v17  ;;  %v7094_v24 = vrot.slane %v5434_v10, %v6873_v17  ;;  %v1775_v25 = vcombine.high %v6975_v43, %v6981_v45  ;;  %v1827_v26 = vcombine.high %v6984_v46, %v6987_v50  ;;  %v857_v10 = vpop.permute.xlu1 %856 }
 0x25a   : > { %v1850_v29 = vrot.slane %v1842_v20, %v6882_v31  ;;  %v7104_v33 = vrot.slane %v1759_v21, %v6882_v31  ;;  %v1843_v34 = vcombine.high %v6990_v13, %v6993_v14  ;;  %v1066_v43 = vcombine.low %v6820_v62, %v845_v16 }
 0x25b   : > { %v7109_v30 = vrot.slane %v1775_v25, %v6882_v31  ;;  %v7112_v53 = vrot.slane %v1827_v26, %v6882_v31  ;;  %v1067_v45 = vcombine.high %v6820_v62, %v845_v16  ;;  %v1790_v50 = vcombine.low %v1766_v11, %v1782_v18  ;;  %v855_v25 = vpop.permute.xlu0 %854 }
 0x25c   : > { %v1858_v55 = vcombine.low %v1834_v19, %v1850_v29  ;;  %v7119_v54 = vrot.slane %v1843_v34, %v6882_v31  ;;  %v1074_v14 = vrot.slane %v1066_v43, %v6873_v17  ;;  %v998_v59 = vcombine.low %v6818_v61, %v843_v22 }
 0x25d   : > { %v1792_v13 = vcombine.low %v7104_v33, %v7109_v30  ;;  %v999_v2 = vcombine.high %v6818_v61, %v843_v22  ;;  %v1081_v16 = vrot.slane %v1067_v45, %v6873_v17  ;;  %v1406_v21 = vpack.c.bf16 %v1266_v0, %v1198_v47 }
 0x25e   : > { %v1998_v20 = vpack.c.bf16 %v1858_v55, %v1790_v50  ;;  %v1860_v62 = vcombine.low %v7112_v53, %v7119_v54  ;;  %v1200_v26 = vcombine.low %v7056_v40, %v7065_v1  ;;  %v1268_v34 = vcombine.low %v7008_v60, %v7053_v28 }
 0x25f   : > { %v1791_v43 = vcombine.high %v1766_v11, %v1782_v18  ;;  %v1859_v6 = vcombine.high %v1834_v19, %v1850_v29  ;;  %v1082_v22 = vcombine.low %v7034_v27, %v857_v10  ;;  %v1083_v50 = vcombine.high %v7034_v27, %v857_v10 }
 0x260   : > { %v2605_v46 = vsel %vm2600_vm1, %v1998_v20, 0  ;;  %v2000_v61 = vpack.c.bf16 %v1860_v62, %v1792_v13  ;;  %v1006_v45 = vrot.slane %v998_v59, %v6873_v17  ;;  %v1014_v47 = vcombine.low %v7044_v12, %v855_v25 }
 0x261   : > { %5676 = vmatpush3.bf16.xpose.msra.mxu0 %v2605_v46  ;;  %v1999_v0 = vpack.c.bf16 %v1859_v6, %v1791_v43  ;;  %v1015_v55 = vcombine.high %v7044_v12, %v855_v25  ;;  %v1013_v11 = vrot.slane %v999_v2, %v6873_v17  ;;  %v1090_v18 = vrot.slane %v1082_v22, %v6873_v17 }
 0x262   : > { %v2699_v42 = vsel %vm2600_vm1, %v2000_v61, 0  ;;  %5681 = vmatprep.subr.bf16.mxu0 %v6390_v58  ;;  %v1097_v19 = vrot.slane %v1083_v50, %v6873_v17  ;;  %v1408_v27 = vpack.c.bf16 %v1268_v34, %v1200_v26  ;;  %v1022_v6 = vrot.slane %v1014_v47, %v6873_v17 }
 0x263   : > { %5688 = vmatpush3.bf16.xpose.msra.mxu1 %v2699_v42  ;;  %v2652_v29 = vsel %vm2600_vm1, %v1999_v0, 0  ;;  %v1029_v46 = vrot.slane %v1015_v55, %v6873_v17  ;;  %v1098_v13 = vcombine.low %v1074_v14, %v1090_v18  ;;  %v1099_v12 = vcombine.high %v1074_v14, %v1090_v18 }
 0x264   : > { %v1114_v59 = vcombine.low %v1081_v16, %v1097_v19  ;;  %v1115_v10 = vcombine.high %v1081_v16, %v1097_v19  ;;  %5699 = vmatprep.subr.bf16.mxu1 %v6390_v58  ;;  %v1030_v2 = vcombine.low %v1006_v45, %v1022_v6  ;;  %v1031_v20 = vcombine.high %v1006_v45, %v1022_v6 }
 0x265   : > { %v1046_v62 = vcombine.low %v1013_v11, %v1029_v46  ;;  %v1047_v25 = vcombine.high %v1013_v11, %v1029_v46  ;;  %v1106_v43 = vrot.slane %v1098_v13, %v6882_v31  ;;  %v1113_v42 = vrot.slane %v1099_v12, %v6882_v31 }
 0x266   : > { %v1122_v26 = vrot.slane %v1114_v59, %v6882_v31  ;;  %v1129_v34 = vrot.slane %v1115_v10, %v6882_v31  ;;  %v1038_v61 = vrot.slane %v1030_v2, %v6882_v31  ;;  %v1045_v14 = vrot.slane %v1031_v20, %v6882_v31 }
 0x267   : > { %v1054_v16 = vrot.slane %v1046_v62, %v6882_v31  ;;  %v1061_v22 = vrot.slane %v1047_v25, %v6882_v31  ;;  %v1338_v50 = vcombine.low %v1106_v43, %v1113_v42  ;;  %v5426_v45 = vcombine.high %v1106_v43, %v1113_v42 }
 0x268   : > { %5678 = vmatmul.mubr.msk.bf16.vlgmr.msra.gmra.mrb[8].mxu0 %vm2600_vm1, %v1406_v21  ;;  %v1354_v0 = vcombine.low %v1122_v26, %v1129_v34  ;;  %v5427_v47 = vcombine.high %v1122_v26, %v1129_v34  ;;  %v1270_v55 = vcombine.low %v1038_v61, %v1045_v14  ;;  %v5424_v11 = vcombine.high %v1038_v61, %v1045_v14 }
 0x269   : > { %5682 = vmatpush3.bf16.xpose.msra.mxu0 %v2652_v29  ;;  %v1286_v18 = vcombine.low %v1054_v16, %v1061_v22  ;;  %v5425_v19 = vcombine.high %v1054_v16, %v1061_v22  ;;  %v7159_v6 = vrot.slane %v1338_v50, %v6873_v17  ;;  %v7162_v46 = vrot.slane %v5426_v45, %v6873_v17 }
 0x26a   : > { %5690 = vmatmul.mubr.msk.bf16.vlgmr.msra.gmra.mrb[4].mxu1 %vm2600_vm1, %v1408_v27  ;;  %v7165_v13 = vrot.slane %v1354_v0, %v6873_v17  ;;  %v7168_v21 = vrot.slane %v5427_v47, %v6873_v17  ;;  %v7171_v29 = vrot.slane %v1270_v55, %v6873_v17  ;;  %v7174_v12 = vrot.slane %v5424_v11, %v6873_v17 }
 0x26b   : > { %v7177_v27 = vrot.slane %v1286_v18, %v6873_v17  ;;  %v7180_v59 = vrot.slane %v5425_v19, %v6873_v17  ;;  %5683 = vmatprep.mubr.msk.bf16.mxu0 %vm6391_vm0, %v6390_v58  ;;  %v1869_v10 = vrot.slane %v1862_v56, %v6873_v17  ;;  %v1877_v2 = vrot.slane %v5432_v51, %v6873_v17 }
 0x26c   : > { %v1199_v20 = vcombine.high %v7017_v5, %v7026_v41  ;;  %v1267_v62 = vcombine.high %v7002_v38, %v7014_v4  ;;  %5693 = vmatprep.subr.bf16.mxu0 %v6390_v58  ;;  %v1953_v25 = vrot.slane %v1946_v15, %v6873_v17  ;;  %v1961_v56 = vrot.slane %v5435_v35, %v6873_v17 }
 0x26d   : > { %v8019_v48 = vcombine.low %v7070_v49, %v7073_v57  ;;  %v8020_v38 = vcombine.high %v7070_v49, %v7073_v57  ;;  %5701 = vmatprep.mubr.msk.bf16.mxu1 %vm6391_vm0, %v6390_v58  ;;  %v1370_v41 = vcombine.low %v7159_v6, %v7162_v46  ;;  %v1386_v32 = vcombine.low %v7165_v13, %v7168_v21 }
 0x26e   : > { %v1302_v44 = vcombine.low %v7171_v29, %v7174_v12  ;;  %v1318_v52 = vcombine.low %v7177_v27, %v7180_v59  ;;  %v1407_v15 = vpack.c.bf16 %v1267_v62, %v1199_v20  ;;  %v1793_v49 = vcombine.high %v7104_v33, %v7109_v30 }
 0x26f   : > { %v1885_v5 = vrot.slane %v8019_v48, %v6873_v17  ;;  %v1893_v4 = vrot.slane %v8020_v38, %v6873_v17  ;;  %v1861_v57 = vcombine.high %v7112_v53, %v7119_v54  ;;  %v1894_v35 = vcombine.low %v1869_v10, %v1877_v2 }
 0x270   : > { %v1962_v43 = vcombine.low %v7091_v23, %v7094_v24  ;;  %v1978_v42 = vcombine.low %v1953_v25, %v1961_v56  ;;  %5684 = vmatmul.mubr.msk.bf16.vlgmr.msra.gmra.mrb[12].mxu0 %vm2600_vm1, %v1407_v15  ;;  %v1378_v61 = vrot.slane %v1370_v41, %v6882_v31  ;;  %v1394_v53 = vrot.slane %v1386_v32, %v6882_v31 }
 0x271   : > { %v1910_v51 = vcombine.low %v1885_v5, %v1893_v4  ;;  %v2001_v26 = vpack.c.bf16 %v1861_v57, %v1793_v49  ;;  %v1902_v34 = vrot.slane %v1894_v35, %v6882_v31  ;;  %5695 = vmatprep.mubr.msk.bf16.mxu0 %vm6391_vm0, %v6390_v58  ;;  %v1310_v54 = vrot.slane %v1302_v44, %v6882_v31 }
 0x272   : > { %v1970_v33 = vrot.slane %v1962_v43, %v6882_v31  ;;  %v1986_v30 = vrot.slane %v1978_v42, %v6882_v31  ;;  %v1326_v16 = vrot.slane %v1318_v52, %v6882_v31  ;;  %v1201_v55 = vcombine.high %v7056_v40, %v7065_v1 }
 0x273   : > { %v1918_v14 = vrot.slane %v1910_v51, %v6882_v31  ;;  %v2746_v22 = vsel %vm2600_vm1, %v2001_v26, 0  ;;  %v1269_v11 = vcombine.high %v7008_v60, %v7053_v28  ;;  %v1895_v18 = vcombine.high %v1869_v10, %v1877_v2  ;;  %v2011_v51 = vpop.permute.xlu1 %2010  ;;  %v2013_v26 = vpop.permute.xlu0 %2012 }
 0x274   : > { %5694 = vmatpush3.bf16.xpose.msra.mxu0 %v2746_v22  ;;  %v1994_v45 = vcombine.low %v1970_v33, %v1986_v30  ;;  %v1995_v47 = vcombine.high %v1970_v33, %v1986_v30  ;;  %v1911_v19 = vcombine.high %v1885_v5, %v1893_v4  ;;  %v1963_v62 = vcombine.high %v7091_v23, %v7094_v24 }
 0x275   : > { %v1926_v50 = vcombine.low %v1902_v34, %v1918_v14  ;;  %v1927_v0 = vcombine.high %v1902_v34, %v1918_v14  ;;  %5705 = vmatprep.subr.bf16.mxu0 %v6390_v58  ;;  %v1979_v48 = vcombine.high %v1953_v25, %v1961_v56  ;;  %v1334_v41 = vcombine.low %v1310_v54, %v1326_v16 }
 0x276   : > { %v1909_v32 = vrot.slane %v1895_v18, %v6882_v31  ;;  %v1925_v44 = vrot.slane %v1911_v19, %v6882_v31  ;;  %v1402_v1 = vcombine.low %v1378_v61, %v1394_v53  ;;  %v1977_v60 = vrot.slane %v1963_v62, %v6882_v31 }
 0x277   : > { %v2002_v20 = vpack.c.bf16 %v1994_v45, %v1926_v50  ;;  %v2003_v38 = vpack.c.bf16 %v1995_v47, %v1927_v0  ;;  %v1993_v28 = vrot.slane %v1979_v48, %v6882_v31  ;;  %v1371_v10 = vcombine.high %v7159_v6, %v7162_v46  ;;  %v2023_v33 = vpop.permute.xlu1 %2022 }
 0x278   : > { %v1387_v23 = vcombine.high %v7165_v13, %v7168_v21  ;;  %v1409_v24 = vpack.c.bf16 %v1269_v11, %v1201_v55  ;;  %v1928_v2 = vcombine.low %v1909_v32, %v1925_v44  ;;  %v1303_v25 = vcombine.high %v7171_v29, %v7174_v12 }
 0x279   : > { %v2793_v40 = vsel %vm2600_vm1, %v2002_v20, 0  ;;  %v1319_v56 = vcombine.high %v7177_v27, %v7180_v59  ;;  %v1335_v5 = vcombine.high %v1310_v54, %v1326_v16  ;;  %v1996_v4 = vcombine.low %v1977_v60, %v1993_v28  ;;  %v2035_v16 = vpop.permute.xlu0 %2034 }
 0x27a   : > { %5700 = vmatpush3.bf16.xpose.msra.mxu1 %v2793_v40  ;;  %v2840_v6 = vsel %vm2600_vm1, %v2003_v38, 0  ;;  %v1403_v46 = vcombine.high %v1378_v61, %v1394_v53  ;;  %v1929_v52 = vcombine.high %v1909_v32, %v1925_v44  ;;  %v1997_v13 = vcombine.high %v1977_v60, %v1993_v28 }
 0x27b   : > { %5711 = vmatprep.subr.bf16.mxu1 %v6390_v58  ;;  %5696 = vmatmul.mubr.msk.bf16.vlgmr.msra.gmra.mrb[16].mxu0 %vm2600_vm1, %v1409_v24  ;;  %v1410_v21 = vpack.c.bf16 %v1402_v1, %v1334_v41  ;;  %v2004_v29 = vpack.c.bf16 %v1996_v4, %v1928_v2  ;;  %v1385_v12 = vrot.slane %v1371_v10, %v6882_v31  ;;  %v2025_v55 = vpop.permute.xlu1 %2024 }
 0x27c   : > { %5706 = vmatpush3.bf16.xpose.msra.mxu0 %v2840_v6  ;;  %5707 = vmatprep.mubr.msk.bf16.mxu0 %vm6391_vm0, %v6390_v58  ;;  %v1401_v27 = vrot.slane %v1387_v23, %v6882_v31  ;;  %v1317_v59 = vrot.slane %v1303_v25, %v6882_v31  ;;  %v1333_v15 = vrot.slane %v1319_v56, %v6882_v31 }
 0x27d   : > { %5717 = vmatprep.subr.bf16.mxu0 %v6390_v58  ;;  %v1411_v49 = vpack.c.bf16 %v1403_v46, %v1335_v5  ;;  %v2005_v57 = vpack.c.bf16 %v1997_v13, %v1929_v52  ;;  %v2887_v35 = vsel %vm2600_vm1, %v2004_v29, 0  ;;  %v2046_v30 = vcombine.low %v6842_v3, %v2023_v33 }
 0x27e   : > { %v1336_v43 = vcombine.low %v1317_v59, %v1333_v15  ;;  %v1404_v42 = vcombine.low %v1385_v12, %v1401_v27  ;;  %v1337_v61 = vcombine.high %v1317_v59, %v1333_v15  ;;  %v1405_v14 = vcombine.high %v1385_v12, %v1401_v27 }
 0x27f   : > { %v2934_v34 = vsel %vm2600_vm1, %v2005_v57, 0  ;;  %v2047_v53 = vcombine.high %v6842_v3, %v2023_v33  ;;  %v2054_v22 = vrot.slane %v2046_v30, %v6873_v17  ;;  %v2062_v50 = vcombine.low %v2011_v51, %v2035_v16  ;;  %v2037_v41 = vpop.permute.xlu1 %2036 }
 0x280   : > { %v1412_v54 = vpack.c.bf16 %v1404_v42, %v1336_v43  ;;  %v2063_v45 = vcombine.high %v2011_v51, %v2035_v16  ;;  %v1413_v0 = vpack.c.bf16 %v1405_v14, %v1337_v61  ;;  %v2114_v11 = vcombine.low %v6846_v7, %v2025_v55 }
 0x281   : > { %5702 = vmatmul.mubr.msk.bf16.vlgmr.msra.gmra.mrb[8].mxu1 %vm2600_vm1, %v1410_v21  ;;  %v2061_v47 = vrot.slane %v2047_v53, %v6873_v17  ;;  %v2115_v18 = vcombine.high %v6846_v7, %v2025_v55  ;;  %v2070_v3 = vrot.slane %v2062_v50, %v6873_v17  ;;  %v2130_v7 = vcombine.low %v2013_v26, %v2037_v41 }
 0x282   : > { %5712 = vmatpush3.bf16.xpose.msra.mxu1 %v2887_v35  ;;  %5713 = vmatprep.mubr.msk.bf16.mxu1 %vm6391_vm0, %v6390_v58  ;;  %v2077_v19 = vrot.slane %v2063_v45, %v6873_v17  ;;  %v2122_v48 = vrot.slane %v2114_v11, %v6873_v17  ;;  %v2131_v40 = vcombine.high %v2013_v26, %v2037_v41 }
 0x283   : > { %5723 = vmatprep.subr.bf16.mxu1 %v6390_v58  ;;  %5708 = vmatmul.mubr.msk.bf16.vlgmr.msra.gmra.mrb[20].mxu0 %vm2600_vm1, %v1411_v49  ;;  %v2078_v20 = vcombine.low %v2054_v22, %v2070_v3  ;;  %v2079_v62 = vcombine.high %v2054_v22, %v2070_v3  ;;  %v2129_v38 = vrot.slane %v2115_v18, %v6873_v17 }
 0x284   : > { %5718 = vmatpush3.bf16.xpose.msra.mxu0 %v2934_v34  ;;  %5719 = vmatprep.mubr.msk.bf16.mxu0 %vm6391_vm0, %v6390_v58  ;;  %v2094_v32 = vcombine.low %v2061_v47, %v2077_v19  ;;  %v2095_v44 = vcombine.high %v2061_v47, %v2077_v19  ;;  %v2138_v23 = vrot.slane %v2130_v7, %v6873_v17 }
 0x285   : > { %5729 = vmatprep.subr.bf16.mxu0 %v6390_v58  ;;  %v2086_v1 = vrot.slane %v2078_v20, %v6882_v31  ;;  %v2093_v60 = vrot.slane %v2079_v62, %v6882_v31  ;;  %v2145_v24 = vrot.slane %v2131_v40, %v6873_v17 }
 0x286   : > { %v2102_v28 = vrot.slane %v2094_v32, %v6882_v31  ;;  %v2109_v10 = vrot.slane %v2095_v44, %v6882_v31  ;;  %v2146_v4 = vcombine.low %v2122_v48, %v2138_v23  ;;  %v2147_v6 = vcombine.high %v2122_v48, %v2138_v23 }
 0x287   : > { %v2318_v2 = vcombine.low %v2086_v1, %v2093_v60  ;;  %v5436_v25 = vcombine.high %v2086_v1, %v2093_v60  ;;  %v2162_v46 = vcombine.low %v2129_v38, %v2145_v24  ;;  %v2163_v52 = vcombine.high %v2129_v38, %v2145_v24  ;;  %v7337_v24 = vld [vmem:[%s8021_s2 + $0x8] sm:$0xff] }
 0x288   : > { %v2334_v56 = vcombine.low %v2102_v28, %v2109_v10  ;;  %v5437_v5 = vcombine.high %v2102_v28, %v2109_v10  ;;  %v2154_v27 = vrot.slane %v2146_v4, %v6882_v31  ;;  %v2161_v59 = vrot.slane %v2147_v6, %v6882_v31  ;;  %v7332_v10 = vld [vmem:[%s8021_s2] sm:$0xff] }
 0x289   : > { %5714 = vmatmul.mubr.msk.bf16.vlgmr.msra.gmra.mrb[12].mxu1 %vm2600_vm1, %v1412_v54  ;;  %v2325_v13 = vrot.slane %v2318_v2, %v6873_v17  ;;  %v2333_v21 = vrot.slane %v5436_v25, %v6873_v17  ;;  %v2170_v15 = vrot.slane %v2162_v46, %v6882_v31  ;;  %v2177_v49 = vrot.slane %v2163_v52, %v6882_v31 }
 0x28a   : > { %5725 = vmatprep.mubr.msk.bf16.mxu1 %vm6391_vm0, %v6390_v58  ;;  %v2341_v29 = vrot.slane %v2334_v56, %v6873_v17  ;;  %v2349_v12 = vrot.slane %v5437_v5, %v6873_v17  ;;  %v2386_v51 = vcombine.low %v2154_v27, %v2161_v59  ;;  %v5438_v43 = vcombine.high %v2154_v27, %v2161_v59 }
 0x28b   : > { %5720 = vmatmul.mubr.msk.bf16.vlgmr.msra.gmra.mrb[24].mxu0 %vm2600_vm1, %v1413_v0  ;;  %v2350_v57 = vcombine.low %v2325_v13, %v2333_v21  ;;  %v2402_v42 = vcombine.low %v2170_v15, %v2177_v49  ;;  %v5439_v26 = vcombine.high %v2170_v15, %v2177_v49  ;;  %v2351_v3 = vcombine.high %v2325_v13, %v2333_v21 }
 0x28c   : > { %5731 = vmatprep.mubr.msk.bf16.mxu0 %vm6391_vm0, %v6390_v58  ;;  %v2366_v35 = vcombine.low %v2341_v29, %v2349_v12  ;;  %v2393_v34 = vrot.slane %v2386_v51, %v6873_v17  ;;  %v2401_v61 = vrot.slane %v5438_v43, %v6873_v17  ;;  %v2367_v19 = vcombine.high %v2341_v29, %v2349_v12 }
 0x28d   : > { %v2409_v14 = vrot.slane %v2402_v42, %v6873_v17  ;;  %v2417_v33 = vrot.slane %v5439_v26, %v6873_v17  ;;  %v2358_v30 = vrot.slane %v2350_v57, %v6882_v31  ;;  %v2365_v48 = vrot.slane %v2351_v3, %v6882_v31 }
 0x28e   : > { %v2374_v53 = vrot.slane %v2366_v35, %v6882_v31  ;;  %v2418_v54 = vcombine.low %v2393_v34, %v2401_v61  ;;  %v2419_v20 = vcombine.high %v2393_v34, %v2401_v61  ;;  %v2381_v38 = vrot.slane %v2367_v19, %v6882_v31 }
 0x28f   : > { %v2434_v16 = vcombine.low %v2409_v14, %v2417_v33  ;;  %v2435_v62 = vcombine.high %v2409_v14, %v2417_v33 }
 0x290   : > { %v2426_v22 = vrot.slane %v2418_v54, %v6882_v31  ;;  %v2382_v50 = vcombine.low %v2358_v30, %v2374_v53  ;;  %v2383_v0 = vcombine.high %v2358_v30, %v2374_v53  ;;  %v2433_v41 = vrot.slane %v2419_v20, %v6882_v31 }
 0x291   : > { %v2442_v45 = vrot.slane %v2434_v16, %v6882_v31  ;;  %v2449_v32 = vrot.slane %v2435_v62, %v6882_v31  ;;  %v2384_v44 = vcombine.low %v2365_v48, %v2381_v38  ;;  %v2385_v40 = vcombine.high %v2365_v48, %v2381_v38 }
 0x293   : > { %v2450_v47 = vcombine.low %v2426_v22, %v2442_v45  ;;  %v2451_v55 = vcombine.high %v2426_v22, %v2442_v45  ;;  %v2452_v7 = vcombine.low %v2433_v41, %v2449_v32  ;;  %v2453_v1 = vcombine.high %v2433_v41, %v2449_v32 }
 0x295   : > { %v2590_v11 = vpack.c.bf16 %v2450_v47, %v2382_v50  ;;  %v2591_v18 = vpack.c.bf16 %v2451_v55, %v2383_v0  ;;  %v7325_v60 = vpack.c.bf16 %v2452_v7, %v2384_v44  ;;  %v7327_v28 = vpack.c.bf16 %v2453_v1, %v2385_v40 }
 0x297   : > { %5724 = vmatpush3.bf16.msra.mxu1 %v2590_v11  ;;  %5730 = vmatpush3.bf16.msra.mxu0 %v2591_v18 }
 0x298   : > { %5735 = vmatprep.subr.bf16.mxu1 %v6390_v58  ;;  %5741 = vmatprep.subr.bf16.mxu0 %v6390_v58 }
 0x33b   : > { %v2641_v23 = vpop.f32.mrb[8].mxu0 }
 0x33c   : > { %v7340_v2 = vadd.f32 %v2641_v23, %v7332_v10  ;;  %v5679_v25 = vpop.f32.mrb[9].mxu0 }
 0x33d   : > { %v2735_v56 = vpop.f32.mrb[4].mxu1  ;;  %v2644_v5 = vpop.f32.mrb[10].mxu0 }
 0x33e   : > { %v7343_v4 = vadd.f32 %v2735_v56, %v7332_v10  ;;  %v5691_v6 = vpop.f32.mrb[5].mxu1  ;;  %v7346_v46 = vadd.f32 %v2644_v5, %v7337_v24  ;;  %v5680_v52 = vpop.f32.mrb[11].mxu0  ;;  %v2978_v13 = vsel %vm2977_vm2, %v7340_v2, -inf }
 0x33f   : > { %v2738_v21 = vpop.f32.mrb[6].mxu1  ;;  %2979 = vmax.xlane.f32.xlu0 %v2978_v13 }
 0x340   : > { %v7351_v29 = vadd.f32 %v2738_v21, %v7337_v24  ;;  %v5692_v12 = vpop.f32.mrb[7].mxu1  ;;  %v2981_v27 = vsel %vm2977_vm2, %v7346_v46, -inf  ;;  %v2990_v59 = vsel %vm2977_vm2, %v7343_v4, -inf }
 0x341   : > { %2982 = vmax.xlane.f32.xlu1 %v2981_v27 }
 0x342   : > { %v2993_v15 = vsel %vm2977_vm2, %v7351_v29, -inf }
 0x343   : > { %2991 = vmax.xlane.f32.xlu0 %v2990_v59  ;;  %v2688_v49 = vpop.f32.mrb[12].mxu0 }
 0x344   : > { %v7360_v57 = vadd.f32 %v2688_v49, %v7332_v10  ;;  %v5685_v35 = vpop.f32.mrb[13].mxu0  ;;  %v2015_v49 = vpop.permute.xlu1 %2014 }
 0x345   : > { %2994 = vmax.xlane.f32.xlu1 %v2993_v15  ;;  %v2691_v51 = vpop.f32.mrb[14].mxu0  ;;  %v7421_v35 = vpop.permute.xlu0 %2016 }
 0x346   : > { %v7363_v43 = vadd.f32 %v2691_v51, %v7337_v24  ;;  %v5686_v42 = vpop.f32.mrb[15].mxu0  ;;  %v2984_v26 = vsel %vm2977_vm2, %v7360_v57, -inf }
 0x347   : > { %2985 = vmax.xlane.f32.xlu0 %v2984_v26 }
 0x348   : > { %v2987_v34 = vsel %vm2977_vm2, %v7363_v43, -inf }
 0x349   : > { %v2039_v51 = vpop.permute.xlu0 %2038 }
 0x34b   : > { %2988 = vmax.xlane.f32.xlu0 %v2987_v34 }
 0x34e   : > { %v2782_v61 = vpop.f32.mrb[16].mxu0 }
 0x34f   : > { %v5697_v14 = vpop.f32.mrb[17].mxu0  ;;  %v7381_v18 = vadd.f32 %v2782_v61, %v7332_v10 }
 0x350   : > { %v2785_v33 = vpop.f32.mrb[18].mxu0 }
 0x351   : > { %v5698_v30 = vpop.f32.mrb[19].mxu0  ;;  %v7388_v38 = vadd.f32 %v2785_v33, %v7337_v24  ;;  %v2996_v32 = vsel %vm2977_vm2, %v7381_v18, -inf }
 0x353   : > { %v2999_v5 = vsel %vm2977_vm2, %v7388_v38, -inf }
 0x354   : > { %v2829_v53 = vpop.f32.mrb[8].mxu1 }
 0x355   : > { %v7370_v54 = vadd.f32 %v2829_v53, %v7332_v10  ;;  %v5703_v16 = vpop.f32.mrb[9].mxu1 }
 0x356   : > { %v2832_v22 = vpop.f32.mrb[10].mxu1  ;;  %v2876_v50 = vpop.f32.mrb[20].mxu0 }
 0x357   : > { %v7373_v45 = vadd.f32 %v2832_v22, %v7337_v24  ;;  %v5704_v0 = vpop.f32.mrb[11].mxu1  ;;  %v3002_v47 = vsel %vm2977_vm2, %v7370_v54, -inf  ;;  %v7378_v55 = vadd.f32 %v2876_v50, %v7332_v10  ;;  %v5709_v11 = vpop.f32.mrb[21].mxu0 }
 0x358   : > { %3003 = vmax.xlane.f32.xlu1 %v3002_v47  ;;  %v2879_v3 = vpop.f32.mrb[22].mxu0 }
 0x359   : > { %v3005_v19 = vsel %vm2977_vm2, %v7373_v45, -inf  ;;  %v5710_v20 = vpop.f32.mrb[23].mxu0  ;;  %v3008_v62 = vsel %vm2977_vm2, %v7378_v55, -inf  ;;  %v7401_v52 = vadd.f32 %v2879_v3, %v7337_v24 }
 0x35a   : > { %3006 = vmax.xlane.f32.xlu0 %v3005_v19 }
 0x35b   : > { %v3011_v12 = vsel %vm2977_vm2, %v7401_v52, -inf }
 0x35c   : > { %3009 = vmax.xlane.f32.xlu1 %v3008_v62  ;;  %v2923_v48 = vpop.f32.mrb[12].mxu1  ;;  %v2198_v62 = vcombine.low %v2015_v49, %v2039_v51 }
 0x35d   : > { %v5715_v41 = vpop.f32.mrb[13].mxu1  ;;  %v7396_v25 = vadd.f32 %v2923_v48, %v7332_v10 }
 0x35e   : > { %2997 = vmax.xlane.f32.xlu0 %v2996_v32  ;;  %v2926_v44 = vpop.f32.mrb[14].mxu1  ;;  %v2970_v7 = vpop.f32.mrb[24].mxu0  ;;  %v2199_v32 = vcombine.high %v2015_v49, %v2039_v51 }
 0x35f   : > { %v7393_v40 = vadd.f32 %v2926_v44, %v7337_v24  ;;  %v5716_v1 = vpop.f32.mrb[15].mxu1  ;;  %v5721_v23 = vpop.f32.mrb[25].mxu0  ;;  %v3014_v13 = vsel %vm2977_vm2, %v7396_v25, -inf  ;;  %v7406_v21 = vadd.f32 %v2970_v7, %v7332_v10 }
 0x360   : > { %v2973_v56 = vpop.f32.mrb[26].mxu0 }
 0x361   : > { %v5722_v6 = vpop.f32.mrb[27].mxu0  ;;  %v7411_v27 = vadd.f32 %v2973_v56, %v7337_v24  ;;  %v3020_v59 = vsel %vm2977_vm2, %v7406_v21, -inf  ;;  %v3017_v10 = vsel %vm2977_vm2, %v7393_v40, -inf  ;;  %v2027_v24 = vpop.permute.xlu1 %2026  ;;  %v2206_v56 = vrot.slane %v2198_v62, %v6873_v17 }
 0x362   : > { %3000 = vmax.xlane.f32.xlu0 %v2999_v5  ;;  %v2213_v6 = vrot.slane %v2199_v32, %v6873_v17 }
 0x363   : > { %v3023_v15 = vsel %vm2977_vm2, %v7411_v27, -inf }
 0x365   : > { %v7423_v42 = vpop.permute.xlu1 %2028 }
 0x366   : > { %3015 = vmax.xlane.f32.xlu0 %v3014_v13 }
 0x36a   : > { %3012 = vmax.xlane.f32.xlu0 %v3011_v12 }
 0x36d   : > { %2040 = vrot.lane.b32.xlu1 %v6852_v8, %s6389_s24 }
 0x36e   : > { %3021 = vmax.xlane.f32.xlu0 %v3020_v59 }
 0x372   : > { %3024 = vmax.xlane.f32.xlu0 %v3023_v15 }
 0x391   : > { %3018 = vmax.xlane.f32.xlu1 %v3017_v10 }
 0x3cc   : > { %v2980_v26 = vpop.xlane.xlu0 %2979 }
 0x3cd   : > { %v3026_v34 = vsub.f32 %v7340_v2, %v2980_v26 }
 0x3ce   : > { %v2983_v61 = vpop.xlane.xlu1 %2982 }
 0x3cf   : > { %v3042_v14 = vmul.f32 1.442695, %v3026_v34  ;;  %v3027_v33 = vsub.f32 %v7346_v46, %v2983_v61  ;;  %v2182_v46 = vcombine.low %v6860_v9, %v2027_v24 }
 0x3d0   : > { %v2992_v30 = vpop.xlane.xlu0 %2991 }
 0x3d1   : > { %6035 = vpow2.f32 %v3042_v14  ;;  %v3044_v53 = vmul.f32 1.442695, %v3027_v33  ;;  %v3030_v16 = vsub.f32 %v7343_v4, %v2992_v30  ;;  %v2190_v23 = vrot.slane %v2182_v46, %v6873_v17 }
 0x3d2   : > { %v2995_v22 = vpop.xlane.xlu1 %2994 }
 0x3d3   : > { %6037 = vpow2.f32 %v3044_v53  ;;  %v3050_v50 = vmul.f32 1.442695, %v3030_v16  ;;  %v3031_v0 = vsub.f32 %v7351_v29, %v2995_v22  ;;  %v2183_v29 = vcombine.high %v6860_v9, %v2027_v24 }
 0x3d4   : > { %v2986_v11 = vpop.xlane.xlu0 %2985  ;;  %v2214_v12 = vcombine.low %v2190_v23, %v2206_v56  ;;  %v2215_v59 = vcombine.high %v2190_v23, %v2206_v56 }
 0x3d5   : > { %6039 = vpow2.f32 %v3050_v50  ;;  %v3052_v47 = vmul.f32 1.442695, %v3031_v0  ;;  %v3028_v2 = vsub.f32 %v7360_v57, %v2986_v11  ;;  %v2197_v9 = vrot.slane %v2183_v29, %v6873_v17 }
 0x3d6   : > { %v2222_v34 = vrot.slane %v2214_v12, %v6882_v31  ;;  %v2229_v61 = vrot.slane %v2215_v59, %v6882_v31  ;;  %v2250_v50 = vcombine.low %v6852_v8, %v7423_v42 }
 0x3d7   : > { %6041 = vpow2.f32 %v3052_v47  ;;  %v3046_v3 = vmul.f32 1.442695, %v3028_v2  ;;  %v2230_v10 = vcombine.low %v2197_v9, %v2213_v6  ;;  %v2231_v49 = vcombine.high %v2197_v9, %v2213_v6 }
 0x3d8   : > { %v2989_v19 = vpop.xlane.xlu0 %2988  ;;  %v2454_v11 = vcombine.low %v2222_v34, %v2229_v61  ;;  %v5440_v2 = vcombine.high %v2222_v34, %v2229_v61 }
 0x3d9   : > { %6043 = vpow2.f32 %v3046_v3  ;;  %v3029_v4 = vsub.f32 %v7363_v43, %v2989_v19  ;;  %v2238_v16 = vrot.slane %v2230_v10, %v6882_v31  ;;  %v2245_v22 = vrot.slane %v2231_v49, %v6882_v31 }
 0x3da   : > { %v7474_v32 = vrot.slane %v5440_v2, %v6873_v17 }
 0x3db   : > { %v6036_v20 = vpop.eup %6035  ;;  %v3048_v44 = vmul.f32 1.442695, %v3029_v4  ;;  %v2470_v46 = vcombine.low %v2238_v16, %v2245_v22  ;;  %v5441_v62 = vcombine.high %v2238_v16, %v2245_v22 }
 0x3dc   : > { %v3074_v48 = vsel %vm2977_vm2, %v6036_v20, 0.0 }
 0x3dd   : > { %v6038_v41 = vpop.eup %6037  ;;  %3075 = vadd.xlane.f32.xlu1 %v3074_v48  ;;  %6045 = vpow2.f32 %v3048_v44 }
 0x3de   : > { %v3077_v7 = vsel %vm2977_vm2, %v6038_v41, 0.0  ;;  %v3122_v57 = vpack.c.bf16 %v6038_v41, %v6036_v20 }
 0x3df   : > { %v6040_v1 = vpop.eup %6039  ;;  %3078 = vadd.xlane.f32.xlu0 %v3077_v7 }
 0x3e0   : > { %5726 = vmatmul.mubr.msk.bf16.vlgmr.msra.gmra.mrb[16].mxu1 %vm2977_vm2, %v3122_v57  ;;  %v3086_v43 = vsel %vm2977_vm2, %v6040_v1, 0.0  ;;  %v7481_v57 = vrot.slane %v2470_v46, %v6873_v17 }
 0x3e1   : > { %v6042_v5 = vpop.eup %6041  ;;  %5736 = vmatpush3.bf16.msra.mxu1 %v7325_v60  ;;  %3087 = vadd.xlane.f32.xlu1 %v3086_v43 }
 0x3e2   : > { %v3089_v13 = vsel %vm2977_vm2, %v6042_v5, 0.0  ;;  %5737 = vmatprep.mubr.msk.bf16.mxu1 %vm6391_vm0, %v6390_v58  ;;  %5747 = vmatprep.subr.bf16.mxu1 %v6390_v58  ;;  %v3124_v60 = vpack.c.bf16 %v6042_v5, %v6040_v1  ;;  %v7484_v1 = vrot.slane %v5441_v62, %v6873_v17 }
 0x3e3   : > { %3090 = vadd.xlane.f32.xlu0 %v3089_v13  ;;  %v6044_v15 = vpop.eup %6043 }
 0x3e4   : > { %v3080_v26 = vsel %vm2977_vm2, %v6044_v15, 0.0 }
 0x3e5   : > { %v3004_v24 = vpop.xlane.xlu1 %3003  ;;  %3081 = vadd.xlane.f32.xlu1 %v3080_v26 }
 0x3e6   : > { %v3034_v51 = vsub.f32 %v7370_v54, %v3004_v24 }
 0x3e7   : > { %v3007_v14 = vpop.xlane.xlu0 %3006  ;;  %v6046_v53 = vpop.eup %6045 }
 0x3e8   : > { %v3058_v33 = vmul.f32 1.442695, %v3034_v51  ;;  %v3035_v30 = vsub.f32 %v7373_v45, %v3007_v14  ;;  %5738 = vmatmul.mubr.msk.bf16.vlgmr.msra.gmra.mrb[20].mxu1 %vm2977_vm2, %v3124_v60  ;;  %v3083_v47 = vsel %vm2977_vm2, %v6046_v53, 0.0  ;;  %v2251_v45 = vcombine.high %v6852_v8, %v7423_v42 }
 0x3e9   : > { %v3010_v54 = vpop.xlane.xlu1 %3009  ;;  %5749 = vmatprep.mubr.msk.bf16.mxu1 %vm6391_vm0, %v6390_v58  ;;  %3084 = vadd.xlane.f32.xlu0 %v3083_v47  ;;  %v3123_v3 = vpack.c.bf16 %v6046_v53, %v6044_v15  ;;  %v2258_v42 = vrot.slane %v2250_v50, %v6873_v17  ;;  %v2502_v51 = vcombine.low %v7481_v57, %v7484_v1 }
 0x3ea   : > { %6047 = vpow2.f32 %v3058_v33  ;;  %v3060_v0 = vmul.f32 1.442695, %v3035_v30  ;;  %v2265_v29 = vrot.slane %v2251_v45, %v6873_v17  ;;  %v3036_v9 = vsub.f32 %v7378_v55, %v3010_v54 }
 0x3eb   : > { %v2998_v19 = vpop.xlane.xlu0 %2997  ;;  %5732 = vmatmul.mubr.msk.bf16.vlgmr.msra.gmra.mrb[28].mxu0 %vm2977_vm2, %v3123_v3 }
 0x3ec   : > { %6049 = vpow2.f32 %v3060_v0  ;;  %v3032_v20 = vsub.f32 %v7381_v18, %v2998_v19  ;;  %5742 = vmatpush3.bf16.msra.mxu0 %v7327_v28  ;;  %5743 = vmatprep.mubr.msk.bf16.mxu0 %vm6391_vm0, %v6390_v58  ;;  %v7471_v18 = vrot.slane %v2454_v11, %v6873_v17  ;;  %v3062_v33 = vmul.f32 1.442695, %v3036_v9 }
 0x3ed   : > { %v2041_v4 = vpop.permute.xlu1 %2040  ;;  %5753 = vmatprep.subr.bf16.mxu0 %v6390_v58  ;;  %v2503_v11 = vcombine.high %v7481_v57, %v7484_v1 }
 0x3ee   : > { %v3054_v48 = vmul.f32 1.442695, %v3032_v20  ;;  %v2266_v41 = vcombine.low %v7421_v35, %v2041_v4  ;;  %v2267_v8 = vcombine.high %v7421_v35, %v2041_v4  ;;  %v2486_v12 = vcombine.low %v7471_v18, %v7474_v32 }
 0x3ef   : > { %v3001_v44 = vpop.xlane.xlu0 %3000 }
 0x3f0   : > { %6051 = vpow2.f32 %v3054_v48  ;;  %v2274_v28 = vrot.slane %v2266_v41, %v6873_v17  ;;  %v2281_v35 = vrot.slane %v2267_v8, %v6873_v17  ;;  %v3033_v7 = vsub.f32 %v7388_v38, %v3001_v44 }
 0x3f1   : > { %v2494_v45 = vrot.slane %v2486_v12, %v6882_v31  ;;  %v2510_v41 = vrot.slane %v2502_v51, %v6882_v31 }
 0x3f2   : > { %v2282_v23 = vcombine.low %v2258_v42, %v2274_v28  ;;  %v2283_v56 = vcombine.high %v2258_v42, %v2274_v28  ;;  %v2298_v43 = vcombine.low %v2265_v29, %v2281_v35  ;;  %v2299_v5 = vcombine.high %v2265_v29, %v2281_v35 }
 0x3f3   : > { %v3056_v6 = vmul.f32 1.442695, %v3033_v7  ;;  %v3016_v13 = vpop.xlane.xlu0 %3015  ;;  %v2518_v57 = vcombine.low %v2494_v45, %v2510_v41  ;;  %v2519_v1 = vcombine.high %v2494_v45, %v2510_v41 }
 0x3f4   : > { %v7489_v59 = vpop.eup %6047  ;;  %v2290_v38 = vrot.slane %v2282_v23, %v6882_v31  ;;  %v2297_v15 = vrot.slane %v2283_v56, %v6882_v31  ;;  %v2306_v10 = vrot.slane %v2298_v43, %v6882_v31  ;;  %v2313_v49 = vrot.slane %v2299_v5, %v6882_v31 }
 0x3f5   : > { %6053 = vpow2.f32 %v3056_v6  ;;  %v3038_v24 = vsub.f32 %v7396_v25, %v3016_v13  ;;  %v3098_v55 = vsel %vm2977_vm2, %v7489_v59, 0.0  ;;  %v2487_v25 = vcombine.high %v7471_v18, %v7474_v32 }
 0x3f6   : > { %v7500_v26 = vpop.eup %6049  ;;  %v2522_v60 = vcombine.low %v2290_v38, %v2297_v15  ;;  %v5442_v34 = vcombine.high %v2290_v38, %v2297_v15  ;;  %v2538_v61 = vcombine.low %v2306_v10, %v2313_v49  ;;  %v5443_v14 = vcombine.high %v2306_v10, %v2313_v49  ;;  %3099 = vadd.xlane.f32.xlu1 %v3098_v55 }
 0x3f7   : > { %v3066_v30 = vmul.f32 1.442695, %v3038_v24  ;;  %v3013_v53 = vpop.xlane.xlu0 %3012  ;;  %v3101_v16 = vsel %vm2977_vm2, %v7500_v26, 0.0  ;;  %v2501_v23 = vrot.slane %v2487_v25, %v6882_v31 }
 0x3f8   : > { %v2529_v22 = vrot.slane %v2522_v60, %v6873_v17  ;;  %v2537_v54 = vrot.slane %v5442_v34, %v6873_v17  ;;  %v2545_v50 = vrot.slane %v2538_v61, %v6873_v17  ;;  %v2553_v0 = vrot.slane %v5443_v14, %v6873_v17  ;;  %3102 = vadd.xlane.f32.xlu0 %v3101_v16 }
 0x3f9   : > { %6055 = vpow2.f32 %v3066_v30  ;;  %v3037_v47 = vsub.f32 %v7401_v52, %v3013_v53  ;;  %v8022_v53 = vmov 0  }
 0x3fa   : > { %v6052_v2 = vpop.eup %6051  ;;  %v2554_v3 = vcombine.low %v2529_v22, %v2537_v54  ;;  %v2570_v19 = vcombine.low %v2545_v50, %v2553_v0  ;;  %v2555_v20 = vcombine.high %v2529_v22, %v2537_v54  ;;  %v2571_v46 = vcombine.high %v2545_v50, %v2553_v0 }
 0x3fb   : > { %6057 = vpow2.f32 %v3062_v33  ;;  %v3064_v62 = vmul.f32 1.442695, %v3037_v47  ;;  %v3022_v4 = vpop.xlane.xlu0 %3021  ;;  %v3092_v48 = vsel %vm2977_vm2, %v6052_v2, 0.0 }
 0x3fc   : > { %v3040_v8 = vsub.f32 %v7406_v21, %v3022_v4  ;;  %3093 = vadd.xlane.f32.xlu1 %v3092_v48  ;;  %v2562_v52 = vrot.slane %v2554_v3, %v6882_v31  ;;  %v2578_v42 = vrot.slane %v2570_v19, %v6882_v31  ;;  %v2569_v29 = vrot.slane %v2555_v20, %v6882_v31 }
 0x3fd   : > { %6059 = vpow2.f32 %v3064_v62  ;;  %v2585_v18 = vrot.slane %v2571_v46, %v6882_v31  ;;  %v2517_v21 = vrot.slane %v2503_v11, %v6882_v31 }
 0x3fe   : > { %v3070_v32 = vmul.f32 1.442695, %v3040_v8  ;;  %v2586_v44 = vcombine.low %v2562_v52, %v2578_v42  ;;  %v2587_v28 = vcombine.high %v2562_v52, %v2578_v42 }
 0x3ff   : > { %v6054_v35 = vpop.eup %6053  ;;  %v3025_v7 = vpop.xlane.xlu0 %3024  ;;  %v2588_v13 = vcombine.low %v2569_v29, %v2585_v18  ;;  %v2520_v15 = vcombine.low %v2501_v23, %v2517_v21  ;;  %v2589_v55 = vcombine.high %v2569_v29, %v2585_v18  ;;  %v2521_v60 = vcombine.high %v2501_v23, %v2517_v21 }
 0x400   : > { %6061 = vpow2.f32 %v3070_v32  ;;  %v3041_v56 = vsub.f32 %v7411_v27, %v3025_v7  ;;  %v3095_v43 = vsel %vm2977_vm2, %v6054_v35, 0.0  ;;  %v3125_v5 = vpack.c.bf16 %v6054_v35, %v6052_v2 }
 0x401   : > { %3096 = vadd.xlane.f32.xlu0 %v3095_v43  ;;  %v2594_v9 = vpack.c.bf16 %v2586_v44, %v2518_v57  ;;  %v2595_v6 = vpack.c.bf16 %v2587_v28, %v2519_v1  ;;  %v3126_v27 = vpack.c.bf16 %v7500_v26, %v7489_v59  ;;  %v2596_v24 = vpack.c.bf16 %v2588_v13, %v2520_v15 }
 0x402   : > { %v3072_v12 = vmul.f32 1.442695, %v3041_v56  ;;  %5744 = vmatmul.mubr.msk.bf16.vlgmr.msra.gmra.mrb[32].mxu0 %vm2977_vm2, %v3125_v5  ;;  %v2597_v34 = vpack.c.bf16 %v2589_v55, %v2521_v60 }
 0x403   : > { %v6056_v38 = vpop.eup %6055  ;;  %5748 = vmatpush3.bf16.msra.mxu1 %v2594_v9  ;;  %5754 = vmatpush3.bf16.msra.mxu0 %v2595_v6 }
 0x404   : > { %6063 = vpow2.f32 %v3072_v12  ;;  %v3110_v10 = vsel %vm2977_vm2, %v6056_v38, 0.0  ;;  %5759 = vmatprep.subr.bf16.mxu1 %v6390_v58  ;;  %5755 = vmatprep.mubr.msk.bf16.mxu0 %vm6391_vm0, %v6390_v58 }
 0x405   : > { %v6058_v49 = vpop.eup %6057  ;;  %3111 = vadd.xlane.f32.xlu1 %v3110_v10  ;;  %5765 = vmatprep.subr.bf16.mxu0 %v6390_v58 }
 0x406   : > { %5750 = vmatmul.mubr.msk.bf16.vlgmr.msra.gmra.mrb[24].mxu1 %vm2977_vm2, %v3126_v27  ;;  %v3104_v59 = vsel %vm2977_vm2, %v6058_v49, 0.0 }
 0x407   : > { %v6060_v51 = vpop.eup %6059  ;;  %5760 = vmatpush3.bf16.msra.mxu1 %v2596_v24  ;;  %5761 = vmatprep.mubr.msk.bf16.mxu1 %vm6391_vm0, %v6390_v58 }
 0x408   : > { %v3127_v26 = vpack.c.bf16 %v6060_v51, %v6058_v49 }
 0x409   : > { %3105 = vadd.xlane.f32.xlu1 %v3104_v59 }
 0x40a   : > { %v6062_v61 = vpop.eup %6061  ;;  %5756 = vmatmul.mubr.msk.bf16.vlgmr.msra.gmra.mrb[36].mxu0 %vm2977_vm2, %v3127_v26 }
 0x40b   : > { %5766 = vmatpush3.bf16.msra.mxu0 %v2597_v34  ;;  %v3116_v14 = vsel %vm2977_vm2, %v6062_v61, 0.0  ;;  %5767 = vmatprep.mubr.msk.bf16.mxu0 %vm6391_vm0, %v6390_v58  ;;  %v3107_v58 = vsel %vm2977_vm2, %v6060_v51, 0.0 }
 0x40d   : > { %3117 = vadd.xlane.f32.xlu1 %v3116_v14 }
 0x40e   : > { %v6064_v33 = vpop.eup %6063 }
 0x40f   : > { %v3129_v30 = vpack.c.bf16 %v6064_v33, %v6062_v61  ;;  %v3119_v47 = vsel %vm2977_vm2, %v6064_v33, 0.0 }
 0x412   : > { %5768 = vmatmul.mubr.msk.bf16.vlgmr.msra.gmra.mrb[40].mxu0 %vm2977_vm2, %v3129_v30 }
 0x413   : > { %4552 = vmatprep.mubr.bf16.mxu0 %v8022_v53 }
 0x41e   : > { %v3019_v16 = vpop.xlane.xlu1 %3018 }
 0x41f   : > { %v3039_v25 = vsub.f32 %v7393_v40, %v3019_v16 }
 0x421   : > { %v3068_v22 = vmul.f32 1.442695, %v3039_v25 }
 0x423   : > { %6065 = vpow2.f32 %v3068_v22 }
 0x42d   : > { %v6066_v54 = vpop.eup %6065 }
 0x42e   : > { %v3113_v50 = vsel %vm2977_vm2, %v6066_v54, 0.0  ;;  %v3128_v0 = vpack.c.bf16 %v6066_v54, %v6056_v38 }
 0x42f   : > { %3114 = vadd.xlane.f32.xlu0 %v3113_v50 }
 0x430   : > { %5762 = vmatmul.mubr.msk.bf16.vlgmr.msra.gmra.mrb[28].mxu1 %vm2977_vm2, %v3128_v0 }
 0x433   : > { %3108 = vadd.xlane.f32.xlu0 %v3107_v58 }
 0x437   : > { %3120 = vadd.xlane.f32.xlu0 %v3119_v47 }
 0x46a   : > { %v3076_v45 = vpop.xlane.xlu1 %3075 }
 0x46b   : > { %6067 = vrcp.f32 %v3076_v45 }
 0x46c   : > { %v3079_v11 = vpop.xlane.xlu0 %3078 }
 0x46e   : > { %v3088_v2 = vpop.xlane.xlu1 %3087 }
 0x46f   : > { %6069 = vrcp.f32 %v3088_v2 }
 0x470   : > { %v3091_v40 = vpop.xlane.xlu0 %3090  ;;  %6071 = vrcp.f32 %v3079_v11 }
 0x471   : > { %6073 = vrcp.f32 %v3091_v40 }
 0x472   : > { %v3082_v57 = vpop.xlane.xlu1 %3081 }
 0x473   : > { %6075 = vrcp.f32 %v3082_v57 }
 0x475   : > { %v6068_v62 = vpop.eup %6067 }
 0x476   : > { %v3085_v43 = vpop.xlane.xlu0 %3084 }
 0x479   : > { %v6070_v4 = vpop.eup %6069 }
 0x47a   : > { %v6072_v41 = vpop.eup %6071 }
 0x47b   : > { %v6074_v29 = vpop.eup %6073 }
 0x47d   : > { %v6076_v49 = vpop.eup %6075 }
 0x483   : > { %v7548_v6 = vpop.xlane.xlu1 %3099 }
 0x485   : > { %v7550_v13 = vpop.xlane.xlu0 %3102 }
 0x489   : > { %v3094_v12 = vpop.xlane.xlu1 %3093 }
 0x48a   : > { %6077 = vrcp.f32 %v3094_v12 }
 0x48b   : > { %6079 = vrcp.f32 %v3085_v43 }
 0x48e   : > { %v3097_v38 = vpop.xlane.xlu0 %3096 }
 0x48f   : > { %6081 = vrcp.f32 %v3097_v38 }
 0x492   : > { %v7552_v15 = vpop.xlane.xlu1 %3111 }
 0x494   : > { %v6078_v55 = vpop.eup %6077 }
 0x495   : > { %v6080_v60 = vpop.eup %6079 }
 0x496   : > { %v3106_v27 = vpop.xlane.xlu1 %3105 }
 0x497   : > { %6083 = vrcp.f32 %v3106_v27 }
 0x499   : > { %v6082_v61 = vpop.eup %6081 }
 0x49a   : > { %v3118_v33 = vpop.xlane.xlu1 %3117 }
 0x4b3   : > { %v3167_v3 = vpop.f32.mrb[16].mxu1 }
 0x4b4   : > { %v5727_v19 = vpop.f32.mrb[17].mxu1  ;;  %v3498_v8 = vmul.f32 %v6068_v62, %v3167_v3 }
 0x4b5   : > { %v3170_v20 = vpop.f32.mrb[18].mxu1 }
 0x4b6   : > { %v5728_v46 = vpop.f32.mrb[19].mxu1  ;;  %v3499_v32 = vmul.f32 %v6072_v41, %v3170_v20 }
 0x4bb   : > { %v3255_v48 = vpop.f32.mrb[20].mxu1 }
 0x4bc   : > { %v3502_v52 = vmul.f32 %v6070_v4, %v3255_v48  ;;  %v5739_v42 = vpop.f32.mrb[21].mxu1  ;;  %v7554_v10 = vpop.xlane.xlu0 %3114 }
 0x4bd   : > { %v3258_v18 = vpop.f32.mrb[22].mxu1 }
 0x4be   : > { %v3514_v44 = vcombine.low %v3498_v8, %v3502_v52  ;;  %v3515_v28 = vcombine.high %v3498_v8, %v3502_v52  ;;  %v3503_v35 = vmul.f32 %v6074_v29, %v3258_v18  ;;  %v5740_v7 = vpop.f32.mrb[23].mxu1  ;;  %v3211_v1 = vpop.f32.mrb[28].mxu0 }
 0x4bf   : > { %v5733_v56 = vpop.f32.mrb[29].mxu0  ;;  %v3500_v59 = vmul.f32 %v6076_v49, %v3211_v1 }
 0x4c0   : > { %v3582_v23 = vcombine.low %v3499_v32, %v3503_v35  ;;  %v3583_v21 = vcombine.high %v3499_v32, %v3503_v35  ;;  %v3214_v5 = vpop.f32.mrb[30].mxu0  ;;  %v3109_v24 = vpop.xlane.xlu0 %3108  ;;  %v3522_v50 = vrot.slane %v3514_v44, %v6873_v17  ;;  %v3529_v0 = vrot.slane %v3515_v28, %v6873_v17 }
 0x4c1   : > { %v5734_v9 = vpop.f32.mrb[31].mxu0  ;;  %6085 = vrcp.f32 %v3109_v24  ;;  %v3501_v30 = vmul.f32 %v6080_v60, %v3214_v5  ;;  %v6084_v56 = vpop.eup %6083 }
 0x4c2   : > { %6087 = vrcp.f32 %v3118_v33  ;;  %v3590_v19 = vrot.slane %v3582_v23, %v6873_v17  ;;  %v3597_v8 = vrot.slane %v3583_v21, %v6873_v17 }
 0x4c4   : > { %v3121_v47 = vpop.xlane.xlu0 %3120 }
 0x4c5   : > { %6089 = vrcp.f32 %v3121_v47 }
 0x4c6   : > { %6091 = vrcp.f32 %v7548_v6 }
 0x4c7   : > { %6093 = vrcp.f32 %v7552_v15 }
 0x4c8   : > { %6095 = vrcp.f32 %v7550_v13 }
 0x4c9   : > { %6097 = vrcp.f32 %v7554_v10 }
 0x4cb   : > { %v6086_v27 = vpop.eup %6085 }
 0x4d5   : > { %v3299_v51 = vpop.f32.mrb[32].mxu0 }
 0x4d6   : > { %v3504_v26 = vmul.f32 %v6078_v55, %v3299_v51  ;;  %v5745_v34 = vpop.f32.mrb[33].mxu0 }
 0x4d7   : > { %v3302_v14 = vpop.f32.mrb[34].mxu0 }
 0x4d8   : > { %v3530_v16 = vcombine.low %v3500_v59, %v3504_v26  ;;  %v3531_v25 = vcombine.high %v3500_v59, %v3504_v26  ;;  %v3505_v22 = vmul.f32 %v6082_v61, %v3302_v14  ;;  %v5746_v54 = vpop.f32.mrb[35].mxu0 }
 0x4d9   : > { %v7558_v58 = vpop.f32.mrb[24].mxu1 }
 0x4da   : > { %v3538_v45 = vrot.slane %v3530_v16, %v6873_v17  ;;  %v3545_v11 = vrot.slane %v3531_v25, %v6873_v17  ;;  %v3598_v2 = vcombine.low %v3501_v30, %v3505_v22  ;;  %v3599_v40 = vcombine.high %v3501_v30, %v3505_v22  ;;  %v5751_v3 = vpop.f32.mrb[25].mxu1 }
 0x4db   : > { %v7563_v20 = vpop.f32.mrb[26].mxu1 }
 0x4dc   : > { %v3546_v46 = vcombine.low %v3522_v50, %v3538_v45  ;;  %v3547_v62 = vcombine.high %v3522_v50, %v3538_v45  ;;  %v3562_v4 = vcombine.low %v3529_v0, %v3545_v11  ;;  %v3563_v48 = vcombine.high %v3529_v0, %v3545_v11  ;;  %v5752_v41 = vpop.f32.mrb[27].mxu1  ;;  %v6088_v50 = vpop.eup %6087 }
 0x4dd   : > { %v3606_v52 = vrot.slane %v3598_v2, %v6873_v17  ;;  %v3613_v42 = vrot.slane %v3599_v40, %v6873_v17  ;;  %v3387_v29 = vpop.f32.mrb[36].mxu0 }
 0x4de   : > { %v3554_v18 = vrot.slane %v3546_v46, %v6882_v31  ;;  %v3561_v32 = vrot.slane %v3547_v62, %v6882_v31  ;;  %v3570_v44 = vrot.slane %v3562_v4, %v6882_v31  ;;  %v3577_v28 = vrot.slane %v3563_v48, %v6882_v31  ;;  %v5757_v35 = vpop.f32.mrb[37].mxu0  ;;  %v6090_v4 = vpop.eup %6089 }
 0x4df   : > { %v3614_v7 = vcombine.low %v3590_v19, %v3606_v52  ;;  %v3615_v57 = vcombine.high %v3590_v19, %v3606_v52  ;;  %v3630_v1 = vcombine.low %v3597_v8, %v3613_v42  ;;  %v3631_v23 = vcombine.high %v3597_v8, %v3613_v42  ;;  %v3390_v21 = vpop.f32.mrb[38].mxu0 }
 0x4e0   : > { %v3786_v43 = vcombine.low %v3554_v18, %v3561_v32  ;;  %v5460_v5 = vcombine.high %v3554_v18, %v3561_v32  ;;  %v3802_v9 = vcombine.low %v3570_v44, %v3577_v28  ;;  %v5461_v12 = vcombine.high %v3570_v44, %v3577_v28  ;;  %v5758_v38 = vpop.f32.mrb[39].mxu0 }
 0x4e1   : > { %v3622_v49 = vrot.slane %v3614_v7, %v6882_v31  ;;  %v3629_v24 = vrot.slane %v3615_v57, %v6882_v31  ;;  %v3638_v55 = vrot.slane %v3630_v1, %v6882_v31  ;;  %v3645_v51 = vrot.slane %v3631_v23, %v6882_v31  ;;  %v5947_v1 = vld [vmem:[%s6702_s26] sm:$0xff]   ;;  %v5948_v23 = vld [vmem:[%s6702_s26 + $0x8] sm:$0xff]  }
 0x4e2   : > { %v7576_v60 = vmul.f32 %v6084_v56, %v3387_v29  ;;  %v7578_v59 = vmul.f32 %v6086_v27, %v3390_v21  ;;  %v3793_v26 = vrot.slane %v3786_v43, %v6873_v17  ;;  %v3801_v34 = vrot.slane %v5460_v5, %v6873_v17  ;;  %5771 = vmatprep.subr.bf16.mxu1 %v5947_v1 }
 0x4e3   : > { %v3854_v61 = vcombine.low %v3622_v49, %v3629_v24  ;;  %v5462_v14 = vcombine.high %v3622_v49, %v3629_v24  ;;  %v3870_v33 = vcombine.low %v3638_v55, %v3645_v51  ;;  %v5463_v30 = vcombine.high %v3638_v55, %v3645_v51  ;;  %5772 = vmatpush3.bf16.msra.mxu1 %v5947_v1  ;;  %v5949_v51 = vld [vmem:[%s6702_s26 + $0x10] sm:$0xff]  }
 0x4e4   : > { %v3809_v16 = vrot.slane %v3802_v9, %v6873_v17  ;;  %v3817_v25 = vrot.slane %v5461_v12, %v6873_v17  ;;  %v3818_v22 = vcombine.low %v3793_v26, %v3801_v34  ;;  %v3819_v54 = vcombine.high %v3793_v26, %v3801_v34  ;;  %5773 = vmatprep.subr.bf16.mxu1 %v5948_v23  ;;  %v5950_v34 = vld [vmem:[%s6702_s26 + $0x18] sm:$0xff]  }
 0x4e5   : > { %v3475_v0 = vpop.f32.mrb[40].mxu0  ;;  %v3861_v47 = vrot.slane %v3854_v61, %v6873_v17  ;;  %v3869_v45 = vrot.slane %v5462_v14, %v6873_v17  ;;  %v3877_v11 = vrot.slane %v3870_v33, %v6873_v17  ;;  %v3885_v2 = vrot.slane %v5463_v30, %v6873_v17  ;;  %v5951_v33 = vld [vmem:[%s6702_s26 + $0x20] sm:$0xff]   ;;  %v5952_v30 = vld [vmem:[%s6702_s26 + $0x28] sm:$0xff]  }
 0x4e6   : > { %v7588_v40 = vmul.f32 %v6088_v50, %v3475_v0  ;;  %v5769_v3 = vpop.f32.mrb[41].mxu0  ;;  %v7591_v19 = vrot.slane %v3818_v22, %v6882_v31  ;;  %v3834_v46 = vcombine.low %v3809_v16, %v3817_v25  ;;  %v3833_v62 = vrot.slane %v3819_v54, %v6882_v31 }
 0x4e7   : > { %v3478_v48 = vpop.f32.mrb[42].mxu0  ;;  %v3886_v41 = vcombine.low %v3861_v47, %v3869_v45  ;;  %v3902_v8 = vcombine.low %v3877_v11, %v3885_v2  ;;  %v3835_v52 = vcombine.high %v3809_v16, %v3817_v25  ;;  %v3887_v42 = vcombine.high %v3861_v47, %v3869_v45  ;;  %5774 = vmatpush3.bf16.msra.mxu1 %v5948_v23  ;;  %v6092_v16 = vpop.eup %6091 }
 0x4e8   : > { %v3666_v29 = vcombine.low %v7576_v60, %v7588_v40  ;;  %v3667_v18 = vcombine.high %v7576_v60, %v7588_v40  ;;  %v7598_v32 = vmul.f32 %v6090_v4, %v3478_v48  ;;  %v5770_v44 = vpop.f32.mrb[43].mxu0  ;;  %v7601_v28 = vrot.slane %v3834_v46, %v6882_v31  ;;  %5775 = vmatprep.subr.bf16.mxu1 %v5949_v51  ;;  %v6094_v25 = vpop.eup %6093 }
 0x4e9   : > { %v7604_v35 = vrot.slane %v3886_v41, %v6882_v31  ;;  %v7607_v7 = vrot.slane %v3902_v8, %v6882_v31  ;;  %v3849_v57 = vrot.slane %v3835_v52, %v6882_v31  ;;  %v3901_v27 = vrot.slane %v3887_v42, %v6882_v31  ;;  %v6096_v54 = vpop.eup %6095 }
 0x4ea   : > { %v3734_v21 = vcombine.low %v7578_v59, %v7598_v32  ;;  %v3735_v56 = vcombine.high %v7578_v59, %v7598_v32  ;;  %v3850_v43 = vcombine.low %v7591_v19, %v7601_v28  ;;  %v3851_v5 = vcombine.high %v7591_v19, %v7601_v28  ;;  %v6098_v47 = vpop.eup %6097 }
 0x4eb   : > { %v3919_v9 = vcombine.high %v7604_v35, %v7607_v7  ;;  %v3918_v12 = vcombine.low %v7604_v35, %v7607_v7  ;;  %v3852_v38 = vcombine.low %v3833_v62, %v3849_v57  ;;  %v3903_v49 = vcombine.high %v3877_v11, %v3885_v2  ;;  %5776 = vmatpush3.bf16.msra.mxu1 %v5949_v51  ;;  %v7691_v7 = vld [vmem:[%s6725_s30] sm:$0x3f] }
 0x4ec   : > { %v3853_v55 = vcombine.high %v3833_v62, %v3849_v57  ;;  %5777 = vmatprep.subr.bf16.mxu1 %v5950_v34  ;;  %v3506_v50 = vmul.f32 %v6092_v16, %v7558_v58  ;;  %v3507_v15 = vmul.f32 %v6096_v54, %v7563_v20  ;;  %v3674_v10 = vrot.slane %v3666_v29, %v6873_v17 }
 0x4ed   : > { %v5885_v24 = vpack.i.bf16 %v3919_v9, %v3851_v5  ;;  %v3917_v60 = vrot.slane %v3903_v49, %v6882_v31  ;;  %v3681_v3 = vrot.slane %v3667_v18, %v6873_v17  ;;  %v3742_v20 = vrot.slane %v3734_v21, %v6873_v17 }
 0x4ee   : > { %v3749_v42 = vrot.slane %v3735_v56, %v6873_v17 }
 0x4ef   : > { %5886 = vrot.lane.b32.xlu1 %v5885_v24, %s6389_s24  ;;  %v3920_v59 = vcombine.low %v3901_v27, %v3917_v60  ;;  %v3921_v26 = vcombine.high %v3901_v27, %v3917_v60  ;;  %5778 = vmatpush3.bf16.msra.mxu1 %v5950_v34 }
 0x4f0   : > { %5779 = vmatprep.subr.bf16.mxu1 %v5951_v33 }
 0x4f1   : > { %v5890_v61 = vpack.i.bf16 %v3920_v59, %v3852_v38  ;;  %v7629_v14 = vpack.i.bf16 %v3921_v26, %v3853_v55 }
 0x4f3   : > { %5891 = vrot.lane.b32.xlu1 %v5890_v61, %s6387_s29  ;;  %5780 = vmatpush3.bf16.msra.mxu1 %v5951_v33 }
 0x4f4   : > { %5781 = vmatprep.subr.bf16.mxu1 %v5952_v30 }
 0x4f7   : > { %5782 = vmatpush3.bf16.msra.mxu1 %v5952_v30 }
 0x503   : > { %v3431_v22 = vpop.f32.mrb[28].mxu1 }
 0x504   : > { %v3510_v0 = vmul.f32 %v6094_v25, %v3431_v22  ;;  %v5763_v6 = vpop.f32.mrb[29].mxu1 }
 0x505   : > { %v3434_v45 = vpop.f32.mrb[30].mxu1  ;;  %v5953_v6 = vld [vmem:[%s6702_s26 + $0x30] sm:$0xff]  }
 0x506   : > { %v3650_v11 = vcombine.low %v3506_v50, %v3510_v0  ;;  %v3651_v2 = vcombine.high %v3506_v50, %v3510_v0  ;;  %v3511_v13 = vmul.f32 %v6098_v47, %v3434_v45  ;;  %v5764_v40 = vpop.f32.mrb[31].mxu1  ;;  %5783 = vmatprep.subr.bf16.mxu1 %v5953_v6 }
 0x507   : > { %5784 = vmatpush3.bf16.msra.mxu1 %v5953_v6 }
 0x508   : > { %v3658_v46 = vrot.slane %v3650_v11, %v6873_v17  ;;  %v3665_v62 = vrot.slane %v3651_v2, %v6873_v17  ;;  %v3718_v4 = vcombine.low %v3507_v15, %v3511_v13  ;;  %v3719_v58 = vcombine.high %v3507_v15, %v3511_v13 }
 0x50a   : > { %v3682_v48 = vcombine.low %v3658_v46, %v3674_v10  ;;  %v3683_v41 = vcombine.high %v3658_v46, %v3674_v10  ;;  %v3698_v8 = vcombine.low %v3665_v62, %v3681_v3  ;;  %v3699_v52 = vcombine.high %v3665_v62, %v3681_v3 }
 0x50b   : > { %v3726_v32 = vrot.slane %v3718_v4, %v6873_v17  ;;  %v3733_v29 = vrot.slane %v3719_v58, %v6873_v17 }
 0x50c   : > { %v3690_v18 = vrot.slane %v3682_v48, %v6882_v31  ;;  %v3697_v44 = vrot.slane %v3683_v41, %v6882_v31  ;;  %v3706_v57 = vrot.slane %v3698_v8, %v6882_v31  ;;  %v3713_v1 = vrot.slane %v3699_v52, %v6882_v31 }
 0x50d   : > { %v3750_v23 = vcombine.low %v3726_v32, %v3742_v20  ;;  %v3751_v5 = vcombine.high %v3726_v32, %v3742_v20  ;;  %v3766_v9 = vcombine.low %v3733_v29, %v3749_v42  ;;  %v3767_v38 = vcombine.high %v3733_v29, %v3749_v42  ;;  %v5954_v32 = vld [vmem:[%s6702_s26 + $0x38] sm:$0xff]   ;;  %s6394_s26 = smov [#allocation11]  }
 0x50e   : > { %v3922_v27 = vcombine.low %v3690_v18, %v3697_v44  ;;  %v5464_v21 = vcombine.high %v3690_v18, %v3697_v44  ;;  %v3938_v49 = vcombine.low %v3706_v57, %v3713_v1  ;;  %v5465_v56 = vcombine.high %v3706_v57, %v3713_v1  ;;  %5785 = vmatprep.subr.bf16.mxu1 %v5954_v32 }
 0x50f   : > { %v3758_v24 = vrot.slane %v3750_v23, %v6882_v31  ;;  %v3765_v55 = vrot.slane %v3751_v5, %v6882_v31  ;;  %v3774_v51 = vrot.slane %v3766_v9, %v6882_v31  ;;  %v3781_v60 = vrot.slane %v3767_v38, %v6882_v31  ;;  %5786 = vmatpush3.bf16.msra.mxu1 %v5954_v32  ;;  %v5957_v32 = vld [vmem:[%s6704_s1 + $0x4] ss:$16 sps:$4 sm:$0xff]  }
 0x510   : > { %v3929_v59 = vrot.slane %v3922_v27, %v6873_v17  ;;  %v3937_v26 = vrot.slane %v5464_v21, %v6873_v17  ;;  %v3945_v34 = vrot.slane %v3938_v49, %v6873_v17  ;;  %v3953_v61 = vrot.slane %v5465_v56, %v6873_v17  ;;  %4520 = vmatprep.subr.bf16.mxu0 %v5957_v32 }
 0x511   : > { %v3990_v33 = vcombine.low %v3758_v24, %v3765_v55  ;;  %v5466_v30 = vcombine.high %v3758_v24, %v3765_v55  ;;  %v4006_v16 = vcombine.low %v3774_v51, %v3781_v60  ;;  %v5467_v25 = vcombine.high %v3774_v51, %v3781_v60 }
 0x512   : > { %v3955_v22 = vcombine.high %v3929_v59, %v3937_v26  ;;  %v3971_v54 = vcombine.high %v3945_v34, %v3953_v61  ;;  %v3954_v50 = vcombine.low %v3929_v59, %v3937_v26  ;;  %v3970_v0 = vcombine.low %v3945_v34, %v3953_v61 }
 0x513   : > { %v3997_v47 = vrot.slane %v3990_v33, %v6873_v17  ;;  %v4005_v45 = vrot.slane %v5466_v30, %v6873_v17  ;;  %v4013_v15 = vrot.slane %v4006_v16, %v6873_v17  ;;  %v4021_v11 = vrot.slane %v5467_v25, %v6873_v17 }
 0x514   : > { %v3969_v2 = vrot.slane %v3955_v22, %v6882_v31  ;;  %v3985_v13 = vrot.slane %v3971_v54, %v6882_v31  ;;  %v3962_v40 = vrot.slane %v3954_v50, %v6882_v31  ;;  %v3978_v10 = vrot.slane %v3970_v0, %v6882_v31 }
 0x515   : > { %v4023_v3 = vcombine.high %v3997_v47, %v4005_v45  ;;  %v4039_v46 = vcombine.high %v4013_v15, %v4021_v11  ;;  %v4022_v62 = vcombine.low %v3997_v47, %v4005_v45  ;;  %v4038_v4 = vcombine.low %v4013_v15, %v4021_v11 }
 0x516   : > { %v3988_v58 = vcombine.low %v3969_v2, %v3985_v13  ;;  %v3986_v48 = vcombine.low %v3962_v40, %v3978_v10  ;;  %v3987_v41 = vcombine.high %v3962_v40, %v3978_v10  ;;  %v3989_v8 = vcombine.high %v3969_v2, %v3985_v13 }
 0x517   : > { %v4037_v17 = vrot.slane %v4023_v3, %v6882_v31  ;;  %v4053_v52 = vrot.slane %v4039_v46, %v6882_v31  ;;  %v4030_v20 = vrot.slane %v4022_v62, %v6882_v31  ;;  %v4046_v42 = vrot.slane %v4038_v4, %v6882_v31  ;;  %v6147_v62 = vld [vmem:[#allocation11] sm:$0xff] }
 0x519   : > { %v4056_v29 = vcombine.low %v4037_v17, %v4053_v52  ;;  %v4055_v18 = vcombine.high %v4030_v20, %v4046_v42  ;;  %v4054_v44 = vcombine.low %v4030_v20, %v4046_v42  ;;  %v4057_v57 = vcombine.high %v4037_v17, %v4053_v52  ;;  %v6150_v52 = vld [vmem:[#allocation11 + $0x18] sm:$0xff]  ;;  %v5955_v42 = vld [vmem:[%s6704_s1] ss:$16 sps:$4 sm:$0xff]  }
 0x51a   : > { %4521 = vmatpush1.bf16.msra.mxu0 %v5955_v42 }
 0x51b   : > { %v5905_v1 = vpack.i.bf16 %v4056_v29, %v3988_v58  ;;  %v5895_v23 = vpack.i.bf16 %v4055_v18, %v3987_v41  ;;  %v5910_v5 = vpack.i.bf16 %v4057_v57, %v3989_v8  ;;  %v6148_v58 = vld [vmem:[#allocation11 + $0x8] sm:$0xff]  ;;  %v6149_v8 = vld [vmem:[#allocation11 + $0x10] sm:$0xff] }
 0x51c   : > { %v5958_v29 = vld [vmem:[%s6704_s1 + $0x8] ss:$16 sps:$4 sm:$0xff]   ;;  %v5960_v18 = vld [vmem:[%s6704_s1 + $0xc] ss:$16 sps:$4 sm:$0xff]  }
 0x51d   : > { %5906 = vrot.lane.b32.xlu1 %v5905_v1, %s6387_s29  ;;  %5896 = vrot.lane.b32.xlu0 %v5895_v23, %s6389_s24  ;;  %v5966_v57 = vld [vmem:[%s6704_s1 + $0x2c] ss:$16 sps:$4 sm:$0xff]   ;;  %v5961_v1 = vld [vmem:[%s6704_s1 + $0x20] ss:$16 sps:$4 sm:$0xff]  }
 0x51e   : > { %4573 = vmatprep.subr.bf16.mxu1 %v5960_v18  ;;  %v5964_v23 = vld [vmem:[%s6704_s1 + $0x28] ss:$16 sps:$4 sm:$0xff]  }
 0x521   : > { %5911 = vrot.lane.b32.xlu1 %v5910_v5, %s6388_s14  ;;  %5901 = vrot.lane.b32.xlu0 %v7629_v14, %s6388_s14 }
 0x561   : > { %v5887_v31 = vpop.permute.xlu1 %5886 }
 0x562   : > { %v5889_v38 = vunpack.i.h.bf16 %v5887_v31  ;;  %v5888_v27 = vunpack.i.l.bf16 %v5887_v31 }
 0x564   : > { %v4106_v14 = vsel %vm2600_vm1, %v3850_v43, %v5888_v27  ;;  %v4107_v61 = vsel %vm2600_vm1, %v3918_v12, %v5889_v38  ;;  %v4141_v12 = vrot.slane %v7691_v7, %v6764_v39 }
 0x565   : > { %v5892_v9 = vpop.permute.xlu1 %5891 }
 0x566   : > { %v5894_v55 = vunpack.i.h.bf16 %v5892_v9  ;;  %v5893_v51 = vunpack.i.l.bf16 %v5892_v9 }
 0x568   : > { %v4111_v50 = vsel %vm4110_vm3, %v4106_v14, %v5893_v51  ;;  %v4112_v0 = vsel %vm4110_vm3, %v4107_v61, %v5894_v55  ;;  %v5967_v61 = vld [vmem:[%s6704_s1 + $0x40] ss:$16 sps:$4 sm:$0xff]  }
 0x58f   : > { %v5907_v21 = vpop.permute.xlu1 %5906  ;;  %v5897_v49 = vpop.permute.xlu0 %5896 }
 0x590   : > { %v5899_v56 = vunpack.i.h.bf16 %v5897_v49  ;;  %v5898_v24 = vunpack.i.l.bf16 %v5897_v49  ;;  %v5909_v60 = vunpack.i.h.bf16 %v5907_v21  ;;  %v5908_v59 = vunpack.i.l.bf16 %v5907_v21 }
 0x592   : > { %v4108_v26 = vsel %vm2600_vm1, %v3986_v48, %v5898_v24  ;;  %v4109_v34 = vsel %vm2600_vm1, %v4054_v44, %v5899_v56  ;;  %v5963_v44 = vld [vmem:[%s6704_s1 + $0x24] ss:$16 sps:$4 sm:$0xff]  }
 0x593   : > { %v5912_v33 = vpop.permute.xlu1 %5911  ;;  %v5902_v30 = vpop.permute.xlu0 %5901  ;;  %v4113_v6 = vsel %vm4110_vm3, %v4108_v26, %v5908_v59  ;;  %v4114_v47 = vsel %vm4110_vm3, %v4109_v34, %v5909_v60  ;;  %4522 = vmatprep.subr.bf16.mxu0 %v5963_v44 }
 0x594   : > { %v5914_v16 = vunpack.i.h.bf16 %v5912_v33  ;;  %v5913_v25 = vunpack.i.l.bf16 %v5912_v33  ;;  %v5904_v22 = vunpack.i.h.bf16 %v5902_v30  ;;  %v5903_v54 = vunpack.i.l.bf16 %v5902_v30  ;;  %4523 = vmatpush1.bf16.msra.mxu0 %v5961_v1  ;;  %v5969_v33 = vld [vmem:[%s6704_s1 + $0x44] ss:$16 sps:$4 sm:$0xff]   ;;  %v5970_v30 = vld [vmem:[%s6704_s1 + $0x48] ss:$16 sps:$4 sm:$0xff]  }
 0x595   : > { %4524 = vmatprep.subr.bf16.mxu0 %v5969_v33  ;;  %v6006_v33 = vld [vmem:[%s6727_s20 + $0x80] sm:$0xff]  }
 0x596   : > { %v4118_v19 = vsel %vm4115_vm4, %v4113_v6, %v5913_v25  ;;  %v4119_v28 = vsel %vm4115_vm4, %v4114_v47, %v5914_v16  ;;  %v4116_v43 = vsel %vm4115_vm4, %v4111_v50, %v5903_v54  ;;  %v4117_v45 = vsel %vm4115_vm4, %v4112_v0, %v5904_v22  ;;  %v5972_v16 = vld [vmem:[%s6704_s1 + $0x4c] ss:$16 sps:$4 sm:$0xff]   ;;  %v5975_v25 = vld [vmem:[%s6704_s1 + $0x64] ss:$16 sps:$4 sm:$0xff]   ;;  %v5973_v22 = vld [vmem:[%s6704_s1 + $0x60] ss:$16 sps:$4 sm:$0xff]  }
 0x597   : > { %v4121_v15 = vpack.c.bf16 %v4119_v28, %v4118_v19  ;;  %v4120_v35 = vpack.c.bf16 %v4117_v45, %v4116_v43  ;;  %v5978_v54 = vld [vmem:[%s6704_s1 + $0x6c] ss:$16 sps:$4 sm:$0xff]   ;;  %v5976_v50 = vld [vmem:[%s6704_s1 + $0x68] ss:$16 sps:$4 sm:$0xff]   ;;  %v5981_v0 = vld [vmem:[%s6704_s1 + $0x84] ss:$16 sps:$4 sm:$0xff]  }
 0x598   : > { %4525 = vmatpush1.bf16.msra.mxu0 %v5967_v61  ;;  %v5984_v6 = vld [vmem:[%s6704_s1 + $0x8c] ss:$16 sps:$4 sm:$0xff]   ;;  %v5979_v47 = vld [vmem:[%s6704_s1 + $0x80] ss:$16 sps:$4 sm:$0xff]   ;;  %v5982_v19 = vld [vmem:[%s6704_s1 + $0x88] ss:$16 sps:$4 sm:$0xff]  }
 0x599   : > { %5787 = vmatprep.mubr.bf16.mxu1 %v4120_v35  ;;  %4526 = vmatprep.subr.bf16.mxu0 %v5975_v25  ;;  %v5987_v28 = vld [vmem:[%s6704_s1 + $0xa4] ss:$16 sps:$4 sm:$0xff]   ;;  %v5990_v43 = vld [vmem:[%s6704_s1 + $0xac] ss:$16 sps:$4 sm:$0xff]   ;;  %v5985_v45 = vld [vmem:[%s6704_s1 + $0xa0] ss:$16 sps:$4 sm:$0xff]  }
 0x59a   : > { %5788 = vmatmul.mubr.bf16.vlgmr.msra.gmra.mrb[32].mxu1 %v4121_v15  ;;  %v5988_v15 = vld [vmem:[%s6704_s1 + $0xa8] ss:$16 sps:$4 sm:$0xff]   ;;  %v5993_v35 = vld [vmem:[%s6704_s1 + $0xc4] ss:$16 sps:$4 sm:$0xff]  }
 0x59b   : > { %4605 = vmatprep.mubr.bf16.mxu1 %v8022_v53  ;;  %4574 = vmatpush1.bf16.msra.mxu1 %v5958_v29  ;;  %v4291_v29 = vrot.slane %v7691_v7, %v6760_v37  ;;  %v6005_v61 = vld [vmem:[%s6727_s20] sm:$0xff]   ;;  %v6010_v25 = vld [vmem:[%s6727_s20 + $0x88] sm:$0xff]  }
 0x59c   : > { %4575 = vmatprep.subr.bf16.mxu1 %v5966_v57  ;;  %4527 = vmatpush1.bf16.msra.mxu0 %v5973_v22  ;;  %v6011_v22 = vld [vmem:[%s6727_s20 + $0x50] sm:$0xff]  }
 0x59d   : > { %4528 = vmatprep.subr.bf16.mxu0 %v5981_v0  ;;  %v6014_v0 = vld [vmem:[%s6727_s20 + $0x90] sm:$0xff]  }
 0x59f   : > { %4576 = vmatpush1.bf16.msra.mxu1 %v5964_v23 }
 0x5a0   : > { %4577 = vmatprep.subr.bf16.mxu1 %v5972_v16  ;;  %4529 = vmatpush1.bf16.msra.mxu0 %v5979_v47  ;;  %v6009_v16 = vld [vmem:[%s6727_s20 + $0x8] sm:$0xff]   ;;  %v6016_v47 = vld [vmem:[%s6727_s20 + $0xd8] sm:$0xff]  }
 0x5a1   : > { %4530 = vmatprep.subr.bf16.mxu0 %v5987_v28  ;;  %v6018_v28 = vld [vmem:[%s6727_s20 + $0x98] sm:$0xff]  }
 0x5a3   : > { %4578 = vmatpush1.bf16.msra.mxu1 %v5970_v30  ;;  %v6008_v30 = vld [vmem:[%s6727_s20 + $0xc8] sm:$0xff]  }
 0x5a4   : > { %4579 = vmatprep.subr.bf16.mxu1 %v5978_v54  ;;  %4531 = vmatpush1.bf16.msra.mxu0 %v5985_v45  ;;  %v6012_v54 = vld [vmem:[%s6727_s20 + $0xd0] sm:$0xff]   ;;  %v6020_v45 = vld [vmem:[%s6727_s20 + $0xe0] sm:$0xff]  }
 0x5a5   : > { %4532 = vmatprep.subr.bf16.mxu0 %v5993_v35  ;;  %v6022_v35 = vld [vmem:[%s6727_s20 + $0xa0] sm:$0xff]  }
 0x5a7   : > { %4580 = vmatpush1.bf16.msra.mxu1 %v5976_v50  ;;  %v6013_v50 = vld [vmem:[%s6727_s20 + $0x10] sm:$0xff]  }
 0x5a8   : > { %4581 = vmatprep.subr.bf16.mxu1 %v5984_v6  ;;  %v6015_v6 = vld [vmem:[%s6727_s20 + $0x58] sm:$0xff]  }
 0x5ab   : > { %4582 = vmatpush1.bf16.msra.mxu1 %v5982_v19  ;;  %v6017_v19 = vld [vmem:[%s6727_s20 + $0x18] sm:$0xff]  }
 0x5ac   : > { %4583 = vmatprep.subr.bf16.mxu1 %v5990_v43  ;;  %v6019_v43 = vld [vmem:[%s6727_s20 + $0x60] sm:$0xff]  }
 0x5af   : > { %4584 = vmatpush1.bf16.msra.mxu1 %v5988_v15  ;;  %v6021_v15 = vld [vmem:[%s6727_s20 + $0x20] sm:$0xff]  }
 0x66d   : > { %v5789_v11 = vpop.f32.mrb[32].mxu1 }
 0x66e   : > { %v4224_v2 = vpop.f32.mrb[33].mxu1  ;;  %v4233_v3 = vadd.f32 %v5789_v11, %v4141_v12  ;;  %v5991_v11 = vld [vmem:[%s6704_s1 + $0xc0] ss:$16 sps:$4 sm:$0xff]  }
 0x66f   : > { %v4225_v13 = vadd.f32 %v4224_v2, %v4141_v12  ;;  %v5790_v40 = vpop.f32.mrb[34].mxu1  ;;  %v5994_v2 = vld [vmem:[%s6704_s1 + $0xc8] ss:$16 sps:$4 sm:$0xff]   ;;  %4533 = vmatpush1.bf16.msra.mxu0 %v5991_v11 }
 0x670   : > { %v4227_v10 = vpop.f32.mrb[35].mxu1  ;;  %v4236_v41 = vadd.f32 %v5790_v40, %v4141_v12  ;;  %v4241_v17 = vadd.f32 %v6149_v8, %v4233_v3  ;;  %v6002_v40 = vld [vmem:[%s6704_s1 + $0xec] ss:$16 sps:$4 sm:$0xff]   ;;  %v6000_v3 = vld [vmem:[%s6704_s1 + $0xe8] ss:$16 sps:$4 sm:$0xff]  }
 0x671   : > { %v4228_v46 = vadd.f32 %v4227_v10, %v4141_v12  ;;  %v4239_v4 = vadd.f32 %v6147_v62, %v4225_v13  ;;  %v5996_v12 = vld [vmem:[%s6704_s1 + $0xcc] ss:$16 sps:$4 sm:$0xff]   ;;  %v5999_v13 = vld [vmem:[%s6704_s1 + $0xe4] ss:$16 sps:$4 sm:$0xff]   ;;  %v5997_v10 = vld [vmem:[%s6704_s1 + $0xe0] ss:$16 sps:$4 sm:$0xff]  }
 0x672   : > { %v4242_v20 = vadd.f32 %v6150_v52, %v4236_v41  ;;  %4585 = vmatprep.subr.bf16.mxu1 %v5996_v12  ;;  %4534 = vmatprep.subr.bf16.mxu0 %v5999_v13  ;;  %v6023_v12 = vld [vmem:[%s6727_s20 + $0x68] sm:$0xff]   ;;  %s5210_s1 = sshll.u32 %s6394_s26, 4  ;;  %s5211_s1 = int_to_ptr.vmem [resolvable:$true] %s5210_s1 }
 0x673   : > { %4243 = vadd.xlane.f32.xlu0 %v4239_v4  ;;  %v4240_v48 = vadd.f32 %v6148_v58, %v4228_v46  ;;  %4586 = vmatpush1.bf16.msra.mxu1 %v5994_v2  ;;  %v6024_v11 = vld [vmem:[%s6727_s20 + $0xe8] sm:$0xff]   ;;  %s6299_s13 = scalar_lea.vmem %s5211_s1, 512  ;;  %p6306_p10 = scmp.lt.s32.totalorder %s5211_s1, %s5211_s1 }
 0x674   : > { %4587 = vmatprep.subr.bf16.mxu1 %v6002_v40  ;;  %4535 = vmatpush1.bf16.msra.mxu0 %v5997_v10  ;;  %v6025_v2 = vld [vmem:[%s6727_s20 + $0x28] sm:$0xff]   ;;  %v6027_v40 = vld [vmem:[%s6727_s20 + $0x70] sm:$0xff]   ;;  %p6300_p6 = scmp.ne.s32.totalorder %s5211_s1, %s6299_s13  ;;  %p6307_p12 = scmp.lt.s32.totalorder %s6299_s13, %s6299_s13 }
 0x675   : > { %4245 = vadd.xlane.f32.xlu1 %v4240_v48  ;;  %v6026_v13 = vld [vmem:[%s6727_s20 + $0xa8] sm:$0xff]   ;;  %v6028_v10 = vld [vmem:[%s6727_s20 + $0xf0] sm:$0xff]  }
 0x676   : > { %p6301_p7 = pnand %p6300_p6, %p5831_p11  ;;  %p6308_p1 = por %p6307_p12, %p6306_p10 }
 0x677   : > { %4247 = vadd.xlane.f32.xlu0 %v4241_v17  ;;  %4588 = vmatpush1.bf16.msra.mxu1 %v6000_v3  ;;  %v6029_v3 = vld [vmem:[%s6727_s20 + $0x30] sm:$0xff]  }
 0x678   : > { %p6302_p8 = pneg %p6301_p7 }
 0x67a   : > { %p6309_p9 = pnand %p6308_p1, %p6302_p8 }
 0x67b   : > { %4249 = vadd.xlane.f32.xlu0 %v4242_v20 }
 0x700   : > { %v4244_v5 = vpop.xlane.xlu0 %4243 }
 0x701   : > { %v4252_v31 = vmul.f32 0.0078125, %v4244_v5  ;;  %v4299_v5 = vrot.slane %v7691_v7, %v6839_v63 }
 0x702   : > { %v4246_v9 = vpop.xlane.xlu1 %4245 }
 0x703   : > { %v7703_v38 = vsub.f32 %v4239_v4, %v4252_v31  ;;  %v4253_v27 = vmul.f32 0.0078125, %v4246_v9 }
 0x704   : > { %v4248_v21 = vpop.xlane.xlu0 %4247 }
 0x705   : > { %v7705_v49 = vsub.f32 %v4240_v48, %v4253_v27  ;;  %v4254_v56 = vmul.f32 0.0078125, %v4248_v21  ;;  %v4260_v24 = vmul.f32 %v7703_v38, %v7703_v38 }
 0x707   : > { %v7709_v55 = vsub.f32 %v4241_v17, %v4254_v56  ;;  %4264 = vadd.xlane.f32.xlu1 %v4260_v24  ;;  %v4261_v51 = vmul.f32 %v7705_v49, %v7705_v49 }
 0x708   : > { %v4250_v60 = vpop.xlane.xlu0 %4249 }
 0x709   : > { %v4255_v59 = vmul.f32 0.0078125, %v4250_v60  ;;  %4266 = vadd.xlane.f32.xlu0 %v4261_v51  ;;  %v4262_v26 = vmul.f32 %v7709_v55, %v7709_v55 }
 0x70b   : > { %v7715_v34 = vsub.f32 %v4242_v20, %v4255_v59  ;;  %4268 = vadd.xlane.f32.xlu1 %v4262_v26 }
 0x70d   : > { %v4263_v14 = vmul.f32 %v7715_v34, %v7715_v34 }
 0x70f   : > { %4270 = vadd.xlane.f32.xlu0 %v4263_v14  ;;  %v6004_v14 = vld [vmem:[%s6727_s20 + $0xc0] sm:$0xff]  }
 0x710   : > { %5627 = vmatprep.subr.bf16.mxu1 %v6004_v14 }
 0x794   : > { %v4265_v46 = vpop.xlane.xlu1 %4264 }
 0x795   : > { %v4272_v62 = vmul.f32 0.0078125, %v4265_v46  ;;  %v6030_v46 = vld [vmem:[%s6727_s20 + $0xb0] sm:$0xff]  }
 0x796   : > { %v4267_v4 = vpop.xlane.xlu0 %4266 }
 0x797   : > { %v4276_v58 = vadd.f32 1e-05, %v4272_v62  ;;  %v4273_v48 = vmul.f32 0.0078125, %v4267_v4  ;;  %v6031_v62 = vld [vmem:[%s6727_s20 + $0x78] sm:$0xff]  }
 0x798   : > { %v4269_v41 = vpop.xlane.xlu1 %4268  ;;  %v6032_v4 = vld [vmem:[%s6727_s20 + $0xf8] sm:$0xff]  }
 0x799   : > { %6099 = vrsqrt.f32 %v4276_v58  ;;  %v4277_v8 = vadd.f32 1e-05, %v4273_v48  ;;  %v4274_v17 = vmul.f32 0.0078125, %v4269_v41  ;;  %v6033_v58 = vld [vmem:[%s6727_s20 + $0x38] sm:$0xff]   ;;  %v4304_v41 = vld [vmem:[%s6715_s22] sm:$0xf] }
 0x79a   : > { %v6034_v48 = vld [vmem:[%s6727_s20 + $0xb8] sm:$0xff]  }
 0x79b   : > { %6101 = vrsqrt.f32 %v4277_v8  ;;  %v4278_v52 = vadd.f32 1e-05, %v4274_v17  ;;  %v7799_v8 = vrot.slane %v4304_v41, %v6764_v39  ;;  %v7802_v17 = vrot.slane %v4304_v41, %v6839_v63 }
 0x79c   : > { %v4271_v20 = vpop.xlane.xlu0 %4270 }
 0x79d   : > { %6103 = vrsqrt.f32 %v4278_v52  ;;  %v4275_v42 = vmul.f32 0.0078125, %v4271_v20  ;;  %v4354_v52 = vsub.s32 3, %v6757_v36 }
 0x79f   : > { %v4279_v32 = vadd.f32 1e-05, %v4275_v42  ;;  %v7812_v39 = vrot.slane %v4304_v41, %v4354_v52 }
 0x7a1   : > { %6105 = vrsqrt.f32 %v4279_v32  ;;  %v7806_v32 = vrot.slane %v4304_v41, %v6760_v37 }
 0x7a3   : > { %v6100_v18 = vpop.eup %6099 }
 0x7a4   : > { %v4284_v44 = vmul.f32 %v6100_v18, %v7703_v38 }
 0x7a5   : > { %v6102_v57 = vpop.eup %6101 }
 0x7a6   : > { %v4285_v1 = vmul.f32 %v6102_v57, %v7705_v49  ;;  %v4292_v23 = vmul.f32 %v4291_v29, %v4284_v44 }
 0x7a7   : > { %v6104_v31 = vpop.eup %6103 }
 0x7a8   : > { %v4293_v9 = vmul.f32 %v4291_v29, %v4285_v1  ;;  %v7749_v27 = vadd.f32 %v4299_v5, %v4292_v23  ;;  %v4286_v56 = vmul.f32 %v6104_v31, %v7709_v55 }
 0x7aa   : > { %v7751_v21 = vadd.f32 %v4299_v5, %v4293_v9  ;;  %v4294_v51 = vmul.f32 %v4291_v29, %v4286_v56 }
 0x7ab   : > { %v6106_v24 = vpop.eup %6105 }
 0x7ac   : > { %v4305_v38 = vpack.c.bf16 %v7751_v21, %v7749_v27  ;;  %v4287_v49 = vmul.f32 %v6106_v24, %v7715_v34  ;;  %v7761_v59 = vadd.f32 %v4299_v5, %v4294_v51  ;;  %v6003_v34 = vld [vmem:[%s6727_s20 + $0x40] sm:$0xff]  }
 0x7ad   : > { %5599 = vmatprep.subr.bf16.mxu0 %v6003_v34 }
 0x7ae   : > { %4553 = vmatmul.mubr.bf16.vlgmr.msra.gmra.mrb[44].mxu0 %v4305_v38  ;;  %4606 = vmatmul.mubr.bf16.vlgmr.msra.gmra.mrb[36].mxu1 %v4305_v38  ;;  %v4295_v60 = vmul.f32 %v4291_v29, %v4287_v49 }
 0x7af   : > { %4562 = vmatprep.mubr.bf16.mxu0 %v8022_v53  ;;  %4615 = vmatprep.mubr.bf16.mxu1 %v8022_v53  ;;  %v6007_v53 = vld [vmem:[%s6727_s20 + $0x48] sm:$0xff]  }
 0x7b0   : > { %v7759_v55 = vadd.f32 %v4299_v5, %v4295_v60  ;;  %5600 = vmatpush3.bf16.msra.mxu0 %v6005_v61  ;;  %5628 = vmatpush3.bf16.msra.mxu1 %v6006_v33 }
 0x7b1   : > { %5601 = vmatprep.subr.bf16.mxu0 %v6007_v53  ;;  %5629 = vmatprep.subr.bf16.mxu1 %v6008_v30 }
 0x7b2   : > { %v4306_v26 = vpack.c.bf16 %v7759_v55, %v7761_v59 }
 0x7b4   : > { %5602 = vmatpush3.bf16.msra.mxu0 %v6009_v16  ;;  %5630 = vmatpush3.bf16.msra.mxu1 %v6010_v25 }
 0x7b5   : > { %5603 = vmatprep.subr.bf16.mxu0 %v6011_v22  ;;  %5631 = vmatprep.subr.bf16.mxu1 %v6012_v54 }
 0x7b6   : > { %4563 = vmatmul.mubr.bf16.gmra.mrb[48].mxu0 %v4306_v26  ;;  %4616 = vmatmul.mubr.bf16.gmra.mrb[40].mxu1 %v4306_v26 }
 0x7b8   : > { %5604 = vmatpush3.bf16.msra.mxu0 %v6013_v50  ;;  %5632 = vmatpush3.bf16.msra.mxu1 %v6014_v0 }
 0x7b9   : > { %5605 = vmatprep.subr.bf16.mxu0 %v6015_v6  ;;  %5633 = vmatprep.subr.bf16.mxu1 %v6016_v47 }
 0x7bc   : > { %5606 = vmatpush3.bf16.msra.mxu0 %v6017_v19  ;;  %5634 = vmatpush3.bf16.msra.mxu1 %v6018_v28 }
 0x7bd   : > { %5607 = vmatprep.subr.bf16.mxu0 %v6019_v43  ;;  %5635 = vmatprep.subr.bf16.mxu1 %v6020_v45 }
 0x7c0   : > { %5608 = vmatpush3.bf16.msra.mxu0 %v6021_v15  ;;  %5636 = vmatpush3.bf16.msra.mxu1 %v6022_v35 }
 0x7c1   : > { %5609 = vmatprep.subr.bf16.mxu0 %v6023_v12  ;;  %5637 = vmatprep.subr.bf16.mxu1 %v6024_v11 }
 0x7c4   : > { %5610 = vmatpush3.bf16.msra.mxu0 %v6025_v2  ;;  %5638 = vmatpush3.bf16.msra.mxu1 %v6026_v13 }
 0x7c5   : > { %5611 = vmatprep.subr.bf16.mxu0 %v6027_v40  ;;  %5639 = vmatprep.subr.bf16.mxu1 %v6028_v10 }
 0x7c8   : > { %5612 = vmatpush3.bf16.msra.mxu0 %v6029_v3  ;;  %5640 = vmatpush3.bf16.msra.mxu1 %v6030_v46 }
 0x7c9   : > { %5613 = vmatprep.subr.bf16.mxu0 %v6031_v62  ;;  %5641 = vmatprep.subr.bf16.mxu1 %v6032_v4 }
 0x7cc   : > { %5614 = vmatpush3.bf16.msra.mxu0 %v6033_v58  ;;  %5642 = vmatpush3.bf16.msra.mxu1 %v6034_v48 }
 0x881   : > { %v4554_v20 = vpop.f32.mrb[44].mxu0  ;;  %v4607_v42 = vpop.f32.mrb[36].mxu1 }
 0x882   : > { %v4555_v29 = vadd.f32 %v4554_v20, %v7799_v8  ;;  %v4608_v18 = vadd.f32 %v4607_v42, %v7802_v17  ;;  %v4556_v44 = vpop.f32.mrb[45].mxu0  ;;  %v4609_v57 = vpop.f32.mrb[37].mxu1 }
 0x883   : > { %v4558_v1 = vpop.f32.mrb[46].mxu0  ;;  %v4611_v63 = vpop.f32.mrb[38].mxu1  ;;  %v7815_v31 = vadd.f32 %v4556_v44, %v7806_v32  ;;  %v7825_v60 = vadd.f32 %v4609_v57, %v7812_v39 }
 0x884   : > { %v4642_v23 = vmul.f32 0.044715, %v4555_v29  ;;  %v4644_v5 = vmul.f32 0.044715, %v4608_v18  ;;  %v4559_v37 = vadd.f32 %v4558_v1, %v7799_v8  ;;  %v7819_v9 = vadd.f32 %v4611_v63, %v7802_v17  ;;  %v4560_v56 = vpop.f32.mrb[47].mxu0  ;;  %v4613_v24 = vpop.f32.mrb[39].mxu1 }
 0x885   : > { %v7822_v51 = vadd.f32 %v4560_v56, %v7806_v32  ;;  %v7828_v34 = vadd.f32 %v4613_v24, %v7812_v39  ;;  %v7830_v14 = vmul.f32 0.5, %v4555_v29  ;;  %v4643_v30 = vmul.f32 0.044715, %v7815_v31 }
 0x886   : > { %v4658_v38 = vmul.f32 %v4642_v23, %v4555_v29  ;;  %v4660_v49 = vmul.f32 %v4644_v5, %v4608_v18  ;;  %v4646_v26 = vmul.f32 0.044715, %v4559_v37  ;;  %v4648_v53 = vmul.f32 0.044715, %v7819_v9 }
 0x887   : > { %v4647_v25 = vmul.f32 0.044715, %v7822_v51  ;;  %v7835_v0 = vmul.f32 0.5, %v4608_v18  ;;  %v4645_v43 = vmul.f32 0.044715, %v7825_v60  ;;  %v4659_v46 = vmul.f32 %v4643_v30, %v7815_v31 }
 0x888   : > { %v4674_v61 = vmul.f32 %v4658_v38, %v4555_v29  ;;  %v4676_v33 = vmul.f32 %v4660_v49, %v4608_v18  ;;  %v4662_v16 = vmul.f32 %v4646_v26, %v4559_v37  ;;  %v4664_v47 = vmul.f32 %v4648_v53, %v7819_v9 }
 0x889   : > { %v4564_v22 = vpop.f32.mrb[48].mxu0  ;;  %v4617_v54 = vpop.f32.mrb[40].mxu1  ;;  %v4649_v15 = vmul.f32 0.044715, %v7828_v34  ;;  %v4663_v4 = vmul.f32 %v4647_v25, %v7822_v51  ;;  %v4661_v42 = vmul.f32 %v4645_v43, %v7825_v60  ;;  %v4675_v23 = vmul.f32 %v4659_v46, %v7815_v31 }
 0x88a   : > { %v4690_v50 = vadd.f32 %v4674_v61, %v4555_v29  ;;  %v4692_v6 = vadd.f32 %v4676_v33, %v4608_v18  ;;  %v4566_v19 = vpop.f32.mrb[49].mxu0  ;;  %v4619_v28 = vpop.f32.mrb[41].mxu1  ;;  %v4678_v45 = vmul.f32 %v4662_v16, %v4559_v37  ;;  %v7841_v35 = vadd.f32 %v4564_v22, %v7799_v8 }
 0x88b   : > { %v4568_v12 = vpop.f32.mrb[50].mxu0  ;;  %v4621_v11 = vpop.f32.mrb[42].mxu1  ;;  %v4680_v40 = vmul.f32 %v4664_v47, %v7819_v9  ;;  %v7847_v58 = vadd.f32 %v4617_v54, %v7802_v17  ;;  %v7852_v20 = vadd.f32 %v4566_v19, %v7806_v32  ;;  %v4665_v18 = vmul.f32 %v4649_v15, %v7828_v34 }
 0x88c   : > { %v4706_v2 = vmul.f32 0.7978846, %v4690_v50  ;;  %v4708_v13 = vmul.f32 0.7978846, %v4692_v6  ;;  %v4570_v10 = vpop.f32.mrb[51].mxu0  ;;  %v4623_v3 = vpop.f32.mrb[43].mxu1  ;;  %v4694_v62 = vadd.f32 %v4678_v45, %v4559_v37  ;;  %v7858_v1 = vadd.f32 %v4619_v28, %v7812_v39 }
 0x88d   : > { %v4696_v48 = vadd.f32 %v4680_v40, %v7819_v9  ;;  %v4650_v41 = vmul.f32 0.044715, %v7841_v35  ;;  %v4651_v57 = vmul.f32 0.044715, %v7852_v20  ;;  %v7861_v63 = vadd.f32 %v4568_v12, %v7799_v8 }
 0x88e   : > { %6107 = vtanh.f32 %v4706_v2  ;;  %v4710_v29 = vmul.f32 0.7978846, %v4694_v62  ;;  %v4679_v5 = vmul.f32 %v4663_v4, %v7822_v51  ;;  %v7866_v56 = vadd.f32 %v4621_v11, %v7802_v17 }
 0x88f   : > { %6109 = vtanh.f32 %v4708_v13  ;;  %v4712_v44 = vmul.f32 0.7978846, %v4696_v48  ;;  %v4666_v24 = vmul.f32 %v4650_v41, %v7841_v35  ;;  %v4652_v38 = vmul.f32 0.044715, %v7847_v58 }
 0x890   : > { %6111 = vtanh.f32 %v4710_v29  ;;  %v4653_v49 = vmul.f32 0.044715, %v7858_v1  ;;  %v4630_v26 = vmul.f32 0.5, %v4559_v37  ;;  %v4667_v61 = vmul.f32 %v4651_v57, %v7852_v20 }
 0x891   : > { %6113 = vtanh.f32 %v4712_v44  ;;  %v7873_v8 = vadd.f32 %v4570_v10, %v7806_v32  ;;  %v7876_v33 = vadd.f32 %v4623_v3, %v7812_v39  ;;  %v4677_v53 = vmul.f32 %v4661_v42, %v7825_v60 }
 0x892   : > { %v4681_v17 = vmul.f32 %v4665_v18, %v7828_v34  ;;  %v4654_v30 = vmul.f32 0.044715, %v7861_v63  ;;  %v4656_v16 = vmul.f32 0.044715, %v7866_v56  ;;  %v4669_v25 = vmul.f32 %v4653_v49, %v7858_v1 }
 0x893   : > { %v4655_v37 = vmul.f32 0.044715, %v7873_v8  ;;  %v4657_v22 = vmul.f32 0.044715, %v7876_v33  ;;  %v4691_v32 = vadd.f32 %v4675_v23, %v7815_v31  ;;  %v4632_v54 = vmul.f32 0.5, %v7819_v9 }
 0x894   : > { %v4682_v39 = vmul.f32 %v4666_v24, %v7841_v35  ;;  %v4668_v50 = vmul.f32 %v4652_v38, %v7847_v58  ;;  %v4695_v6 = vadd.f32 %v4679_v5, %v7822_v51  ;;  %v4683_v47 = vmul.f32 %v4667_v61, %v7852_v20 }
 0x895   : > { %v4671_v19 = vmul.f32 %v4655_v37, %v7873_v8  ;;  %v4673_v28 = vmul.f32 %v4657_v22, %v7876_v33  ;;  %v4707_v43 = vmul.f32 0.7978846, %v4691_v32  ;;  %v4670_v15 = vmul.f32 %v4654_v30, %v7861_v63 }
 0x896   : > { %v4711_v12 = vmul.f32 0.7978846, %v4695_v6  ;;  %v4693_v11 = vadd.f32 %v4677_v53, %v7825_v60  ;;  %v4697_v9 = vadd.f32 %v4681_v17, %v7828_v34  ;;  %v4685_v13 = vmul.f32 %v4669_v25, %v7858_v1 }
 0x897   : > { %v4672_v40 = vmul.f32 %v4656_v16, %v7866_v56  ;;  %v4687_v10 = vmul.f32 %v4671_v19, %v7873_v8  ;;  %6115 = vtanh.f32 %v4707_v43  ;;  %v4684_v48 = vmul.f32 %v4668_v50, %v7847_v58 }
 0x898   : > { %v6108_v45 = vpop.eup %6107  ;;  %6117 = vtanh.f32 %v4711_v12  ;;  %v4709_v3 = vmul.f32 0.7978846, %v4693_v11  ;;  %v4713_v46 = vmul.f32 0.7978846, %v4697_v9  ;;  %v4689_v41 = vmul.f32 %v4673_v28, %v7876_v33 }
 0x899   : > { %v6110_v2 = vpop.eup %6109  ;;  %v4738_v62 = vadd.f32 1.0, %v6108_v45  ;;  %v4699_v29 = vadd.f32 %v4683_v47, %v7852_v20  ;;  %v4686_v44 = vmul.f32 %v4670_v15, %v7861_v63  ;;  %v4703_v23 = vadd.f32 %v4687_v10, %v7873_v8 }
 0x89a   : > { %v6112_v4 = vpop.eup %6111  ;;  %v4740_v42 = vadd.f32 1.0, %v6110_v2  ;;  %6119 = vtanh.f32 %v4709_v3  ;;  %v4688_v5 = vmul.f32 %v4672_v40, %v7866_v56  ;;  %v4701_v17 = vadd.f32 %v4685_v13, %v7858_v1 }
 0x89b   : > { %v6114_v18 = vpop.eup %6113  ;;  %v4742_v57 = vadd.f32 1.0, %v6112_v4  ;;  %6121 = vtanh.f32 %v4713_v46  ;;  %v4715_v38 = vmul.f32 0.7978846, %v4699_v29  ;;  %v4754_v49 = vmul.f32 %v4738_v62, %v7830_v14 }
 0x89c   : > { %v4744_v24 = vadd.f32 1.0, %v6114_v18  ;;  %v4719_v53 = vmul.f32 0.7978846, %v4703_v23  ;;  %v4756_v30 = vmul.f32 %v4740_v42, %v7835_v0  ;;  %v4705_v25 = vadd.f32 %v4689_v41, %v7876_v33 }
 0x89d   : > { %v4758_v61 = vmul.f32 %v4742_v57, %v4630_v26  ;;  %6123 = vtanh.f32 %v4715_v38  ;;  %v4717_v22 = vmul.f32 0.7978846, %v4701_v17  ;;  %v4698_v6 = vadd.f32 %v4682_v39, %v7841_v35 }
 0x89e   : > { %v4760_v16 = vmul.f32 %v4744_v24, %v4632_v54  ;;  %6125 = vtanh.f32 %v4719_v53  ;;  %v4721_v50 = vmul.f32 0.7978846, %v4705_v25  ;;  %v4702_v47 = vadd.f32 %v4686_v44, %v7861_v63 }
 0x89f   : > { %v4770_v37 = vpack.c.bf16 %v4758_v61, %v4754_v49  ;;  %6127 = vtanh.f32 %v4717_v22  ;;  %v4700_v14 = vadd.f32 %v4684_v48, %v7847_v58  ;;  %v4714_v19 = vmul.f32 0.7978846, %v4698_v6 }
 0x8a0   : > { %v4772_v32 = vpack.c.bf16 %v4760_v16, %v4756_v30  ;;  %6129 = vtanh.f32 %v4721_v50  ;;  %v4718_v0 = vmul.f32 0.7978846, %v4702_v47  ;;  %v4704_v54 = vadd.f32 %v4688_v5, %v7866_v56 }
 0x8a1   : > { %v6116_v26 = vpop.eup %6115  ;;  %v4627_v43 = vmul.f32 0.5, %v7815_v31  ;;  %v4716_v15 = vmul.f32 0.7978846, %v4700_v14  ;;  %v4631_v12 = vmul.f32 0.5, %v7822_v51  ;;  %6131 = vtanh.f32 %v4714_v19 }
 0x8a2   : > { %v6118_v28 = vpop.eup %6117  ;;  %v4739_v45 = vadd.f32 1.0, %v6116_v26  ;;  %v4720_v39 = vmul.f32 0.7978846, %v4704_v54  ;;  %6133 = vtanh.f32 %v4718_v0  ;;  %v4629_v3 = vmul.f32 0.5, %v7825_v60 }
 0x8a3   : > { %v4743_v11 = vadd.f32 1.0, %v6118_v28  ;;  %6135 = vtanh.f32 %v4716_v15  ;;  %v4633_v46 = vmul.f32 0.5, %v7828_v34  ;;  %v4635_v29 = vmul.f32 0.5, %v7852_v20 }
 0x8a4   : > { %v6120_v9 = vpop.eup %6119  ;;  %v4755_v13 = vmul.f32 %v4739_v45, %v4627_v43  ;;  %6137 = vtanh.f32 %v4720_v39  ;;  %v4639_v18 = vmul.f32 0.5, %v7873_v8  ;;  %v4637_v38 = vmul.f32 0.5, %v7858_v1 }
 0x8a5   : > { %v6122_v2 = vpop.eup %6121  ;;  %v4759_v40 = vmul.f32 %v4743_v11, %v4631_v12  ;;  %v4741_v10 = vadd.f32 1.0, %v6120_v9  ;;  %v4641_v49 = vmul.f32 0.5, %v7876_v33  ;;  %v4638_v22 = vmul.f32 0.5, %v7861_v63 }
 0x8a6   : > { %v4745_v62 = vadd.f32 1.0, %v6122_v2  ;;  %v4636_v1 = vmul.f32 0.5, %v7847_v58  ;;  %v4845_v63 = vrot.slane %v7691_v7, %v4354_v52 }
 0x8a7   : > { %v6124_v31 = vpop.eup %6123  ;;  %v4771_v4 = vpack.c.bf16 %v4759_v40, %v4755_v13  ;;  %v4757_v51 = vmul.f32 %v4741_v10, %v4629_v3 }
 0x8a8   : > { %v6126_v48 = vpop.eup %6125  ;;  %v4761_v41 = vmul.f32 %v4745_v62, %v4633_v46  ;;  %v4747_v42 = vadd.f32 1.0, %v6124_v31 }
 0x8a9   : > { %5070 = vmatprep.mubr.bf16.mxu0 %v4771_v4  ;;  %v4751_v44 = vadd.f32 1.0, %v6126_v48  ;;  %v6128_v57 = vpop.eup %6127 }
 0x8aa   : > { %v4773_v23 = vpack.c.bf16 %v4761_v41, %v4757_v51  ;;  %5071 = vmatmul.mubr.bf16.vlgmr.msra.gmra.mrb[52].mxu0 %v4770_v37  ;;  %v6130_v60 = vpop.eup %6129  ;;  %v4763_v5 = vmul.f32 %v4747_v42, %v4635_v29  ;;  %v4749_v24 = vadd.f32 1.0, %v6128_v57  ;;  %v4634_v37 = vmul.f32 0.5, %v7841_v35 }
 0x8ab   : > { %v4767_v34 = vmul.f32 %v4751_v44, %v4639_v18  ;;  %v4753_v61 = vadd.f32 1.0, %v6130_v60  ;;  %v6132_v53 = vpop.eup %6131 }
 0x8ac   : > { %5119 = vmatprep.mubr.bf16.mxu1 %v4773_v23  ;;  %v6134_v20 = vpop.eup %6133  ;;  %v4765_v30 = vmul.f32 %v4749_v24, %v4637_v38  ;;  %v4746_v16 = vadd.f32 1.0, %v6132_v53 }
 0x8ad   : > { %5120 = vmatmul.mubr.bf16.vlgmr.msra.gmra.mrb[44].mxu1 %v4772_v32  ;;  %v4775_v17 = vpack.c.bf16 %v4767_v34, %v4763_v5  ;;  %v4769_v8 = vmul.f32 %v4753_v61, %v4641_v49  ;;  %v6136_v25 = vpop.eup %6135  ;;  %v4750_v50 = vadd.f32 1.0, %v6134_v20  ;;  %v4640_v32 = vmul.f32 0.5, %v7866_v56 }
 0x8ae   : > { %v6138_v6 = vpop.eup %6137  ;;  %v4748_v33 = vadd.f32 1.0, %v6136_v25  ;;  %v4762_v14 = vmul.f32 %v4746_v16, %v4634_v37 }
 0x8af   : > { %5078 = vmatprep.mubr.bf16.mxu0 %v4775_v17  ;;  %v4777_v47 = vpack.c.bf16 %v4769_v8, %v4765_v30  ;;  %v4766_v26 = vmul.f32 %v4750_v50, %v4638_v22  ;;  %v4752_v19 = vadd.f32 1.0, %v6138_v6 }
 0x8b0   : > { %v4764_v54 = vmul.f32 %v4748_v33, %v4636_v1 }
 0x8b1   : > { %5127 = vmatprep.mubr.bf16.mxu1 %v4777_v47  ;;  %v4774_v0 = vpack.c.bf16 %v4766_v26, %v4762_v14  ;;  %v4768_v28 = vmul.f32 %v4752_v19, %v4640_v32 }
 0x8b3   : > { %5079 = vmatmul.mubr.bf16.gmra.mrb[56].mxu0 %v4774_v0  ;;  %v4776_v43 = vpack.c.bf16 %v4768_v28, %v4764_v54  ;;  %v5186_v54 = vsub.s32 4, %v6757_v36 }
 0x8b5   : > { %5128 = vmatmul.mubr.bf16.gmra.mrb[48].mxu1 %v4776_v43 }
 0x97d   : > { %v5615_v35 = vpop.f32.mrb[52].mxu0 }
 0x97e   : > { %v5616_v45 = vpop.f32.mrb[53].mxu0 }
 0x97f   : > { %v5617_v58 = vadd.f32 %v5616_v45, %v5615_v35  ;;  %v5618_v15 = vpop.f32.mrb[54].mxu0  ;;  %v5194_v35 = vsub.s32 5, %v6757_v36 }
 0x980   : > { %v5643_v12 = vpop.f32.mrb[44].mxu1  ;;  %v5619_v11 = vpop.f32.mrb[55].mxu0 }
 0x981   : > { %v5073_v39 = vadd.f32 %v5617_v58, %v4845_v63  ;;  %v5644_v56 = vpop.f32.mrb[45].mxu1  ;;  %v5620_v9 = vadd.f32 %v5619_v11, %v5618_v15  ;;  %v5187_v15 = vrot.slane %v7691_v7, %v5186_v54 }
 0x982   : > { %v5645_v2 = vadd.f32 %v5644_v56, %v5643_v12  ;;  %v5646_v13 = vpop.f32.mrb[46].mxu1 }
 0x983   : > { %v5076_v40 = vadd.f32 %v5620_v9, %v4845_v63  ;;  %v5647_v10 = vpop.f32.mrb[47].mxu1 }
 0x984   : > { %v5122_v3 = vadd.f32 %v5645_v2, %v5073_v39  ;;  %v5648_v46 = vadd.f32 %v5647_v10, %v5646_v13  ;;  %v5195_v39 = vrot.slane %v7691_v7, %v5194_v35 }
 0x986   : > { %v5125_v62 = vadd.f32 %v5648_v46, %v5076_v40  ;;  %v5136_v31 = vadd.f32 %v5122_v3, %v7749_v27  ;;  %v5621_v4 = vpop.f32.mrb[56].mxu0 }
 0x987   : > { %v5622_v48 = vpop.f32.mrb[57].mxu0 }
 0x988   : > { %5140 = vadd.xlane.f32.xlu1 %v5136_v31  ;;  %v5137_v52 = vadd.f32 %v5125_v62, %v7751_v21  ;;  %v5649_v51 = vpop.f32.mrb[48].mxu1  ;;  %v5623_v41 = vadd.f32 %v5622_v48, %v5621_v4  ;;  %v5624_v42 = vpop.f32.mrb[58].mxu0 }
 0x989   : > { %v5650_v29 = vpop.f32.mrb[49].mxu1  ;;  %v5625_v18 = vpop.f32.mrb[59].mxu0 }
 0x98a   : > { %5142 = vadd.xlane.f32.xlu0 %v5137_v52  ;;  %v5081_v44 = vadd.f32 %v5623_v41, %v4845_v63  ;;  %v5651_v57 = vadd.f32 %v5650_v29, %v5649_v51  ;;  %v5652_v23 = vpop.f32.mrb[50].mxu1  ;;  %v5626_v60 = vadd.f32 %v5625_v18, %v5624_v42 }
 0x98b   : > { %v5653_v5 = vpop.f32.mrb[51].mxu1 }
 0x98c   : > { %v5130_v34 = vadd.f32 %v5651_v57, %v5081_v44  ;;  %v5084_v24 = vadd.f32 %v5626_v60, %v4845_v63  ;;  %v5654_v38 = vadd.f32 %v5653_v5, %v5652_v23 }
 0x98e   : > { %v5133_v27 = vadd.f32 %v5654_v38, %v5084_v24  ;;  %v5138_v49 = vadd.f32 %v5130_v34, %v7761_v59 }
 0x990   : > { %5144 = vadd.xlane.f32.xlu1 %v5138_v49  ;;  %v5139_v21 = vadd.f32 %v5133_v27, %v7759_v55 }
 0x992   : > { %5146 = vadd.xlane.f32.xlu0 %v5139_v21 }
 0xa15   : > { %v5141_v61 = vpop.xlane.xlu1 %5140 }
 0xa16   : > { %v5148_v53 = vmul.f32 0.0078125, %v5141_v61 }
 0xa17   : > { %v5143_v17 = vpop.xlane.xlu0 %5142 }
 0xa18   : > { %v5152_v20 = vsub.f32 %v5136_v31, %v5148_v53  ;;  %v5149_v30 = vmul.f32 0.0078125, %v5143_v17 }
 0xa1a   : > { %v5153_v8 = vsub.f32 %v5137_v52, %v5149_v30  ;;  %v5156_v16 = vmul.f32 %v5152_v20, %v5152_v20 }
 0xa1c   : > { %5160 = vadd.xlane.f32.xlu1 %v5156_v16  ;;  %v5157_v25 = vmul.f32 %v5153_v8, %v5153_v8 }
 0xa1d   : > { %v5145_v37 = vpop.xlane.xlu1 %5144 }
 0xa1e   : > { %5162 = vadd.xlane.f32.xlu0 %v5157_v25  ;;  %v5150_v22 = vmul.f32 0.0078125, %v5145_v37 }
 0xa1f   : > { %v5147_v50 = vpop.xlane.xlu0 %5146 }
 0xa20   : > { %v5154_v6 = vsub.f32 %v5138_v49, %v5150_v22  ;;  %v5151_v47 = vmul.f32 0.0078125, %v5147_v50 }
 0xa22   : > { %v5155_v59 = vsub.f32 %v5139_v21, %v5151_v47  ;;  %v5158_v1 = vmul.f32 %v5154_v6, %v5154_v6 }
 0xa24   : > { %5164 = vadd.xlane.f32.xlu1 %v5158_v1  ;;  %v5159_v55 = vmul.f32 %v5155_v59, %v5155_v59 }
 0xa26   : > { %5166 = vadd.xlane.f32.xlu0 %v5159_v55 }
 0xaa9   : > { %v5161_v33 = vpop.xlane.xlu1 %5160 }
 0xaaa   : > { %v5168_v14 = vmul.f32 0.0078125, %v5161_v33 }
 0xaab   : > { %v5163_v26 = vpop.xlane.xlu0 %5162 }
 0xaac   : > { %v5172_v32 = vadd.f32 1e-05, %v5168_v14  ;;  %v5169_v19 = vmul.f32 0.0078125, %v5163_v26 }
 0xaae   : > { %6139 = vrsqrt.f32 %v5172_v32  ;;  %v5173_v0 = vadd.f32 1e-05, %v5169_v19 }
 0xab0   : > { %6141 = vrsqrt.f32 %v5173_v0 }
 0xab1   : > { %v5165_v28 = vpop.xlane.xlu1 %5164 }
 0xab2   : > { %v5170_v43 = vmul.f32 0.0078125, %v5165_v28 }
 0xab3   : > { %v5167_v63 = vpop.xlane.xlu0 %5166 }
 0xab4   : > { %v5174_v45 = vadd.f32 1e-05, %v5170_v43  ;;  %v5171_v58 = vmul.f32 0.0078125, %v5167_v63 }
 0xab6   : > { %6143 = vrsqrt.f32 %v5174_v45  ;;  %v5175_v11 = vadd.f32 1e-05, %v5171_v58 }
 0xab8   : > { %v6140_v12 = vpop.eup %6139  ;;  %6145 = vrsqrt.f32 %v5175_v11 }
 0xab9   : > { %v5180_v56 = vmul.f32 %v6140_v12, %v5152_v20 }
 0xaba   : > { %v6142_v9 = vpop.eup %6141 }
 0xabb   : > { %v5188_v2 = vmul.f32 %v5187_v15, %v5180_v56  ;;  %v5181_v13 = vmul.f32 %v6142_v9, %v5153_v8 }
 0xabd   : > { %v5196_v40 = vadd.f32 %v5195_v39, %v5188_v2  ;;  %v5189_v10 = vmul.f32 %v5187_v15, %v5181_v13 }
 0xabf   : > { %5200 = vst [vmem:[#allocation11] sm:$0xff] %v5196_v40  ;;  %v5197_v36 = vadd.f32 %v5195_v39, %v5189_v10 }
 0xac0   : > { %v6144_v3 = vpop.eup %6143 }
 0xac1   : > { %5201 = vst [vmem:[#allocation11 + $0x8] sm:$0xff] %v5197_v36  ;;  %v5182_v46 = vmul.f32 %v6144_v3, %v5154_v6 }
 0xac2   : > { %v6146_v62 = vpop.eup %6145 }
 0xac3   : > { %v5190_v31 = vmul.f32 %v5187_v15, %v5182_v46  ;;  %v5183_v4 = vmul.f32 %v6146_v62, %v5155_v59 }
 0xac5   : > { %v5198_v7 = vadd.f32 %v5195_v39, %v5190_v31  ;;  %v5191_v52 = vmul.f32 %v5187_v15, %v5183_v4 }
 0xac7   : > { %5202 = vst [vmem:[#allocation11 + $0x10] sm:$0xff] %v5198_v7  ;;  %v5199_v48 = vadd.f32 %v5195_v39, %v5191_v52 }
 0xac9   : > { %5203 = vst [vmem:[#allocation11 + $0x18] sm:$0xff] %v5199_v48 }
 0xaca   : > { %6312 = shalt.err (!%p6309_p9)
}
 0xacb   : > { %s8023_s15 = sld [smem:[#allocation22_spill]] }
 0xad1   : > { %s6313_s22 = scalar_lea.hbm %s8023_s15, 512 }
 0xad2   : > { %p6314_p5 = scmp.ne.s32.totalorder %s8023_s15, %s6313_s22  ;;  %p6319_p3 = scmp.lt.u32.totalorder %s6313_s22, %s8023_s15 }
 0xad4   : > { %p6315_p0 = pnand %p6314_p5, %p5831_p11 }
 0xad6   : > { %p6316_p13 = pneg %p6315_p0 }
 0xad8   : > { %p6321_p2 = pnand %p6319_p3, %p6316_p13 }
 0xada   : > { %6324 = shalt.err (!%p6321_p2)
}
 0xadb   : > { %s6395_s25 = smov 128   ;;  %s6396_s17 = smov 8  }
 0xadc   : > { %5808 = dma.vmem_to_hbm [thread:$0]  (%p5831_p11), %s5211_s1, 512, %s8023_s15, [#allocation4], %s6395_s25, %s6395_s25, %s6396_s17  }
 0xadd   : > { %6354 = dma.done.wait (%p5831_p11), [#allocation4], 512  }
 0xade   : > { %6356 = vsyncadd (%p5831_p11), [#allocation4], 4294966784 }
 0xadf PF: > { %s8024_s12 = sld [smem:[#allocation17_spill]]  ;;  %s8025_s29 = sld [smem:[#allocation16_spill]] }
 0xae0   : > { %s8026_s11 = sld [smem:[#allocation18_spill]]  ;;  %s8027_s30 = smov %s6363_s10 }
 0xae5   : > { %p24_p4 = scmp.ge.s32.totalorder %s8024_s12, 4   ;;  %s8028_s10 = smov %s8025_s29 }
 0xae7   :  { %26 = sbr.rel (!%p24_p4) target bundleno = 12 (0xc), region = 146 }
 0xaee   :  { %5226 = vsyncpa [#allocation3], 1 }
 0xaef   :  { %5228 = vsyncpa [#allocation3 + $0x1], 1 }
 0xaf0   :  { %5229 = vsyncpa [#allocation6], 1 }
 0xaf1   :  { %5231 = vsyncpa [#allocation6 + $0x1], 1 }
 0xaf2   :  { %5232 = vsyncpa [#allocation9], 1 }
 0xaf3   :  { %5234 = vsyncpa [#allocation9 + $0x1], 1 }
 0xaf4   :  { %5235 = vsyncpa [#allocation4], 1 }
 0xaf5   :  { %5237 = vsyncpa [#allocation4 + $0x1], 1 }

</bundles_post_ra>
